<compile_context>
chip_gen: v7x
topology: tpu7x:2x2x1
jax: 0.10.0
libtpu: 0.0.40
codegen_flags: <defaults>
</compile_context>

<pallas_src>
import jax
import jax.numpy as jnp
import numpy as np
from jax import lax
from jax.experimental import pallas as pl
from jax.experimental.pallas import tpu as pltpu

# ---- KAN configuration (efficient-KAN defaults) -----------------------------
GRID_SIZE = 5
SPLINE_ORDER = 3
GRID_RANGE = (-1.0, 1.0)
NUM_BASIS = GRID_SIZE + SPLINE_ORDER                      # 8 spline bases
_H = (GRID_RANGE[1] - GRID_RANGE[0]) / GRID_SIZE          # knot spacing h
INV_H = 1.0 / _H
KNOTS = tuple(float(i * _H + GRID_RANGE[0])
              for i in range(-SPLINE_ORDER, GRID_SIZE + SPLINE_ORDER + 1))  # 12
NUM_CELLS = len(KNOTS) - 1                                 # 11 half-open cells


# =============================================================================
# In-kernel math
# =============================================================================
def _chunk_features(xc):
    """Per-feature-chunk MXU operand:  [ SiLU(xc) | B_0(xc) | ... | B_7(xc) ].

    xc: (TB, F) f32.  Returns (TB, (NUM_BASIS+1)*F) bf16.

    Bases use the uniform-grid local-polynomial form of the cubic B-spline:
    cell index c = floor((x - knots[0]) / h), local coordinate u in [0,1), and
    the four nonzero segment polynomials sA..sD assembled into the 8 dense
    bases with reusable equality masks.  Semantics identical to the half-open
    Cox–de Boor ladder (zero outside the knot span), to float rounding.
    """
    t = (xc - KNOTS[0]) * INV_H
    c = jnp.floor(t)                      # cell index (exact integer-valued f32)
    u = t - c                             # local coordinate in [0, 1)
    u2 = u * u
    sA = (1.0 / 6.0) * u * u2                              # piece for c == j
    sB = u * (u * (0.5 - 0.5 * u) + 0.5) + 1.0 / 6.0       # piece for c == j+1
    sC = u2 * (0.5 * u - 1.0) + 2.0 / 3.0                  # piece for c == j+2
    omu = 1.0 - u
    sD = (1.0 / 6.0) * omu * omu * omu                     # piece for c == j+3

    # 11 compares, reused by all 8 bases (instead of 32 fresh compares).
    eq = [c == float(k) for k in range(NUM_CELLS)]

    pieces = [jax.nn.silu(xc).astype(jnp.bfloat16)]
    for j in range(NUM_BASIS):
        bj = jnp.where(eq[j], sA,
             jnp.where(eq[j + 1], sB,
             jnp.where(eq[j + 2], sC,
             jnp.where(eq[j + 3], sD, 0.0))))
        # bf16 before the lane concat: halves the staging buffer; feeds a bf16 dot.
        pieces.append(bj.astype(jnp.bfloat16))
    return jnp.concatenate(pieces, axis=-1)


def _make_ffn_kernel(hidden, inter, f1, f2):
    """Build the fused FFN kernel for fixed dims / chunk sizes."""
    nc1, nc2 = hidden // f1, inter // f2
    rows1, rows2 = (NUM_BASIS + 1) * f1, (NUM_BASIS + 1) * f2

    def kernel(x_ref, w1_ref, w2_ref, o_ref, h_ref):
        # ---- layer 1: KANLinear(hidden -> inter), chunked over the hidden axis.
        # Static chunk loop: static ref slices are zero-cost views and each
        # chunk's temporaries die at its dot, so the live set stays ~(tb, F).
        acc1 = None
        for ci in range(nc1):
            xc = x_ref[:, ci * f1:(ci + 1) * f1].astype(jnp.float32)
            feats = _chunk_features(xc)                             # (tb, 9*f1) bf16
            part = jnp.dot(feats, w1_ref[ci * rows1:(ci + 1) * rows1, :],
                           preferred_element_type=jnp.float32)      # (tb, inter) f32
            acc1 = part if acc1 is None else acc1 + part

        # TODO(synk): nn.GELU() default is exact erf-GELU; tanh approximation
        # is used here (EUP-friendly).  Dropout(p=0.1) is identity (inference).
        h_ref[...] = jax.nn.gelu(acc1, approximate=True)            # f32 scratch

        # ---- layer 2: KANLinear(inter -> hidden), chunked over the inter axis.
        acc2 = None
        for ci in range(nc2):
            hc = h_ref[:, ci * f2:(ci + 1) * f2]                    # (tb, f2) f32
            feats = _chunk_features(hc)                             # (tb, 9*f2) bf16
            part = jnp.dot(feats, w2_ref[ci * rows2:(ci + 1) * rows2, :],
                           preferred_element_type=jnp.float32)      # (tb, hidden) f32
            acc2 = part if acc2 is None else acc2 + part

        o_ref[...] = acc2.astype(o_ref.dtype)                       # lane-dense store

    return kernel


# =============================================================================
# Wrapper
# =============================================================================
def _fuse_weights(base_w, spline_w, chunk):
    """Fuse base + spline weights into one chunk-major matmul operand.

    base_w: (D_in, D_out), spline_w: (NUM_BASIS, D_in, D_out).
    Returns ((NUM_BASIS+1)*D_in, D_out): for each feature chunk of width
    `chunk`, rows are [ base rows | basis0 rows | ... | basis7 rows ],
    matching the per-chunk lane concat produced by _chunk_features.
    """
    d_in, d_out = base_w.shape
    nc = d_in // chunk
    bw = base_w.reshape(nc, chunk, d_out)
    sw = spline_w.reshape(NUM_BASIS, nc, chunk, d_out)
    sw = jnp.transpose(sw, (1, 0, 2, 3)).reshape(nc, NUM_BASIS * chunk, d_out)
    fused = jnp.concatenate([bw, sw], axis=1)           # (nc, 9*chunk, d_out)
    return fused.reshape(nc * (NUM_BASIS + 1) * chunk, d_out)


def positionwise_ffn(x, params, *, token_block=512, feature_chunk=128):
    """x: (batch, seq, hidden) f32 -> (batch, seq, hidden) f32."""
    bw1, sw1, bw2, sw2 = params                         # bf16; sw*: (K, in, out)
    B, S, H = x.shape
    INTER = bw1.shape[1]

    F1 = feature_chunk if H % feature_chunk == 0 else H
    F2 = feature_chunk if INTER % feature_chunk == 0 else INTER
    w1 = _fuse_weights(bw1, sw1, F1)                    # ((K+1)*H, INTER) bf16
    w2 = _fuse_weights(bw2, sw2, F2)                    # ((K+1)*INTER, H) bf16

    N = B * S
    tb = int(min(token_block, ((N + 7) // 8) * 8))
    tb = max(8, (tb // 8) * 8)                          # multiple of 8
    Np = ((N + tb - 1) // tb) * tb

    # bf16 across the boundary: halves the only per-token HBM input stream.
    x2 = x.reshape(N, H).astype(jnp.bfloat16)
    if Np != N:
        x2 = jnp.pad(x2, ((0, Np - N), (0, 0)))

    def wspec(shape):
        # Constant index map -> no point double-buffering resident weights.
        return pl.BlockSpec(shape, lambda i: (0, 0), pipeline_mode=pl.Buffered(1))

    # --- VMEM budget: resident weights + double-buffered IO tiles + scratch +
    # per-chunk temporaries, clamped to *physical* capacity minus headroom.
    wbytes = int((w1.size + w2.size) * 2)
    io_bytes = 2 * tb * H * (2 + 4)                     # bf16 in + f32 out, x2 buffers
    scratch_bytes = tb * INTER * 4                      # h scratch
    fmax = max(F1, F2)
    tmp_bytes = tb * (2 * (INTER + H) * 4               # accumulators / gelu temp
                      + 20 * fmax * 4                   # live f32 chunk temporaries
                      + (NUM_BASIS + 1) * fmax * 2)     # bf16 feature concat
    need = wbytes + io_bytes + scratch_bytes + tmp_bytes
    try:
        vmem_cap = int(pltpu.get_tpu_info().vmem_capacity_bytes)
    except Exception:
        vmem_cap = 64 * 1024 * 1024                     # conservative: v7x per-TC VMEM
    vmem_limit = int(min(max(int(1.5 * need), 32 * 1024 * 1024),
                         vmem_cap - 8 * 1024 * 1024))
    # TODO(synk): at production dims (H=768, INTER=3072) the resident fused
    # weights (~95 MB bf16) exceed v7x VMEM; stream weight K-chunks from HBM
    # (memory_space=pl.ANY + double-buffered make_async_copy) instead.

    flops = int(2 * Np * 2 * (NUM_BASIS + 1) * H * INTER)
    transcendentals = int(Np * (H + 2 * INTER))
    bytes_accessed = int(Np * H * (2 + 4) + wbytes)

    out = pl.pallas_call(
        _make_ffn_kernel(H, INTER, F1, F2),
        out_shape=jax.ShapeDtypeStruct((Np, H), jnp.float32),
        grid_spec=pltpu.PrefetchScalarGridSpec(
            num_scalar_prefetch=0,
            grid=(Np // tb,),
            in_specs=[
                pl.BlockSpec((tb, H), lambda i: (i, 0)),
                wspec(w1.shape),
                wspec(w2.shape),
            ],
            out_specs=pl.BlockSpec((tb, H), lambda i: (i, 0)),
            scratch_shapes=[pltpu.VMEM((tb, INTER), jnp.float32)],
        ),
        compiler_params=pltpu.CompilerParams(
            dimension_semantics=("parallel",),
            vmem_limit_bytes=vmem_limit),
        cost_estimate=pl.CostEstimate(flops=flops,
                                      transcendentals=transcendentals,
                                      bytes_accessed=bytes_accessed),
    )(x2, w1, w2)

    if Np != N:
        out = out[:N]
    return out.reshape(B, S, H).astype(x.dtype)


# =============================================================================
# Parameters & pure-JAX reference (reference uses the Cox–de Boor ladder,
# cross-validating the kernel's local-polynomial rewrite)
# =============================================================================
def init_params(key, hidden_dim, intermediate_dim, dtype=jnp.bfloat16):
    """Deterministic synthetic KANLinear parameters, (in, out) / (K, in, out),
    stored bf16 with the spline scaler folded in."""
    k1, k2, k3, k4, k5, k6 = jax.random.split(key, 6)

    def kan_params(kb, ks, kc, fan_in, fan_out):
        base_w = jax.random.normal(kb, (fan_in, fan_out), jnp.float32) / np.sqrt(fan_in)
        spline_w = jax.random.normal(ks, (NUM_BASIS, fan_in, fan_out), jnp.float32) \
                   * (0.1 / np.sqrt(fan_in))
        scaler = 1.0 + 0.1 * jax.random.normal(kc, (fan_in, fan_out), jnp.float32)
        return base_w.astype(dtype), (spline_w * scaler[None, :, :]).astype(dtype)

    bw1, sw1 = kan_params(k1, k2, k3, hidden_dim, intermediate_dim)
    bw2, sw2 = kan_params(k4, k5, k6, intermediate_dim, hidden_dim)
    return bw1, sw1, bw2, sw2


def _b_spline_bases_ladder_concat(x):
    """Cox-de Boor recursion (reference path only).  x: (N, D) f32 ->
    (N, NUM_BASIS*D) f32, basis-major along the feature axis."""
    G = len(KNOTS)
    ind = [((x >= KNOTS[j]) & (x < KNOTS[j + 1])).astype(jnp.float32)
           for j in range(G - 1)]
    bases = [
        (x - KNOTS[j]) / (KNOTS[j + 1] - KNOTS[j]) * ind[j]
        + (KNOTS[j + 2] - x) / (KNOTS[j + 2] - KNOTS[j + 1]) * ind[j + 1]
        for j in range(G - 2)
    ]
    for k in range(2, SPLINE_ORDER + 1):
        bases = [
            (x - KNOTS[j]) / (KNOTS[j + k] - KNOTS[j]) * bases[j]
            + (KNOTS[j + k + 1] - x) / (KNOTS[j + k + 1] - KNOTS[j + 1]) * bases[j + 1]
            for j in range(len(bases) - 1)
        ]
    return jnp.concatenate(bases, axis=-1)


def reference_ffn(x, params):
    """Pure-JAX reference (same bf16 operand casts & bf16 input quantization,
    but unchunked dots and ladder-based bases)."""
    bw1, sw1, bw2, sw2 = params
    B, S, H = x.shape
    INTER = bw1.shape[1]
    x2 = x.reshape(-1, H).astype(jnp.bfloat16).astype(jnp.float32)

    def kan(z, bw, sw2d):
        out = jnp.dot(jax.nn.silu(z).astype(bw.dtype), bw,
                      preferred_element_type=jnp.float32)
        bases = _b_spline_bases_ladder_concat(z)
        return out + jnp.dot(bases.astype(sw2d.dtype), sw2d,
                             preferred_element_type=jnp.float32)

    h = jax.nn.gelu(kan(x2, bw1, sw1.reshape(NUM_BASIS * H, INTER)),
                    approximate=True)
    y = kan(h, bw2, sw2.reshape(NUM_BASIS * INTER, H))
    return y.reshape(B, S, H).astype(x.dtype)


if __name__ == "__main__":
    # Small demo shapes; hidden/intermediate are multiples of 128 so feature
    # chunks are lane-aligned and the output store is lane-dense.
    HIDDEN, INTER = 128, 512
    BATCH, SEQ = 2, 8

    key = jax.random.PRNGKey(0)
    kx, kp = jax.random.split(key)
    x = jax.random.normal(kx, (BATCH, SEQ, HIDDEN), jnp.float32)
    params = init_params(kp, HIDDEN, INTER)

    out = positionwise_ffn(x, params)
    out = jax.block_until_ready(out)

    ref = reference_ffn(x, params)
    assert out.shape == (BATCH, SEQ, HIDDEN)
    np.testing.assert_allclose(np.asarray(out, dtype=np.float32),
                               np.asarray(ref, dtype=np.float32),
                               atol=2e-3, rtol=2e-3)
    print("KERNEL_OK")
</pallas_src>

<mosaic_0001>
module attributes {stable_mosaic.version = 11 : i64} {
  func.func @kernel(%arg0: i32, %arg1: memref<16x128xbf16, #tpu.memory_space<vmem>>, %arg2: memref<1152x512xbf16, #tpu.memory_space<vmem>>, %arg3: memref<4608x128xbf16, #tpu.memory_space<vmem>>, %arg4: memref<16x128xf32, #tpu.memory_space<vmem>>, %arg5: memref<16x512xf32, #tpu.memory_space<vmem>>) attributes {dimension_semantics = [#tpu.dimension_semantics<parallel>], iteration_bounds = array<i64: 1>, scalar_prefetch = 0 : i64, scratch_operands = 1 : i64, tpu.core_type = #tpu.core_type<tc>, window_params = [{transform_indices = @transform_0, window_bounds = array<i64: 16, 128>}, {pipeline_mode = #tpu.pipeline_mode<synchronous>, transform_indices = @transform_1, window_bounds = array<i64: 1152, 512>}, {pipeline_mode = #tpu.pipeline_mode<synchronous>, transform_indices = @transform_2, window_bounds = array<i64: 4608, 128>}, {transform_indices = @transform_3, window_bounds = array<i64: 16, 128>}]} {
    %c0 = arith.constant 0 : index
    %c0_0 = arith.constant 0 : index
    %0 = vector.load %arg1[%c0, %c0_0] : memref<16x128xbf16, #tpu.memory_space<vmem>>, vector<16x128xbf16>
    %1 = arith.extf %0 : vector<16x128xbf16> to vector<16x128xf32>
    %cst = arith.constant -2.200000e+00 : f32
    %2 = vector.broadcast %cst : f32 to vector<16x128xf32>
    %3 = arith.subf %1, %2 : vector<16x128xf32>
    %cst_1 = arith.constant 2.500000e+00 : f32
    %4 = vector.broadcast %cst_1 : f32 to vector<16x128xf32>
    %5 = arith.mulf %3, %4 : vector<16x128xf32>
    %6 = math.floor %5 : vector<16x128xf32>
    %7 = arith.subf %5, %6 : vector<16x128xf32>
    %8 = arith.mulf %7, %7 : vector<16x128xf32>
    %cst_2 = arith.constant 0.166666672 : f32
    %9 = vector.broadcast %cst_2 : f32 to vector<16x128xf32>
    %10 = arith.mulf %9, %7 : vector<16x128xf32>
    %11 = arith.mulf %10, %8 : vector<16x128xf32>
    %cst_3 = arith.constant 5.000000e-01 : f32
    %12 = vector.broadcast %cst_3 : f32 to vector<16x128xf32>
    %13 = arith.mulf %12, %7 : vector<16x128xf32>
    %cst_4 = arith.constant 5.000000e-01 : f32
    %14 = vector.broadcast %cst_4 : f32 to vector<16x128xf32>
    %15 = arith.subf %14, %13 : vector<16x128xf32>
    %16 = arith.mulf %7, %15 : vector<16x128xf32>
    %cst_5 = arith.constant 5.000000e-01 : f32
    %17 = vector.broadcast %cst_5 : f32 to vector<16x128xf32>
    %18 = arith.addf %16, %17 : vector<16x128xf32>
    %19 = arith.mulf %7, %18 : vector<16x128xf32>
    %cst_6 = arith.constant 0.166666672 : f32
    %20 = vector.broadcast %cst_6 : f32 to vector<16x128xf32>
    %21 = arith.addf %19, %20 : vector<16x128xf32>
    %cst_7 = arith.constant 5.000000e-01 : f32
    %22 = vector.broadcast %cst_7 : f32 to vector<16x128xf32>
    %23 = arith.mulf %22, %7 : vector<16x128xf32>
    %cst_8 = arith.constant 1.000000e+00 : f32
    %24 = vector.broadcast %cst_8 : f32 to vector<16x128xf32>
    %25 = arith.subf %23, %24 : vector<16x128xf32>
    %26 = arith.mulf %8, %25 : vector<16x128xf32>
    %cst_9 = arith.constant 0.666666686 : f32
    %27 = vector.broadcast %cst_9 : f32 to vector<16x128xf32>
    %28 = arith.addf %26, %27 : vector<16x128xf32>
    %cst_10 = arith.constant 1.000000e+00 : f32
    %29 = vector.broadcast %cst_10 : f32 to vector<16x128xf32>
    %30 = arith.subf %29, %7 : vector<16x128xf32>
    %cst_11 = arith.constant 0.166666672 : f32
    %31 = vector.broadcast %cst_11 : f32 to vector<16x128xf32>
    %32 = arith.mulf %31, %30 : vector<16x128xf32>
    %33 = arith.mulf %32, %30 : vector<16x128xf32>
    %34 = arith.mulf %33, %30 : vector<16x128xf32>
    %cst_12 = arith.constant 0.000000e+00 : f32
    %35 = vector.broadcast %cst_12 : f32 to vector<16x128xf32>
    %36 = arith.cmpf oeq, %6, %35 : vector<16x128xf32>
    %cst_13 = arith.constant 1.000000e+00 : f32
    %37 = vector.broadcast %cst_13 : f32 to vector<16x128xf32>
    %38 = arith.cmpf oeq, %6, %37 : vector<16x128xf32>
    %cst_14 = arith.constant 2.000000e+00 : f32
    %39 = vector.broadcast %cst_14 : f32 to vector<16x128xf32>
    %40 = arith.cmpf oeq, %6, %39 : vector<16x128xf32>
    %cst_15 = arith.constant 3.000000e+00 : f32
    %41 = vector.broadcast %cst_15 : f32 to vector<16x128xf32>
    %42 = arith.cmpf oeq, %6, %41 : vector<16x128xf32>
    %cst_16 = arith.constant 4.000000e+00 : f32
    %43 = vector.broadcast %cst_16 : f32 to vector<16x128xf32>
    %44 = arith.cmpf oeq, %6, %43 : vector<16x128xf32>
    %cst_17 = arith.constant 5.000000e+00 : f32
    %45 = vector.broadcast %cst_17 : f32 to vector<16x128xf32>
    %46 = arith.cmpf oeq, %6, %45 : vector<16x128xf32>
    %cst_18 = arith.constant 6.000000e+00 : f32
    %47 = vector.broadcast %cst_18 : f32 to vector<16x128xf32>
    %48 = arith.cmpf oeq, %6, %47 : vector<16x128xf32>
    %cst_19 = arith.constant 7.000000e+00 : f32
    %49 = vector.broadcast %cst_19 : f32 to vector<16x128xf32>
    %50 = arith.cmpf oeq, %6, %49 : vector<16x128xf32>
    %cst_20 = arith.constant 8.000000e+00 : f32
    %51 = vector.broadcast %cst_20 : f32 to vector<16x128xf32>
    %52 = arith.cmpf oeq, %6, %51 : vector<16x128xf32>
    %cst_21 = arith.constant 9.000000e+00 : f32
    %53 = vector.broadcast %cst_21 : f32 to vector<16x128xf32>
    %54 = arith.cmpf oeq, %6, %53 : vector<16x128xf32>
    %cst_22 = arith.constant 1.000000e+01 : f32
    %55 = vector.broadcast %cst_22 : f32 to vector<16x128xf32>
    %56 = arith.cmpf oeq, %6, %55 : vector<16x128xf32>
    %57 = arith.negf %1 : vector<16x128xf32>
    %58 = math.exp %57 : vector<16x128xf32>
    %cst_23 = arith.constant 1.000000e+00 : f32
    %59 = vector.broadcast %cst_23 : f32 to vector<16x128xf32>
    %60 = arith.addf %59, %58 : vector<16x128xf32>
    %61 = arith.divf %59, %60 : vector<16x128xf32>
    %62 = arith.mulf %1, %61 : vector<16x128xf32>
    %63 = arith.truncf %62 : vector<16x128xf32> to vector<16x128xbf16>
    %cst_24 = arith.constant 0.000000e+00 : f32
    %64 = vector.broadcast %cst_24 : f32 to vector<16x128xf32>
    %65 = arith.select %42, %34, %64 : vector<16x128xi1>, vector<16x128xf32>
    %66 = arith.select %40, %28, %65 : vector<16x128xi1>, vector<16x128xf32>
    %67 = arith.select %38, %21, %66 : vector<16x128xi1>, vector<16x128xf32>
    %68 = arith.select %36, %11, %67 : vector<16x128xi1>, vector<16x128xf32>
    %69 = arith.truncf %68 : vector<16x128xf32> to vector<16x128xbf16>
    %cst_25 = arith.constant 0.000000e+00 : f32
    %70 = vector.broadcast %cst_25 : f32 to vector<16x128xf32>
    %71 = arith.select %44, %34, %70 : vector<16x128xi1>, vector<16x128xf32>
    %72 = arith.select %42, %28, %71 : vector<16x128xi1>, vector<16x128xf32>
    %73 = arith.select %40, %21, %72 : vector<16x128xi1>, vector<16x128xf32>
    %74 = arith.select %38, %11, %73 : vector<16x128xi1>, vector<16x128xf32>
    %75 = arith.truncf %74 : vector<16x128xf32> to vector<16x128xbf16>
    %cst_26 = arith.constant 0.000000e+00 : f32
    %76 = vector.broadcast %cst_26 : f32 to vector<16x128xf32>
    %77 = arith.select %46, %34, %76 : vector<16x128xi1>, vector<16x128xf32>
    %78 = arith.select %44, %28, %77 : vector<16x128xi1>, vector<16x128xf32>
    %79 = arith.select %42, %21, %78 : vector<16x128xi1>, vector<16x128xf32>
    %80 = arith.select %40, %11, %79 : vector<16x128xi1>, vector<16x128xf32>
    %81 = arith.truncf %80 : vector<16x128xf32> to vector<16x128xbf16>
    %cst_27 = arith.constant 0.000000e+00 : f32
    %82 = vector.broadcast %cst_27 : f32 to vector<16x128xf32>
    %83 = arith.select %48, %34, %82 : vector<16x128xi1>, vector<16x128xf32>
    %84 = arith.select %46, %28, %83 : vector<16x128xi1>, vector<16x128xf32>
    %85 = arith.select %44, %21, %84 : vector<16x128xi1>, vector<16x128xf32>
    %86 = arith.select %42, %11, %85 : vector<16x128xi1>, vector<16x128xf32>
    %87 = arith.truncf %86 : vector<16x128xf32> to vector<16x128xbf16>
    %cst_28 = arith.constant 0.000000e+00 : f32
    %88 = vector.broadcast %cst_28 : f32 to vector<16x128xf32>
    %89 = arith.select %50, %34, %88 : vector<16x128xi1>, vector<16x128xf32>
    %90 = arith.select %48, %28, %89 : vector<16x128xi1>, vector<16x128xf32>
    %91 = arith.select %46, %21, %90 : vector<16x128xi1>, vector<16x128xf32>
    %92 = arith.select %44, %11, %91 : vector<16x128xi1>, vector<16x128xf32>
    %93 = arith.truncf %92 : vector<16x128xf32> to vector<16x128xbf16>
    %cst_29 = arith.constant 0.000000e+00 : f32
    %94 = vector.broadcast %cst_29 : f32 to vector<16x128xf32>
    %95 = arith.select %52, %34, %94 : vector<16x128xi1>, vector<16x128xf32>
    %96 = arith.select %50, %28, %95 : vector<16x128xi1>, vector<16x128xf32>
    %97 = arith.select %48, %21, %96 : vector<16x128xi1>, vector<16x128xf32>
    %98 = arith.select %46, %11, %97 : vector<16x128xi1>, vector<16x128xf32>
    %99 = arith.truncf %98 : vector<16x128xf32> to vector<16x128xbf16>
    %cst_30 = arith.constant 0.000000e+00 : f32
    %100 = vector.broadcast %cst_30 : f32 to vector<16x128xf32>
    %101 = arith.select %54, %34, %100 : vector<16x128xi1>, vector<16x128xf32>
    %102 = arith.select %52, %28, %101 : vector<16x128xi1>, vector<16x128xf32>
    %103 = arith.select %50, %21, %102 : vector<16x128xi1>, vector<16x128xf32>
    %104 = arith.select %48, %11, %103 : vector<16x128xi1>, vector<16x128xf32>
    %105 = arith.truncf %104 : vector<16x128xf32> to vector<16x128xbf16>
    %cst_31 = arith.constant 0.000000e+00 : f32
    %106 = vector.broadcast %cst_31 : f32 to vector<16x128xf32>
    %107 = arith.select %56, %34, %106 : vector<16x128xi1>, vector<16x128xf32>
    %108 = arith.select %54, %28, %107 : vector<16x128xi1>, vector<16x128xf32>
    %109 = arith.select %52, %21, %108 : vector<16x128xi1>, vector<16x128xf32>
    %110 = arith.select %50, %11, %109 : vector<16x128xi1>, vector<16x128xf32>
    %111 = arith.truncf %110 : vector<16x128xf32> to vector<16x128xbf16>
    %112 = tpu.concatenate %63, %69, %75, %81, %87, %93, %99, %105, %111 in 1 : vector<16x128xbf16>, vector<16x128xbf16>, vector<16x128xbf16>, vector<16x128xbf16>, vector<16x128xbf16>, vector<16x128xbf16>, vector<16x128xbf16>, vector<16x128xbf16>, vector<16x128xbf16> -> vector<16x1152xbf16>
    %c0_32 = arith.constant 0 : index
    %c0_33 = arith.constant 0 : index
    %113 = vector.load %arg2[%c0_32, %c0_33] : memref<1152x512xbf16, #tpu.memory_space<vmem>>, vector<1152x512xbf16>
    %cst_34 = arith.constant dense<0.000000e+00> : vector<16x512xf32>
    %114 = tpu.matmul %112, %113, %cst_34 {dimension_numbers = #tpu.dot_dimension_numbers<[1], [0], [0], [1], [0, 0, 1, 1], [], []>} : vector<16x1152xbf16>, vector<1152x512xbf16>, vector<16x512xf32> -> vector<16x512xf32>
    %115 = arith.mulf %114, %114 : vector<16x512xf32>
    %116 = arith.mulf %114, %115 : vector<16x512xf32>
    %cst_35 = arith.constant 4.471500e-02 : f32
    %117 = vector.broadcast %cst_35 : f32 to vector<16x512xf32>
    %118 = arith.mulf %117, %116 : vector<16x512xf32>
    %119 = arith.addf %114, %118 : vector<16x512xf32>
    %cst_36 = arith.constant 0.797884583 : f32
    %120 = vector.broadcast %cst_36 : f32 to vector<16x512xf32>
    %121 = arith.mulf %120, %119 : vector<16x512xf32>
    %122 = math.tanh %121 : vector<16x512xf32>
    %cst_37 = arith.constant 1.000000e+00 : f32
    %123 = vector.broadcast %cst_37 : f32 to vector<16x512xf32>
    %124 = arith.addf %123, %122 : vector<16x512xf32>
    %cst_38 = arith.constant 5.000000e-01 : f32
    %125 = vector.broadcast %cst_38 : f32 to vector<16x512xf32>
    %126 = arith.mulf %125, %124 : vector<16x512xf32>
    %127 = arith.mulf %114, %126 : vector<16x512xf32>
    %c0_39 = arith.constant 0 : index
    %c0_40 = arith.constant 0 : index
    %128 = vector.load %arg5[%c0_39, %c0_40] : memref<16x512xf32, #tpu.memory_space<vmem>>, vector<16x512xf32>
    tpu.vector_store %arg5[%c0_39, %c0_40], %127 {strides = array<i32>} : memref<16x512xf32, #tpu.memory_space<vmem>>, vector<16x512xf32>,
    %c0_41 = arith.constant 0 : index
    %c0_42 = arith.constant 0 : index
    %129 = vector.load %arg5[%c0_41, %c0_42] : memref<16x512xf32, #tpu.memory_space<vmem>>, vector<16x128xf32>
    %cst_43 = arith.constant -2.200000e+00 : f32
    %130 = vector.broadcast %cst_43 : f32 to vector<16x128xf32>
    %131 = arith.subf %129, %130 : vector<16x128xf32>
    %cst_44 = arith.constant 2.500000e+00 : f32
    %132 = vector.broadcast %cst_44 : f32 to vector<16x128xf32>
    %133 = arith.mulf %131, %132 : vector<16x128xf32>
    %134 = math.floor %133 : vector<16x128xf32>
    %135 = arith.subf %133, %134 : vector<16x128xf32>
    %136 = arith.mulf %135, %135 : vector<16x128xf32>
    %cst_45 = arith.constant 0.166666672 : f32
    %137 = vector.broadcast %cst_45 : f32 to vector<16x128xf32>
    %138 = arith.mulf %137, %135 : vector<16x128xf32>
    %139 = arith.mulf %138, %136 : vector<16x128xf32>
    %cst_46 = arith.constant 5.000000e-01 : f32
    %140 = vector.broadcast %cst_46 : f32 to vector<16x128xf32>
    %141 = arith.mulf %140, %135 : vector<16x128xf32>
    %cst_47 = arith.constant 5.000000e-01 : f32
    %142 = vector.broadcast %cst_47 : f32 to vector<16x128xf32>
    %143 = arith.subf %142, %141 : vector<16x128xf32>
    %144 = arith.mulf %135, %143 : vector<16x128xf32>
    %cst_48 = arith.constant 5.000000e-01 : f32
    %145 = vector.broadcast %cst_48 : f32 to vector<16x128xf32>
    %146 = arith.addf %144, %145 : vector<16x128xf32>
    %147 = arith.mulf %135, %146 : vector<16x128xf32>
    %cst_49 = arith.constant 0.166666672 : f32
    %148 = vector.broadcast %cst_49 : f32 to vector<16x128xf32>
    %149 = arith.addf %147, %148 : vector<16x128xf32>
    %cst_50 = arith.constant 5.000000e-01 : f32
    %150 = vector.broadcast %cst_50 : f32 to vector<16x128xf32>
    %151 = arith.mulf %150, %135 : vector<16x128xf32>
    %cst_51 = arith.constant 1.000000e+00 : f32
    %152 = vector.broadcast %cst_51 : f32 to vector<16x128xf32>
    %153 = arith.subf %151, %152 : vector<16x128xf32>
    %154 = arith.mulf %136, %153 : vector<16x128xf32>
    %cst_52 = arith.constant 0.666666686 : f32
    %155 = vector.broadcast %cst_52 : f32 to vector<16x128xf32>
    %156 = arith.addf %154, %155 : vector<16x128xf32>
    %cst_53 = arith.constant 1.000000e+00 : f32
    %157 = vector.broadcast %cst_53 : f32 to vector<16x128xf32>
    %158 = arith.subf %157, %135 : vector<16x128xf32>
    %cst_54 = arith.constant 0.166666672 : f32
    %159 = vector.broadcast %cst_54 : f32 to vector<16x128xf32>
    %160 = arith.mulf %159, %158 : vector<16x128xf32>
    %161 = arith.mulf %160, %158 : vector<16x128xf32>
    %162 = arith.mulf %161, %158 : vector<16x128xf32>
    %cst_55 = arith.constant 0.000000e+00 : f32
    %163 = vector.broadcast %cst_55 : f32 to vector<16x128xf32>
    %164 = arith.cmpf oeq, %134, %163 : vector<16x128xf32>
    %cst_56 = arith.constant 1.000000e+00 : f32
    %165 = vector.broadcast %cst_56 : f32 to vector<16x128xf32>
    %166 = arith.cmpf oeq, %134, %165 : vector<16x128xf32>
    %cst_57 = arith.constant 2.000000e+00 : f32
    %167 = vector.broadcast %cst_57 : f32 to vector<16x128xf32>
    %168 = arith.cmpf oeq, %134, %167 : vector<16x128xf32>
    %cst_58 = arith.constant 3.000000e+00 : f32
    %169 = vector.broadcast %cst_58 : f32 to vector<16x128xf32>
    %170 = arith.cmpf oeq, %134, %169 : vector<16x128xf32>
    %cst_59 = arith.constant 4.000000e+00 : f32
    %171 = vector.broadcast %cst_59 : f32 to vector<16x128xf32>
    %172 = arith.cmpf oeq, %134, %171 : vector<16x128xf32>
    %cst_60 = arith.constant 5.000000e+00 : f32
    %173 = vector.broadcast %cst_60 : f32 to vector<16x128xf32>
    %174 = arith.cmpf oeq, %134, %173 : vector<16x128xf32>
    %cst_61 = arith.constant 6.000000e+00 : f32
    %175 = vector.broadcast %cst_61 : f32 to vector<16x128xf32>
    %176 = arith.cmpf oeq, %134, %175 : vector<16x128xf32>
    %cst_62 = arith.constant 7.000000e+00 : f32
    %177 = vector.broadcast %cst_62 : f32 to vector<16x128xf32>
    %178 = arith.cmpf oeq, %134, %177 : vector<16x128xf32>
    %cst_63 = arith.constant 8.000000e+00 : f32
    %179 = vector.broadcast %cst_63 : f32 to vector<16x128xf32>
    %180 = arith.cmpf oeq, %134, %179 : vector<16x128xf32>
    %cst_64 = arith.constant 9.000000e+00 : f32
    %181 = vector.broadcast %cst_64 : f32 to vector<16x128xf32>
    %182 = arith.cmpf oeq, %134, %181 : vector<16x128xf32>
    %cst_65 = arith.constant 1.000000e+01 : f32
    %183 = vector.broadcast %cst_65 : f32 to vector<16x128xf32>
    %184 = arith.cmpf oeq, %134, %183 : vector<16x128xf32>
    %185 = arith.negf %129 : vector<16x128xf32>
    %186 = math.exp %185 : vector<16x128xf32>
    %cst_66 = arith.constant 1.000000e+00 : f32
    %187 = vector.broadcast %cst_66 : f32 to vector<16x128xf32>
    %188 = arith.addf %187, %186 : vector<16x128xf32>
    %189 = arith.divf %187, %188 : vector<16x128xf32>
    %190 = arith.mulf %129, %189 : vector<16x128xf32>
    %191 = arith.truncf %190 : vector<16x128xf32> to vector<16x128xbf16>
    %cst_67 = arith.constant 0.000000e+00 : f32
    %192 = vector.broadcast %cst_67 : f32 to vector<16x128xf32>
    %193 = arith.select %170, %162, %192 : vector<16x128xi1>, vector<16x128xf32>
    %194 = arith.select %168, %156, %193 : vector<16x128xi1>, vector<16x128xf32>
    %195 = arith.select %166, %149, %194 : vector<16x128xi1>, vector<16x128xf32>
    %196 = arith.select %164, %139, %195 : vector<16x128xi1>, vector<16x128xf32>
    %197 = arith.truncf %196 : vector<16x128xf32> to vector<16x128xbf16>
    %cst_68 = arith.constant 0.000000e+00 : f32
    %198 = vector.broadcast %cst_68 : f32 to vector<16x128xf32>
    %199 = arith.select %172, %162, %198 : vector<16x128xi1>, vector<16x128xf32>
    %200 = arith.select %170, %156, %199 : vector<16x128xi1>, vector<16x128xf32>
    %201 = arith.select %168, %149, %200 : vector<16x128xi1>, vector<16x128xf32>
    %202 = arith.select %166, %139, %201 : vector<16x128xi1>, vector<16x128xf32>
    %203 = arith.truncf %202 : vector<16x128xf32> to vector<16x128xbf16>
    %cst_69 = arith.constant 0.000000e+00 : f32
    %204 = vector.broadcast %cst_69 : f32 to vector<16x128xf32>
    %205 = arith.select %174, %162, %204 : vector<16x128xi1>, vector<16x128xf32>
    %206 = arith.select %172, %156, %205 : vector<16x128xi1>, vector<16x128xf32>
    %207 = arith.select %170, %149, %206 : vector<16x128xi1>, vector<16x128xf32>
    %208 = arith.select %168, %139, %207 : vector<16x128xi1>, vector<16x128xf32>
    %209 = arith.truncf %208 : vector<16x128xf32> to vector<16x128xbf16>
    %cst_70 = arith.constant 0.000000e+00 : f32
    %210 = vector.broadcast %cst_70 : f32 to vector<16x128xf32>
    %211 = arith.select %176, %162, %210 : vector<16x128xi1>, vector<16x128xf32>
    %212 = arith.select %174, %156, %211 : vector<16x128xi1>, vector<16x128xf32>
    %213 = arith.select %172, %149, %212 : vector<16x128xi1>, vector<16x128xf32>
    %214 = arith.select %170, %139, %213 : vector<16x128xi1>, vector<16x128xf32>
    %215 = arith.truncf %214 : vector<16x128xf32> to vector<16x128xbf16>
    %cst_71 = arith.constant 0.000000e+00 : f32
    %216 = vector.broadcast %cst_71 : f32 to vector<16x128xf32>
    %217 = arith.select %178, %162, %216 : vector<16x128xi1>, vector<16x128xf32>
    %218 = arith.select %176, %156, %217 : vector<16x128xi1>, vector<16x128xf32>
    %219 = arith.select %174, %149, %218 : vector<16x128xi1>, vector<16x128xf32>
    %220 = arith.select %172, %139, %219 : vector<16x128xi1>, vector<16x128xf32>
    %221 = arith.truncf %220 : vector<16x128xf32> to vector<16x128xbf16>
    %cst_72 = arith.constant 0.000000e+00 : f32
    %222 = vector.broadcast %cst_72 : f32 to vector<16x128xf32>
    %223 = arith.select %180, %162, %222 : vector<16x128xi1>, vector<16x128xf32>
    %224 = arith.select %178, %156, %223 : vector<16x128xi1>, vector<16x128xf32>
    %225 = arith.select %176, %149, %224 : vector<16x128xi1>, vector<16x128xf32>
    %226 = arith.select %174, %139, %225 : vector<16x128xi1>, vector<16x128xf32>
    %227 = arith.truncf %226 : vector<16x128xf32> to vector<16x128xbf16>
    %cst_73 = arith.constant 0.000000e+00 : f32
    %228 = vector.broadcast %cst_73 : f32 to vector<16x128xf32>
    %229 = arith.select %182, %162, %228 : vector<16x128xi1>, vector<16x128xf32>
    %230 = arith.select %180, %156, %229 : vector<16x128xi1>, vector<16x128xf32>
    %231 = arith.select %178, %149, %230 : vector<16x128xi1>, vector<16x128xf32>
    %232 = arith.select %176, %139, %231 : vector<16x128xi1>, vector<16x128xf32>
    %233 = arith.truncf %232 : vector<16x128xf32> to vector<16x128xbf16>
    %cst_74 = arith.constant 0.000000e+00 : f32
    %234 = vector.broadcast %cst_74 : f32 to vector<16x128xf32>
    %235 = arith.select %184, %162, %234 : vector<16x128xi1>, vector<16x128xf32>
    %236 = arith.select %182, %156, %235 : vector<16x128xi1>, vector<16x128xf32>
    %237 = arith.select %180, %149, %236 : vector<16x128xi1>, vector<16x128xf32>
    %238 = arith.select %178, %139, %237 : vector<16x128xi1>, vector<16x128xf32>
    %239 = arith.truncf %238 : vector<16x128xf32> to vector<16x128xbf16>
    %240 = tpu.concatenate %191, %197, %203, %209, %215, %221, %227, %233, %239 in 1 : vector<16x128xbf16>, vector<16x128xbf16>, vector<16x128xbf16>, vector<16x128xbf16>, vector<16x128xbf16>, vector<16x128xbf16>, vector<16x128xbf16>, vector<16x128xbf16>, vector<16x128xbf16> -> vector<16x1152xbf16>
    %c0_75 = arith.constant 0 : index
    %c0_76 = arith.constant 0 : index
    %241 = vector.load %arg3[%c0_75, %c0_76] : memref<4608x128xbf16, #tpu.memory_space<vmem>>, vector<1152x128xbf16>
    %cst_77 = arith.constant dense<0.000000e+00> : vector<16x128xf32>
    %242 = tpu.matmul %240, %241, %cst_77 {dimension_numbers = #tpu.dot_dimension_numbers<[1], [0], [0], [1], [0, 0, 1, 1], [], []>} : vector<16x1152xbf16>, vector<1152x128xbf16>, vector<16x128xf32> -> vector<16x128xf32>
    %c0_78 = arith.constant 0 : index
    %c128 = arith.constant 128 : index
    %243 = vector.load %arg5[%c0_78, %c128] : memref<16x512xf32, #tpu.memory_space<vmem>>, vector<16x128xf32>
    %cst_79 = arith.constant -2.200000e+00 : f32
    %244 = vector.broadcast %cst_79 : f32 to vector<16x128xf32>
    %245 = arith.subf %243, %244 : vector<16x128xf32>
    %cst_80 = arith.constant 2.500000e+00 : f32
    %246 = vector.broadcast %cst_80 : f32 to vector<16x128xf32>
    %247 = arith.mulf %245, %246 : vector<16x128xf32>
    %248 = math.floor %247 : vector<16x128xf32>
    %249 = arith.subf %247, %248 : vector<16x128xf32>
    %250 = arith.mulf %249, %249 : vector<16x128xf32>
    %cst_81 = arith.constant 0.166666672 : f32
    %251 = vector.broadcast %cst_81 : f32 to vector<16x128xf32>
    %252 = arith.mulf %251, %249 : vector<16x128xf32>
    %253 = arith.mulf %252, %250 : vector<16x128xf32>
    %cst_82 = arith.constant 5.000000e-01 : f32
    %254 = vector.broadcast %cst_82 : f32 to vector<16x128xf32>
    %255 = arith.mulf %254, %249 : vector<16x128xf32>
    %cst_83 = arith.constant 5.000000e-01 : f32
    %256 = vector.broadcast %cst_83 : f32 to vector<16x128xf32>
    %257 = arith.subf %256, %255 : vector<16x128xf32>
    %258 = arith.mulf %249, %257 : vector<16x128xf32>
    %cst_84 = arith.constant 5.000000e-01 : f32
    %259 = vector.broadcast %cst_84 : f32 to vector<16x128xf32>
    %260 = arith.addf %258, %259 : vector<16x128xf32>
    %261 = arith.mulf %249, %260 : vector<16x128xf32>
    %cst_85 = arith.constant 0.166666672 : f32
    %262 = vector.broadcast %cst_85 : f32 to vector<16x128xf32>
    %263 = arith.addf %261, %262 : vector<16x128xf32>
    %cst_86 = arith.constant 5.000000e-01 : f32
    %264 = vector.broadcast %cst_86 : f32 to vector<16x128xf32>
    %265 = arith.mulf %264, %249 : vector<16x128xf32>
    %cst_87 = arith.constant 1.000000e+00 : f32
    %266 = vector.broadcast %cst_87 : f32 to vector<16x128xf32>
    %267 = arith.subf %265, %266 : vector<16x128xf32>
    %268 = arith.mulf %250, %267 : vector<16x128xf32>
    %cst_88 = arith.constant 0.666666686 : f32
    %269 = vector.broadcast %cst_88 : f32 to vector<16x128xf32>
    %270 = arith.addf %268, %269 : vector<16x128xf32>
    %cst_89 = arith.constant 1.000000e+00 : f32
    %271 = vector.broadcast %cst_89 : f32 to vector<16x128xf32>
    %272 = arith.subf %271, %249 : vector<16x128xf32>
    %cst_90 = arith.constant 0.166666672 : f32
    %273 = vector.broadcast %cst_90 : f32 to vector<16x128xf32>
    %274 = arith.mulf %273, %272 : vector<16x128xf32>
    %275 = arith.mulf %274, %272 : vector<16x128xf32>
    %276 = arith.mulf %275, %272 : vector<16x128xf32>
    %cst_91 = arith.constant 0.000000e+00 : f32
    %277 = vector.broadcast %cst_91 : f32 to vector<16x128xf32>
    %278 = arith.cmpf oeq, %248, %277 : vector<16x128xf32>
    %cst_92 = arith.constant 1.000000e+00 : f32
    %279 = vector.broadcast %cst_92 : f32 to vector<16x128xf32>
    %280 = arith.cmpf oeq, %248, %279 : vector<16x128xf32>
    %cst_93 = arith.constant 2.000000e+00 : f32
    %281 = vector.broadcast %cst_93 : f32 to vector<16x128xf32>
    %282 = arith.cmpf oeq, %248, %281 : vector<16x128xf32>
    %cst_94 = arith.constant 3.000000e+00 : f32
    %283 = vector.broadcast %cst_94 : f32 to vector<16x128xf32>
    %284 = arith.cmpf oeq, %248, %283 : vector<16x128xf32>
    %cst_95 = arith.constant 4.000000e+00 : f32
    %285 = vector.broadcast %cst_95 : f32 to vector<16x128xf32>
    %286 = arith.cmpf oeq, %248, %285 : vector<16x128xf32>
    %cst_96 = arith.constant 5.000000e+00 : f32
    %287 = vector.broadcast %cst_96 : f32 to vector<16x128xf32>
    %288 = arith.cmpf oeq, %248, %287 : vector<16x128xf32>
    %cst_97 = arith.constant 6.000000e+00 : f32
    %289 = vector.broadcast %cst_97 : f32 to vector<16x128xf32>
    %290 = arith.cmpf oeq, %248, %289 : vector<16x128xf32>
    %cst_98 = arith.constant 7.000000e+00 : f32
    %291 = vector.broadcast %cst_98 : f32 to vector<16x128xf32>
    %292 = arith.cmpf oeq, %248, %291 : vector<16x128xf32>
    %cst_99 = arith.constant 8.000000e+00 : f32
    %293 = vector.broadcast %cst_99 : f32 to vector<16x128xf32>
    %294 = arith.cmpf oeq, %248, %293 : vector<16x128xf32>
    %cst_100 = arith.constant 9.000000e+00 : f32
    %295 = vector.broadcast %cst_100 : f32 to vector<16x128xf32>
    %296 = arith.cmpf oeq, %248, %295 : vector<16x128xf32>
    %cst_101 = arith.constant 1.000000e+01 : f32
    %297 = vector.broadcast %cst_101 : f32 to vector<16x128xf32>
    %298 = arith.cmpf oeq, %248, %297 : vector<16x128xf32>
    %299 = arith.negf %243 : vector<16x128xf32>
    %300 = math.exp %299 : vector<16x128xf32>
    %cst_102 = arith.constant 1.000000e+00 : f32
    %301 = vector.broadcast %cst_102 : f32 to vector<16x128xf32>
    %302 = arith.addf %301, %300 : vector<16x128xf32>
    %303 = arith.divf %301, %302 : vector<16x128xf32>
    %304 = arith.mulf %243, %303 : vector<16x128xf32>
    %305 = arith.truncf %304 : vector<16x128xf32> to vector<16x128xbf16>
    %cst_103 = arith.constant 0.000000e+00 : f32
    %306 = vector.broadcast %cst_103 : f32 to vector<16x128xf32>
    %307 = arith.select %284, %276, %306 : vector<16x128xi1>, vector<16x128xf32>
    %308 = arith.select %282, %270, %307 : vector<16x128xi1>, vector<16x128xf32>
    %309 = arith.select %280, %263, %308 : vector<16x128xi1>, vector<16x128xf32>
    %310 = arith.select %278, %253, %309 : vector<16x128xi1>, vector<16x128xf32>
    %311 = arith.truncf %310 : vector<16x128xf32> to vector<16x128xbf16>
    %cst_104 = arith.constant 0.000000e+00 : f32
    %312 = vector.broadcast %cst_104 : f32 to vector<16x128xf32>
    %313 = arith.select %286, %276, %312 : vector<16x128xi1>, vector<16x128xf32>
    %314 = arith.select %284, %270, %313 : vector<16x128xi1>, vector<16x128xf32>
    %315 = arith.select %282, %263, %314 : vector<16x128xi1>, vector<16x128xf32>
    %316 = arith.select %280, %253, %315 : vector<16x128xi1>, vector<16x128xf32>
    %317 = arith.truncf %316 : vector<16x128xf32> to vector<16x128xbf16>
    %cst_105 = arith.constant 0.000000e+00 : f32
    %318 = vector.broadcast %cst_105 : f32 to vector<16x128xf32>
    %319 = arith.select %288, %276, %318 : vector<16x128xi1>, vector<16x128xf32>
    %320 = arith.select %286, %270, %319 : vector<16x128xi1>, vector<16x128xf32>
    %321 = arith.select %284, %263, %320 : vector<16x128xi1>, vector<16x128xf32>
    %322 = arith.select %282, %253, %321 : vector<16x128xi1>, vector<16x128xf32>
    %323 = arith.truncf %322 : vector<16x128xf32> to vector<16x128xbf16>
    %cst_106 = arith.constant 0.000000e+00 : f32
    %324 = vector.broadcast %cst_106 : f32 to vector<16x128xf32>
    %325 = arith.select %290, %276, %324 : vector<16x128xi1>, vector<16x128xf32>
    %326 = arith.select %288, %270, %325 : vector<16x128xi1>, vector<16x128xf32>
    %327 = arith.select %286, %263, %326 : vector<16x128xi1>, vector<16x128xf32>
    %328 = arith.select %284, %253, %327 : vector<16x128xi1>, vector<16x128xf32>
    %329 = arith.truncf %328 : vector<16x128xf32> to vector<16x128xbf16>
    %cst_107 = arith.constant 0.000000e+00 : f32
    %330 = vector.broadcast %cst_107 : f32 to vector<16x128xf32>
    %331 = arith.select %292, %276, %330 : vector<16x128xi1>, vector<16x128xf32>
    %332 = arith.select %290, %270, %331 : vector<16x128xi1>, vector<16x128xf32>
    %333 = arith.select %288, %263, %332 : vector<16x128xi1>, vector<16x128xf32>
    %334 = arith.select %286, %253, %333 : vector<16x128xi1>, vector<16x128xf32>
    %335 = arith.truncf %334 : vector<16x128xf32> to vector<16x128xbf16>
    %cst_108 = arith.constant 0.000000e+00 : f32
    %336 = vector.broadcast %cst_108 : f32 to vector<16x128xf32>
    %337 = arith.select %294, %276, %336 : vector<16x128xi1>, vector<16x128xf32>
    %338 = arith.select %292, %270, %337 : vector<16x128xi1>, vector<16x128xf32>
    %339 = arith.select %290, %263, %338 : vector<16x128xi1>, vector<16x128xf32>
    %340 = arith.select %288, %253, %339 : vector<16x128xi1>, vector<16x128xf32>
    %341 = arith.truncf %340 : vector<16x128xf32> to vector<16x128xbf16>
    %cst_109 = arith.constant 0.000000e+00 : f32
    %342 = vector.broadcast %cst_109 : f32 to vector<16x128xf32>
    %343 = arith.select %296, %276, %342 : vector<16x128xi1>, vector<16x128xf32>
    %344 = arith.select %294, %270, %343 : vector<16x128xi1>, vector<16x128xf32>
    %345 = arith.select %292, %263, %344 : vector<16x128xi1>, vector<16x128xf32>
    %346 = arith.select %290, %253, %345 : vector<16x128xi1>, vector<16x128xf32>
    %347 = arith.truncf %346 : vector<16x128xf32> to vector<16x128xbf16>
    %cst_110 = arith.constant 0.000000e+00 : f32
    %348 = vector.broadcast %cst_110 : f32 to vector<16x128xf32>
    %349 = arith.select %298, %276, %348 : vector<16x128xi1>, vector<16x128xf32>
    %350 = arith.select %296, %270, %349 : vector<16x128xi1>, vector<16x128xf32>
    %351 = arith.select %294, %263, %350 : vector<16x128xi1>, vector<16x128xf32>
    %352 = arith.select %292, %253, %351 : vector<16x128xi1>, vector<16x128xf32>
    %353 = arith.truncf %352 : vector<16x128xf32> to vector<16x128xbf16>
    %354 = tpu.concatenate %305, %311, %317, %323, %329, %335, %341, %347, %353 in 1 : vector<16x128xbf16>, vector<16x128xbf16>, vector<16x128xbf16>, vector<16x128xbf16>, vector<16x128xbf16>, vector<16x128xbf16>, vector<16x128xbf16>, vector<16x128xbf16>, vector<16x128xbf16> -> vector<16x1152xbf16>
    %c1152 = arith.constant 1152 : index
    %c0_111 = arith.constant 0 : index
    %355 = vector.load %arg3[%c1152, %c0_111] : memref<4608x128xbf16, #tpu.memory_space<vmem>>, vector<1152x128xbf16>
    %cst_112 = arith.constant dense<0.000000e+00> : vector<16x128xf32>
    %356 = tpu.matmul %354, %355, %cst_112 {dimension_numbers = #tpu.dot_dimension_numbers<[1], [0], [0], [1], [0, 0, 1, 1], [], []>} : vector<16x1152xbf16>, vector<1152x128xbf16>, vector<16x128xf32> -> vector<16x128xf32>
    %357 = arith.addf %242, %356 : vector<16x128xf32>
    %c0_113 = arith.constant 0 : index
    %c256 = arith.constant 256 : index
    %358 = vector.load %arg5[%c0_113, %c256] : memref<16x512xf32, #tpu.memory_space<vmem>>, vector<16x128xf32>
    %cst_114 = arith.constant -2.200000e+00 : f32
    %359 = vector.broadcast %cst_114 : f32 to vector<16x128xf32>
    %360 = arith.subf %358, %359 : vector<16x128xf32>
    %cst_115 = arith.constant 2.500000e+00 : f32
    %361 = vector.broadcast %cst_115 : f32 to vector<16x128xf32>
    %362 = arith.mulf %360, %361 : vector<16x128xf32>
    %363 = math.floor %362 : vector<16x128xf32>
    %364 = arith.subf %362, %363 : vector<16x128xf32>
    %365 = arith.mulf %364, %364 : vector<16x128xf32>
    %cst_116 = arith.constant 0.166666672 : f32
    %366 = vector.broadcast %cst_116 : f32 to vector<16x128xf32>
    %367 = arith.mulf %366, %364 : vector<16x128xf32>
    %368 = arith.mulf %367, %365 : vector<16x128xf32>
    %cst_117 = arith.constant 5.000000e-01 : f32
    %369 = vector.broadcast %cst_117 : f32 to vector<16x128xf32>
    %370 = arith.mulf %369, %364 : vector<16x128xf32>
    %cst_118 = arith.constant 5.000000e-01 : f32
    %371 = vector.broadcast %cst_118 : f32 to vector<16x128xf32>
    %372 = arith.subf %371, %370 : vector<16x128xf32>
    %373 = arith.mulf %364, %372 : vector<16x128xf32>
    %cst_119 = arith.constant 5.000000e-01 : f32
    %374 = vector.broadcast %cst_119 : f32 to vector<16x128xf32>
    %375 = arith.addf %373, %374 : vector<16x128xf32>
    %376 = arith.mulf %364, %375 : vector<16x128xf32>
    %cst_120 = arith.constant 0.166666672 : f32
    %377 = vector.broadcast %cst_120 : f32 to vector<16x128xf32>
    %378 = arith.addf %376, %377 : vector<16x128xf32>
    %cst_121 = arith.constant 5.000000e-01 : f32
    %379 = vector.broadcast %cst_121 : f32 to vector<16x128xf32>
    %380 = arith.mulf %379, %364 : vector<16x128xf32>
    %cst_122 = arith.constant 1.000000e+00 : f32
    %381 = vector.broadcast %cst_122 : f32 to vector<16x128xf32>
    %382 = arith.subf %380, %381 : vector<16x128xf32>
    %383 = arith.mulf %365, %382 : vector<16x128xf32>
    %cst_123 = arith.constant 0.666666686 : f32
    %384 = vector.broadcast %cst_123 : f32 to vector<16x128xf32>
    %385 = arith.addf %383, %384 : vector<16x128xf32>
    %cst_124 = arith.constant 1.000000e+00 : f32
    %386 = vector.broadcast %cst_124 : f32 to vector<16x128xf32>
    %387 = arith.subf %386, %364 : vector<16x128xf32>
    %cst_125 = arith.constant 0.166666672 : f32
    %388 = vector.broadcast %cst_125 : f32 to vector<16x128xf32>
    %389 = arith.mulf %388, %387 : vector<16x128xf32>
    %390 = arith.mulf %389, %387 : vector<16x128xf32>
    %391 = arith.mulf %390, %387 : vector<16x128xf32>
    %cst_126 = arith.constant 0.000000e+00 : f32
    %392 = vector.broadcast %cst_126 : f32 to vector<16x128xf32>
    %393 = arith.cmpf oeq, %363, %392 : vector<16x128xf32>
    %cst_127 = arith.constant 1.000000e+00 : f32
    %394 = vector.broadcast %cst_127 : f32 to vector<16x128xf32>
    %395 = arith.cmpf oeq, %363, %394 : vector<16x128xf32>
    %cst_128 = arith.constant 2.000000e+00 : f32
    %396 = vector.broadcast %cst_128 : f32 to vector<16x128xf32>
    %397 = arith.cmpf oeq, %363, %396 : vector<16x128xf32>
    %cst_129 = arith.constant 3.000000e+00 : f32
    %398 = vector.broadcast %cst_129 : f32 to vector<16x128xf32>
    %399 = arith.cmpf oeq, %363, %398 : vector<16x128xf32>
    %cst_130 = arith.constant 4.000000e+00 : f32
    %400 = vector.broadcast %cst_130 : f32 to vector<16x128xf32>
    %401 = arith.cmpf oeq, %363, %400 : vector<16x128xf32>
    %cst_131 = arith.constant 5.000000e+00 : f32
    %402 = vector.broadcast %cst_131 : f32 to vector<16x128xf32>
    %403 = arith.cmpf oeq, %363, %402 : vector<16x128xf32>
    %cst_132 = arith.constant 6.000000e+00 : f32
    %404 = vector.broadcast %cst_132 : f32 to vector<16x128xf32>
    %405 = arith.cmpf oeq, %363, %404 : vector<16x128xf32>
    %cst_133 = arith.constant 7.000000e+00 : f32
    %406 = vector.broadcast %cst_133 : f32 to vector<16x128xf32>
    %407 = arith.cmpf oeq, %363, %406 : vector<16x128xf32>
    %cst_134 = arith.constant 8.000000e+00 : f32
    %408 = vector.broadcast %cst_134 : f32 to vector<16x128xf32>
    %409 = arith.cmpf oeq, %363, %408 : vector<16x128xf32>
    %cst_135 = arith.constant 9.000000e+00 : f32
    %410 = vector.broadcast %cst_135 : f32 to vector<16x128xf32>
    %411 = arith.cmpf oeq, %363, %410 : vector<16x128xf32>
    %cst_136 = arith.constant 1.000000e+01 : f32
    %412 = vector.broadcast %cst_136 : f32 to vector<16x128xf32>
    %413 = arith.cmpf oeq, %363, %412 : vector<16x128xf32>
    %414 = arith.negf %358 : vector<16x128xf32>
    %415 = math.exp %414 : vector<16x128xf32>
    %cst_137 = arith.constant 1.000000e+00 : f32
    %416 = vector.broadcast %cst_137 : f32 to vector<16x128xf32>
    %417 = arith.addf %416, %415 : vector<16x128xf32>
    %418 = arith.divf %416, %417 : vector<16x128xf32>
    %419 = arith.mulf %358, %418 : vector<16x128xf32>
    %420 = arith.truncf %419 : vector<16x128xf32> to vector<16x128xbf16>
    %cst_138 = arith.constant 0.000000e+00 : f32
    %421 = vector.broadcast %cst_138 : f32 to vector<16x128xf32>
    %422 = arith.select %399, %391, %421 : vector<16x128xi1>, vector<16x128xf32>
    %423 = arith.select %397, %385, %422 : vector<16x128xi1>, vector<16x128xf32>
    %424 = arith.select %395, %378, %423 : vector<16x128xi1>, vector<16x128xf32>
    %425 = arith.select %393, %368, %424 : vector<16x128xi1>, vector<16x128xf32>
    %426 = arith.truncf %425 : vector<16x128xf32> to vector<16x128xbf16>
    %cst_139 = arith.constant 0.000000e+00 : f32
    %427 = vector.broadcast %cst_139 : f32 to vector<16x128xf32>
    %428 = arith.select %401, %391, %427 : vector<16x128xi1>, vector<16x128xf32>
    %429 = arith.select %399, %385, %428 : vector<16x128xi1>, vector<16x128xf32>
    %430 = arith.select %397, %378, %429 : vector<16x128xi1>, vector<16x128xf32>
    %431 = arith.select %395, %368, %430 : vector<16x128xi1>, vector<16x128xf32>
    %432 = arith.truncf %431 : vector<16x128xf32> to vector<16x128xbf16>
    %cst_140 = arith.constant 0.000000e+00 : f32
    %433 = vector.broadcast %cst_140 : f32 to vector<16x128xf32>
    %434 = arith.select %403, %391, %433 : vector<16x128xi1>, vector<16x128xf32>
    %435 = arith.select %401, %385, %434 : vector<16x128xi1>, vector<16x128xf32>
    %436 = arith.select %399, %378, %435 : vector<16x128xi1>, vector<16x128xf32>
    %437 = arith.select %397, %368, %436 : vector<16x128xi1>, vector<16x128xf32>
    %438 = arith.truncf %437 : vector<16x128xf32> to vector<16x128xbf16>
    %cst_141 = arith.constant 0.000000e+00 : f32
    %439 = vector.broadcast %cst_141 : f32 to vector<16x128xf32>
    %440 = arith.select %405, %391, %439 : vector<16x128xi1>, vector<16x128xf32>
    %441 = arith.select %403, %385, %440 : vector<16x128xi1>, vector<16x128xf32>
    %442 = arith.select %401, %378, %441 : vector<16x128xi1>, vector<16x128xf32>
    %443 = arith.select %399, %368, %442 : vector<16x128xi1>, vector<16x128xf32>
    %444 = arith.truncf %443 : vector<16x128xf32> to vector<16x128xbf16>
    %cst_142 = arith.constant 0.000000e+00 : f32
    %445 = vector.broadcast %cst_142 : f32 to vector<16x128xf32>
    %446 = arith.select %407, %391, %445 : vector<16x128xi1>, vector<16x128xf32>
    %447 = arith.select %405, %385, %446 : vector<16x128xi1>, vector<16x128xf32>
    %448 = arith.select %403, %378, %447 : vector<16x128xi1>, vector<16x128xf32>
    %449 = arith.select %401, %368, %448 : vector<16x128xi1>, vector<16x128xf32>
    %450 = arith.truncf %449 : vector<16x128xf32> to vector<16x128xbf16>
    %cst_143 = arith.constant 0.000000e+00 : f32
    %451 = vector.broadcast %cst_143 : f32 to vector<16x128xf32>
    %452 = arith.select %409, %391, %451 : vector<16x128xi1>, vector<16x128xf32>
    %453 = arith.select %407, %385, %452 : vector<16x128xi1>, vector<16x128xf32>
    %454 = arith.select %405, %378, %453 : vector<16x128xi1>, vector<16x128xf32>
    %455 = arith.select %403, %368, %454 : vector<16x128xi1>, vector<16x128xf32>
    %456 = arith.truncf %455 : vector<16x128xf32> to vector<16x128xbf16>
    %cst_144 = arith.constant 0.000000e+00 : f32
    %457 = vector.broadcast %cst_144 : f32 to vector<16x128xf32>
    %458 = arith.select %411, %391, %457 : vector<16x128xi1>, vector<16x128xf32>
    %459 = arith.select %409, %385, %458 : vector<16x128xi1>, vector<16x128xf32>
    %460 = arith.select %407, %378, %459 : vector<16x128xi1>, vector<16x128xf32>
    %461 = arith.select %405, %368, %460 : vector<16x128xi1>, vector<16x128xf32>
    %462 = arith.truncf %461 : vector<16x128xf32> to vector<16x128xbf16>
    %cst_145 = arith.constant 0.000000e+00 : f32
    %463 = vector.broadcast %cst_145 : f32 to vector<16x128xf32>
    %464 = arith.select %413, %391, %463 : vector<16x128xi1>, vector<16x128xf32>
    %465 = arith.select %411, %385, %464 : vector<16x128xi1>, vector<16x128xf32>
    %466 = arith.select %409, %378, %465 : vector<16x128xi1>, vector<16x128xf32>
    %467 = arith.select %407, %368, %466 : vector<16x128xi1>, vector<16x128xf32>
    %468 = arith.truncf %467 : vector<16x128xf32> to vector<16x128xbf16>
    %469 = tpu.concatenate %420, %426, %432, %438, %444, %450, %456, %462, %468 in 1 : vector<16x128xbf16>, vector<16x128xbf16>, vector<16x128xbf16>, vector<16x128xbf16>, vector<16x128xbf16>, vector<16x128xbf16>, vector<16x128xbf16>, vector<16x128xbf16>, vector<16x128xbf16> -> vector<16x1152xbf16>
    %c2304 = arith.constant 2304 : index
    %c0_146 = arith.constant 0 : index
    %470 = vector.load %arg3[%c2304, %c0_146] : memref<4608x128xbf16, #tpu.memory_space<vmem>>, vector<1152x128xbf16>
    %cst_147 = arith.constant dense<0.000000e+00> : vector<16x128xf32>
    %471 = tpu.matmul %469, %470, %cst_147 {dimension_numbers = #tpu.dot_dimension_numbers<[1], [0], [0], [1], [0, 0, 1, 1], [], []>} : vector<16x1152xbf16>, vector<1152x128xbf16>, vector<16x128xf32> -> vector<16x128xf32>
    %472 = arith.addf %357, %471 : vector<16x128xf32>
    %c0_148 = arith.constant 0 : index
    %c384 = arith.constant 384 : index
    %473 = vector.load %arg5[%c0_148, %c384] : memref<16x512xf32, #tpu.memory_space<vmem>>, vector<16x128xf32>
    %cst_149 = arith.constant -2.200000e+00 : f32
    %474 = vector.broadcast %cst_149 : f32 to vector<16x128xf32>
    %475 = arith.subf %473, %474 : vector<16x128xf32>
    %cst_150 = arith.constant 2.500000e+00 : f32
    %476 = vector.broadcast %cst_150 : f32 to vector<16x128xf32>
    %477 = arith.mulf %475, %476 : vector<16x128xf32>
    %478 = math.floor %477 : vector<16x128xf32>
    %479 = arith.subf %477, %478 : vector<16x128xf32>
    %480 = arith.mulf %479, %479 : vector<16x128xf32>
    %cst_151 = arith.constant 0.166666672 : f32
    %481 = vector.broadcast %cst_151 : f32 to vector<16x128xf32>
    %482 = arith.mulf %481, %479 : vector<16x128xf32>
    %483 = arith.mulf %482, %480 : vector<16x128xf32>
    %cst_152 = arith.constant 5.000000e-01 : f32
    %484 = vector.broadcast %cst_152 : f32 to vector<16x128xf32>
    %485 = arith.mulf %484, %479 : vector<16x128xf32>
    %cst_153 = arith.constant 5.000000e-01 : f32
    %486 = vector.broadcast %cst_153 : f32 to vector<16x128xf32>
    %487 = arith.subf %486, %485 : vector<16x128xf32>
    %488 = arith.mulf %479, %487 : vector<16x128xf32>
    %cst_154 = arith.constant 5.000000e-01 : f32
    %489 = vector.broadcast %cst_154 : f32 to vector<16x128xf32>
    %490 = arith.addf %488, %489 : vector<16x128xf32>
    %491 = arith.mulf %479, %490 : vector<16x128xf32>
    %cst_155 = arith.constant 0.166666672 : f32
    %492 = vector.broadcast %cst_155 : f32 to vector<16x128xf32>
    %493 = arith.addf %491, %492 : vector<16x128xf32>
    %cst_156 = arith.constant 5.000000e-01 : f32
    %494 = vector.broadcast %cst_156 : f32 to vector<16x128xf32>
    %495 = arith.mulf %494, %479 : vector<16x128xf32>
    %cst_157 = arith.constant 1.000000e+00 : f32
    %496 = vector.broadcast %cst_157 : f32 to vector<16x128xf32>
    %497 = arith.subf %495, %496 : vector<16x128xf32>
    %498 = arith.mulf %480, %497 : vector<16x128xf32>
    %cst_158 = arith.constant 0.666666686 : f32
    %499 = vector.broadcast %cst_158 : f32 to vector<16x128xf32>
    %500 = arith.addf %498, %499 : vector<16x128xf32>
    %cst_159 = arith.constant 1.000000e+00 : f32
    %501 = vector.broadcast %cst_159 : f32 to vector<16x128xf32>
    %502 = arith.subf %501, %479 : vector<16x128xf32>
    %cst_160 = arith.constant 0.166666672 : f32
    %503 = vector.broadcast %cst_160 : f32 to vector<16x128xf32>
    %504 = arith.mulf %503, %502 : vector<16x128xf32>
    %505 = arith.mulf %504, %502 : vector<16x128xf32>
    %506 = arith.mulf %505, %502 : vector<16x128xf32>
    %cst_161 = arith.constant 0.000000e+00 : f32
    %507 = vector.broadcast %cst_161 : f32 to vector<16x128xf32>
    %508 = arith.cmpf oeq, %478, %507 : vector<16x128xf32>
    %cst_162 = arith.constant 1.000000e+00 : f32
    %509 = vector.broadcast %cst_162 : f32 to vector<16x128xf32>
    %510 = arith.cmpf oeq, %478, %509 : vector<16x128xf32>
    %cst_163 = arith.constant 2.000000e+00 : f32
    %511 = vector.broadcast %cst_163 : f32 to vector<16x128xf32>
    %512 = arith.cmpf oeq, %478, %511 : vector<16x128xf32>
    %cst_164 = arith.constant 3.000000e+00 : f32
    %513 = vector.broadcast %cst_164 : f32 to vector<16x128xf32>
    %514 = arith.cmpf oeq, %478, %513 : vector<16x128xf32>
    %cst_165 = arith.constant 4.000000e+00 : f32
    %515 = vector.broadcast %cst_165 : f32 to vector<16x128xf32>
    %516 = arith.cmpf oeq, %478, %515 : vector<16x128xf32>
    %cst_166 = arith.constant 5.000000e+00 : f32
    %517 = vector.broadcast %cst_166 : f32 to vector<16x128xf32>
    %518 = arith.cmpf oeq, %478, %517 : vector<16x128xf32>
    %cst_167 = arith.constant 6.000000e+00 : f32
    %519 = vector.broadcast %cst_167 : f32 to vector<16x128xf32>
    %520 = arith.cmpf oeq, %478, %519 : vector<16x128xf32>
    %cst_168 = arith.constant 7.000000e+00 : f32
    %521 = vector.broadcast %cst_168 : f32 to vector<16x128xf32>
    %522 = arith.cmpf oeq, %478, %521 : vector<16x128xf32>
    %cst_169 = arith.constant 8.000000e+00 : f32
    %523 = vector.broadcast %cst_169 : f32 to vector<16x128xf32>
    %524 = arith.cmpf oeq, %478, %523 : vector<16x128xf32>
    %cst_170 = arith.constant 9.000000e+00 : f32
    %525 = vector.broadcast %cst_170 : f32 to vector<16x128xf32>
    %526 = arith.cmpf oeq, %478, %525 : vector<16x128xf32>
    %cst_171 = arith.constant 1.000000e+01 : f32
    %527 = vector.broadcast %cst_171 : f32 to vector<16x128xf32>
    %528 = arith.cmpf oeq, %478, %527 : vector<16x128xf32>
    %529 = arith.negf %473 : vector<16x128xf32>
    %530 = math.exp %529 : vector<16x128xf32>
    %cst_172 = arith.constant 1.000000e+00 : f32
    %531 = vector.broadcast %cst_172 : f32 to vector<16x128xf32>
    %532 = arith.addf %531, %530 : vector<16x128xf32>
    %533 = arith.divf %531, %532 : vector<16x128xf32>
    %534 = arith.mulf %473, %533 : vector<16x128xf32>
    %535 = arith.truncf %534 : vector<16x128xf32> to vector<16x128xbf16>
    %cst_173 = arith.constant 0.000000e+00 : f32
    %536 = vector.broadcast %cst_173 : f32 to vector<16x128xf32>
    %537 = arith.select %514, %506, %536 : vector<16x128xi1>, vector<16x128xf32>
    %538 = arith.select %512, %500, %537 : vector<16x128xi1>, vector<16x128xf32>
    %539 = arith.select %510, %493, %538 : vector<16x128xi1>, vector<16x128xf32>
    %540 = arith.select %508, %483, %539 : vector<16x128xi1>, vector<16x128xf32>
    %541 = arith.truncf %540 : vector<16x128xf32> to vector<16x128xbf16>
    %cst_174 = arith.constant 0.000000e+00 : f32
    %542 = vector.broadcast %cst_174 : f32 to vector<16x128xf32>
    %543 = arith.select %516, %506, %542 : vector<16x128xi1>, vector<16x128xf32>
    %544 = arith.select %514, %500, %543 : vector<16x128xi1>, vector<16x128xf32>
    %545 = arith.select %512, %493, %544 : vector<16x128xi1>, vector<16x128xf32>
    %546 = arith.select %510, %483, %545 : vector<16x128xi1>, vector<16x128xf32>
    %547 = arith.truncf %546 : vector<16x128xf32> to vector<16x128xbf16>
    %cst_175 = arith.constant 0.000000e+00 : f32
    %548 = vector.broadcast %cst_175 : f32 to vector<16x128xf32>
    %549 = arith.select %518, %506, %548 : vector<16x128xi1>, vector<16x128xf32>
    %550 = arith.select %516, %500, %549 : vector<16x128xi1>, vector<16x128xf32>
    %551 = arith.select %514, %493, %550 : vector<16x128xi1>, vector<16x128xf32>
    %552 = arith.select %512, %483, %551 : vector<16x128xi1>, vector<16x128xf32>
    %553 = arith.truncf %552 : vector<16x128xf32> to vector<16x128xbf16>
    %cst_176 = arith.constant 0.000000e+00 : f32
    %554 = vector.broadcast %cst_176 : f32 to vector<16x128xf32>
    %555 = arith.select %520, %506, %554 : vector<16x128xi1>, vector<16x128xf32>
    %556 = arith.select %518, %500, %555 : vector<16x128xi1>, vector<16x128xf32>
    %557 = arith.select %516, %493, %556 : vector<16x128xi1>, vector<16x128xf32>
    %558 = arith.select %514, %483, %557 : vector<16x128xi1>, vector<16x128xf32>
    %559 = arith.truncf %558 : vector<16x128xf32> to vector<16x128xbf16>
    %cst_177 = arith.constant 0.000000e+00 : f32
    %560 = vector.broadcast %cst_177 : f32 to vector<16x128xf32>
    %561 = arith.select %522, %506, %560 : vector<16x128xi1>, vector<16x128xf32>
    %562 = arith.select %520, %500, %561 : vector<16x128xi1>, vector<16x128xf32>
    %563 = arith.select %518, %493, %562 : vector<16x128xi1>, vector<16x128xf32>
    %564 = arith.select %516, %483, %563 : vector<16x128xi1>, vector<16x128xf32>
    %565 = arith.truncf %564 : vector<16x128xf32> to vector<16x128xbf16>
    %cst_178 = arith.constant 0.000000e+00 : f32
    %566 = vector.broadcast %cst_178 : f32 to vector<16x128xf32>
    %567 = arith.select %524, %506, %566 : vector<16x128xi1>, vector<16x128xf32>
    %568 = arith.select %522, %500, %567 : vector<16x128xi1>, vector<16x128xf32>
    %569 = arith.select %520, %493, %568 : vector<16x128xi1>, vector<16x128xf32>
    %570 = arith.select %518, %483, %569 : vector<16x128xi1>, vector<16x128xf32>
    %571 = arith.truncf %570 : vector<16x128xf32> to vector<16x128xbf16>
    %cst_179 = arith.constant 0.000000e+00 : f32
    %572 = vector.broadcast %cst_179 : f32 to vector<16x128xf32>
    %573 = arith.select %526, %506, %572 : vector<16x128xi1>, vector<16x128xf32>
    %574 = arith.select %524, %500, %573 : vector<16x128xi1>, vector<16x128xf32>
    %575 = arith.select %522, %493, %574 : vector<16x128xi1>, vector<16x128xf32>
    %576 = arith.select %520, %483, %575 : vector<16x128xi1>, vector<16x128xf32>
    %577 = arith.truncf %576 : vector<16x128xf32> to vector<16x128xbf16>
    %cst_180 = arith.constant 0.000000e+00 : f32
    %578 = vector.broadcast %cst_180 : f32 to vector<16x128xf32>
    %579 = arith.select %528, %506, %578 : vector<16x128xi1>, vector<16x128xf32>
    %580 = arith.select %526, %500, %579 : vector<16x128xi1>, vector<16x128xf32>
    %581 = arith.select %524, %493, %580 : vector<16x128xi1>, vector<16x128xf32>
    %582 = arith.select %522, %483, %581 : vector<16x128xi1>, vector<16x128xf32>
    %583 = arith.truncf %582 : vector<16x128xf32> to vector<16x128xbf16>
    %584 = tpu.concatenate %535, %541, %547, %553, %559, %565, %571, %577, %583 in 1 : vector<16x128xbf16>, vector<16x128xbf16>, vector<16x128xbf16>, vector<16x128xbf16>, vector<16x128xbf16>, vector<16x128xbf16>, vector<16x128xbf16>, vector<16x128xbf16>, vector<16x128xbf16> -> vector<16x1152xbf16>
    %c3456 = arith.constant 3456 : index
    %c0_181 = arith.constant 0 : index
    %585 = vector.load %arg3[%c3456, %c0_181] : memref<4608x128xbf16, #tpu.memory_space<vmem>>, vector<1152x128xbf16>
    %cst_182 = arith.constant dense<0.000000e+00> : vector<16x128xf32>
    %586 = tpu.matmul %584, %585, %cst_182 {dimension_numbers = #tpu.dot_dimension_numbers<[1], [0], [0], [1], [0, 0, 1, 1], [], []>} : vector<16x1152xbf16>, vector<1152x128xbf16>, vector<16x128xf32> -> vector<16x128xf32>
    %587 = arith.addf %472, %586 : vector<16x128xf32>
    %c0_183 = arith.constant 0 : index
    %c0_184 = arith.constant 0 : index
    %588 = vector.load %arg4[%c0_183, %c0_184] : memref<16x128xf32, #tpu.memory_space<vmem>>, vector<16x128xf32>
    tpu.vector_store %arg4[%c0_183, %c0_184], %587 {strides = array<i32>} : memref<16x128xf32, #tpu.memory_space<vmem>>, vector<16x128xf32>,
    return
  }
  func.func @transform_0(%arg0: i32) -> (i32, i32) {
    %c0_i32 = arith.constant 0 : i32
    %c0_i32_0 = arith.constant 0 : i32
    return %arg0, %c0_i32 : i32, i32
  }
  func.func @transform_1(%arg0: i32) -> (i32, i32) {
    %c0_i32 = arith.constant 0 : i32
    %c0_i32_0 = arith.constant 0 : i32
    %c0_i32_1 = arith.constant 0 : i32
    return %c0_i32, %c0_i32_0 : i32, i32
  }
  func.func @transform_2(%arg0: i32) -> (i32, i32) {
    %c0_i32 = arith.constant 0 : i32
    %c0_i32_0 = arith.constant 0 : i32
    %c0_i32_1 = arith.constant 0 : i32
    return %c0_i32, %c0_i32_0 : i32, i32
  }
  func.func @transform_3(%arg0: i32) -> (i32, i32) {
    %c0_i32 = arith.constant 0 : i32
    %c0_i32_0 = arith.constant 0 : i32
    return %arg0, %c0_i32 : i32, i32
  }
}

</mosaic_0001>

<bundles_post_ra>
// kernel: tpu_custom_call.1
= control target key start
LH: loop header
LB: loop body
LE: loop exit
PB: predicated region body
PF: predicated region fallthrough
CT: control target
= control target key end

     0   :  { %8 = vsyncpa [#allocation4], 0  ;;  %s9961_s0 = inlined_call_operand.hbm [shape: bf16[16,128], index: 0, kind: input, shape index: {}]   ;;  %s9962_s1 = inlined_call_operand.hbm [shape: bf16[1152,512], index: 1, kind: input, shape index: {}]   ;;  %s9963_s2 = inlined_call_operand.hbm [shape: bf16[4608,128], index: 2, kind: input, shape index: {}]   ;;  %s9964_s3 = inlined_call_operand.hbm [shape: f32[16,128], index: 3, kind: output, shape index: {}]  }
   0x1   :  { %9 = vsyncpa [#allocation7], 0 }
   0x2   :  { %10 = vsyncpa [#allocation5], 0  ;;  %s8219_s12 = smov [#allocation6]   ;;  %s8125_s16 = scalar_lea.hbm %s9962_s1, 36864 }
   0x3   :  { %s28_s13 = sshll.u32 %s8219_s12, 4  ;;  %p8126_p0 = scmp.ne.s32.totalorder %s9962_s1, %s8125_s16  ;;  %s29_s13 = int_to_ptr.vmem [resolvable:$true] %s28_s13 }
   0x4   :  { %p8129_p1 = scmp.lt.u32.totalorder %s8125_s16, %s9962_s1 }
   0x6   :  { %p8131_p2 = pnand %p8129_p1, %p8126_p0 }
   0x8   :  { %8134 = shalt.err (!%p8131_p2)
}
   0x9   :  { %s8135_s21 = scalar_lea.vmem %s29_s13, 36864  ;;  %p8140_p4 = scmp.lt.s32.totalorder %s29_s13, %s29_s13 }
   0xa   :  { %p8136_p3 = scmp.ne.s32.totalorder %s29_s13, %s8135_s21  ;;  %p8141_p5 = scmp.lt.s32.totalorder %s8135_s21, %s8135_s21 }
   0xc   :  { %p8142_p6 = por %p8141_p5, %p8140_p4 }
   0xe   :  { %p8143_p7 = pnand %p8142_p6, %p8136_p3 }
  0x10   :  { %8146 = shalt.err (!%p8143_p7)
}
  0x11   :  { %s8220_s22 = smov 256   ;;  %s8221_s23 = smov 16  }
  0x12   :  { %34 = dma.hbm_to_vmem [thread:$0]  %s9962_s1, 36864, %s29_s13, [#allocation7], %s8220_s22, %s8220_s22, %s8221_s23  }
  0x13   :  { %s8222_s26 = smov [#allocation3]   ;;  %s8147_s30 = scalar_lea.hbm %s9961_s0, 128 }
  0x14   :  { %s16_s27 = sshll.u32 %s8222_s26, 4  ;;  %p8148_p8 = scmp.ne.s32.totalorder %s9961_s0, %s8147_s30  ;;  %s17_s27 = int_to_ptr.vmem [resolvable:$true] %s16_s27 }
  0x15   :  { %p8151_p9 = scmp.lt.u32.totalorder %s8147_s30, %s9961_s0 }
  0x17   :  { %p8153_p10 = pnand %p8151_p9, %p8148_p8 }
  0x19   :  { %8156 = shalt.err (!%p8153_p10)
}
  0x1a   :  { %s8157_s8 = scalar_lea.vmem %s17_s27, 128  ;;  %p8162_p12 = scmp.lt.s32.totalorder %s17_s27, %s17_s27 }
  0x1b   :  { %p8158_p11 = scmp.ne.s32.totalorder %s17_s27, %s8157_s8  ;;  %p8163_p13 = scmp.lt.s32.totalorder %s8157_s8, %s8157_s8 }
  0x1d   :  { %p8164_p0 = por %p8163_p13, %p8162_p12 }
  0x1f   :  { %p8165_p1 = pnand %p8164_p0, %p8158_p11 }
  0x21   :  { %8168 = shalt.err (!%p8165_p1)
}
  0x22   :  { %s8223_s1 = smov 64   ;;  %s8224_s9 = smov 4  }
  0x23   :  { %22 = dma.hbm_to_vmem [thread:$0]  %s9961_s0, 128, %s17_s27, [#allocation4], %s8223_s1, %s8223_s1, %s8224_s9  }
  0x24   :  { %s8225_s12 = smov [#allocation8]   ;;  %s8169_s16 = scalar_lea.hbm %s9963_s2, 36864 }
  0x25   :  { %s40_s13 = sshll.u32 %s8225_s12, 4  ;;  %p8170_p2 = scmp.ne.s32.totalorder %s9963_s2, %s8169_s16  ;;  %s41_s13 = int_to_ptr.vmem [resolvable:$true] %s40_s13 }
  0x26   :  { %p8173_p3 = scmp.lt.u32.totalorder %s8169_s16, %s9963_s2 }
  0x28   :  { %p8175_p4 = pnand %p8173_p3, %p8170_p2 }
  0x2a   :  { %8178 = shalt.err (!%p8175_p4)
}
  0x2b   :  { %s8179_s21 = scalar_lea.vmem %s41_s13, 36864  ;;  %p8184_p6 = scmp.lt.s32.totalorder %s41_s13, %s41_s13 }
  0x2c   :  { %p8180_p5 = scmp.ne.s32.totalorder %s41_s13, %s8179_s21  ;;  %p8185_p7 = scmp.lt.s32.totalorder %s8179_s21, %s8179_s21 }
  0x2e   :  { %p8186_p8 = por %p8185_p7, %p8184_p6 }
  0x30   :  { %p8187_p9 = pnand %p8186_p8, %p8180_p5 }
  0x32   :  { %8190 = shalt.err (!%p8187_p9)
}
  0x33   :  { %46 = dma.hbm_to_vmem [thread:$0]  %s9963_s2, 36864, %s41_s13, [#allocation7], %s8223_s1, %s8223_s1, %s8224_s9  }
  0x34   :  { %8213 = dma.done.wait [#allocation4], 128  }
  0x35   :  { %8214 = vsyncadd [#allocation4], 4294967168 }
  0x36   :  { %8215 = dma.done.wait [#allocation7], 73728  }
  0x37   :  { %8216 = vsyncadd [#allocation7], 4294893568  ;;  %v8226_v0 = vmov 0   ;;  %v7349_v1 = vld [vmem:[#allocation6 + $0x4] ss:$16 sps:$4 sm:$0xff]   ;;  %v6807_v30 = vld [vmem:[#allocation3] sm:$0xff]  }
  0x38   :  { %2142 = vmatprep.mubr.bf16.mxu1 %v8226_v0  ;;  %v7351_v2 = vld [vmem:[#allocation6 + $0x804] ss:$16 sps:$4 sm:$0xff]   ;;  %1938 = vmatprep.subr.bf16.mxu0 %v7349_v1  ;;  %v7353_v3 = vld [vmem:[#allocation6] ss:$16 sps:$4 sm:$0xff]   ;;  %v8289_v32 = vunpack.c.l.bf16 %v6807_v30  ;;  %v8291_v33 = vunpack.c.h.bf16 %v6807_v30  ;;  %v7401_v39 = vld [vmem:[#allocation6 + $0xc] ss:$16 sps:$4 sm:$0xff]  }
  0x39   :  { %v7354_v4 = vld [vmem:[#allocation6 + $0x800] ss:$16 sps:$4 sm:$0xff]   ;;  %2110 = vmatprep.subr.bf16.mxu1 %v7351_v2  ;;  %v7355_v5 = vld [vmem:[#allocation6 + $0x24] ss:$16 sps:$4 sm:$0xff]   ;;  %1939 = vmatpush1.bf16.msra.mxu0 %v7353_v3  ;;  %s8229_s2 = smov [#allocation9]  }
  0x3a   :  { %2111 = vmatpush1.bf16.msra.mxu1 %v7354_v4  ;;  %v7357_v6 = vld [vmem:[#allocation6 + $0x824] ss:$16 sps:$4 sm:$0xff]   ;;  %v7359_v7 = vld [vmem:[#allocation6 + $0x20] ss:$16 sps:$4 sm:$0xff]   ;;  %1940 = vmatprep.subr.bf16.mxu0 %v7355_v5  ;;  %v6200_v35 = vadd.f32 2.2, %v8289_v32 }
  0x3b   :  { %v7360_v8 = vld [vmem:[#allocation6 + $0x820] ss:$16 sps:$4 sm:$0xff]   ;;  %2112 = vmatprep.subr.bf16.mxu1 %v7357_v6  ;;  %v7361_v9 = vld [vmem:[#allocation6 + $0x44] ss:$16 sps:$4 sm:$0xff]   ;;  %v6201_v36 = vadd.f32 2.2, %v8291_v33 }
  0x3c   :  { %v7363_v10 = vld [vmem:[#allocation6 + $0x844] ss:$16 sps:$4 sm:$0xff]   ;;  %v7365_v11 = vld [vmem:[#allocation6 + $0x40] ss:$16 sps:$4 sm:$0xff]   ;;  %v63_v40 = vmul.f32 2.5, %v6200_v35  ;;  %s6187_s23 = sshll.u32 %s8229_s2, 4  ;;  %s6188_s23 = int_to_ptr.vmem [resolvable:$true] %s6187_s23 }
  0x3d   :  { %v7366_v12 = vld [vmem:[#allocation6 + $0x840] ss:$16 sps:$4 sm:$0xff]   ;;  %1941 = vmatpush1.bf16.msra.mxu0 %v7359_v7  ;;  %v7367_v13 = vld [vmem:[#allocation6 + $0x64] ss:$16 sps:$4 sm:$0xff]   ;;  %v64_v41 = vmul.f32 2.5, %v6201_v36  ;;  %s8191_s24 = scalar_lea.vmem %s6188_s23, 256  ;;  %p8196_p11 = scmp.lt.s32.totalorder %s6188_s23, %s6188_s23 }
  0x3e   :  { %2113 = vmatpush1.bf16.msra.mxu1 %v7360_v8  ;;  %1942 = vmatprep.subr.bf16.mxu0 %v7361_v9  ;;  %v7369_v14 = vld [vmem:[#allocation6 + $0x864] ss:$16 sps:$4 sm:$0xff]   ;;  %v7371_v15 = vld [vmem:[#allocation6 + $0x60] ss:$16 sps:$4 sm:$0xff]   ;;  %v8295_v42 = vfloor.f32 %v63_v40  ;;  %v6204_v44 = vmul.f32 -1.442695, %v8289_v32  ;;  %p8192_p10 = scmp.ne.s32.totalorder %s6188_s23, %s8191_s24  ;;  %p8197_p12 = scmp.lt.s32.totalorder %s8191_s24, %s8191_s24 }
  0x3f   :  { %2114 = vmatprep.subr.bf16.mxu1 %v7363_v10  ;;  %v7372_v16 = vld [vmem:[#allocation6 + $0x860] ss:$16 sps:$4 sm:$0xff]   ;;  %v7373_v17 = vld [vmem:[#allocation6 + $0x84] ss:$16 sps:$4 sm:$0xff]   ;;  %v8297_v43 = vfloor.f32 %v64_v41  ;;  %v6205_v49 = vmul.f32 -1.442695, %v8291_v33 }
  0x40   :  { %v7375_v18 = vld [vmem:[#allocation6 + $0x884] ss:$16 sps:$4 sm:$0xff]   ;;  %v7377_v19 = vld [vmem:[#allocation6 + $0x80] ss:$16 sps:$4 sm:$0xff]   ;;  %v67_v46 = vsub.f32 %v63_v40, %v8295_v42  ;;  %8069 = vpow2.f32 %v6204_v44  ;;  %vm117_vm0 = vcmp.eq.f32.partialorder %v8295_v42, 8.0  ;;  %vm115_vm2 = vcmp.eq.f32.partialorder %v8295_v42, 7.0  ;;  %p8198_p13 = por %p8197_p12, %p8196_p11 }
  0x41   :  { %1943 = vmatpush1.bf16.msra.mxu0 %v7365_v11  ;;  %v7378_v20 = vld [vmem:[#allocation6 + $0x880] ss:$16 sps:$4 sm:$0xff]   ;;  %v7379_v21 = vld [vmem:[#allocation6 + $0xa4] ss:$16 sps:$4 sm:$0xff]   ;;  %v68_v47 = vsub.f32 %v64_v41, %v8297_v43  ;;  %vm9965_vm1 = vcmp.eq.f32.partialorder %v8297_v43, 8.0  ;;  %8071 = vpow2.f32 %v6205_v49  ;;  %vm116_vm3 = vcmp.eq.f32.partialorder %v8297_v43, 7.0 }
  0x42   :  { %2115 = vmatpush1.bf16.msra.mxu1 %v7366_v12  ;;  %1944 = vmatprep.subr.bf16.mxu0 %v7367_v13  ;;  %v7381_v22 = vld [vmem:[#allocation6 + $0x8a4] ss:$16 sps:$4 sm:$0xff]   ;;  %v7383_v23 = vld [vmem:[#allocation6 + $0xa0] ss:$16 sps:$4 sm:$0xff]   ;;  %v69_v50 = vmul.f32 %v67_v46, %v67_v46  ;;  %v75_v53 = vmul.f32 0.5, %v67_v46  ;;  %v93_v55 = vsub.f32 1.0, %v67_v46  ;;  %p8199_p0 = pnand %p8198_p13, %p8192_p10 }
  0x43   :  { %2116 = vmatprep.subr.bf16.mxu1 %v7369_v14  ;;  %v7384_v24 = vld [vmem:[#allocation6 + $0x8a0] ss:$16 sps:$4 sm:$0xff]   ;;  %v7385_v25 = vld [vmem:[#allocation6 + $0xc4] ss:$16 sps:$4 sm:$0xff]   ;;  %v70_v51 = vmul.f32 %v68_v47, %v68_v47  ;;  %v76_v54 = vmul.f32 0.5, %v68_v47  ;;  %v94_v56 = vsub.f32 1.0, %v68_v47 }
  0x44   :  { %v7387_v26 = vld [vmem:[#allocation6 + $0x8c4] ss:$16 sps:$4 sm:$0xff]   ;;  %v7389_v27 = vld [vmem:[#allocation6 + $0xc0] ss:$16 sps:$4 sm:$0xff]   ;;  %v71_v58 = vmul.f32 0.16666667, %v67_v46 }
  0x45   :  { %1945 = vmatpush1.bf16.msra.mxu0 %v7371_v15  ;;  %v7390_v28 = vld [vmem:[#allocation6 + $0x8c0] ss:$16 sps:$4 sm:$0xff]   ;;  %v7391_v29 = vld [vmem:[#allocation6 + $0xe4] ss:$16 sps:$4 sm:$0xff]   ;;  %v72_v59 = vmul.f32 0.16666667, %v68_v47 }
  0x46   :  { %2117 = vmatpush1.bf16.msra.mxu1 %v7372_v16  ;;  %1946 = vmatprep.subr.bf16.mxu0 %v7373_v17  ;;  %v7393_v31 = vld [vmem:[#allocation6 + $0x8e4] ss:$16 sps:$4 sm:$0xff]   ;;  %v7395_v34 = vld [vmem:[#allocation6 + $0xe0] ss:$16 sps:$4 sm:$0xff]   ;;  %v77_v60 = vsub.f32 0.5, %v75_v53  ;;  %v78_v61 = vsub.f32 0.5, %v76_v54  ;;  %v8319_v17 = vmul.f32 %v71_v58, %v69_v50 }
  0x47   :  { %2118 = vmatprep.subr.bf16.mxu1 %v7375_v18  ;;  %v7396_v37 = vld [vmem:[#allocation6 + $0x8e0] ss:$16 sps:$4 sm:$0xff]   ;;  %v7397_v38 = vld [vmem:[#allocation6 + $0x104] ss:$16 sps:$4 sm:$0xff]   ;;  %v6202_v62 = vadd.f32 -1.0, %v75_v53  ;;  %v6203_v63 = vadd.f32 -1.0, %v76_v54  ;;  %v8321_v18 = vmul.f32 %v72_v59, %v70_v51 }
  0x48   :  { %v7402_v45 = vld [vmem:[#allocation6 + $0x100] ss:$16 sps:$4 sm:$0xff]   ;;  %v7403_v48 = vld [vmem:[#allocation6 + $0x124] ss:$16 sps:$4 sm:$0xff]   ;;  %v95_v1 = vmul.f32 0.16666667, %v93_v55  ;;  %v79_v3 = vmul.f32 %v77_v60, %v67_v46  ;;  %v80_v4 = vmul.f32 %v78_v61, %v68_v47 }
  0x49   :  { %1947 = vmatpush1.bf16.msra.mxu0 %v7377_v19  ;;  %v7408_v52 = vld [vmem:[#allocation6 + $0x120] ss:$16 sps:$4 sm:$0xff]   ;;  %v7409_v57 = vld [vmem:[#allocation6 + $0x144] ss:$16 sps:$4 sm:$0xff]   ;;  %v96_v2 = vmul.f32 0.16666667, %v94_v56  ;;  %v89_v5 = vmul.f32 %v6202_v62, %v69_v50  ;;  %v90_v6 = vmul.f32 %v6203_v63, %v70_v51 }
  0x4a   :  { %2119 = vmatpush1.bf16.msra.mxu1 %v7378_v20  ;;  %1948 = vmatprep.subr.bf16.mxu0 %v7379_v21  ;;  %v7414_v7 = vld [vmem:[#allocation6 + $0x140] ss:$16 sps:$4 sm:$0xff]   ;;  %v97_v8 = vmul.f32 %v95_v1, %v93_v55  ;;  %vm121_vm4 = vcmp.eq.f32.partialorder %v8295_v42, 10.0  ;;  %vm122_vm5 = vcmp.eq.f32.partialorder %v8297_v43, 10.0  ;;  %v7415_v10 = vld [vmem:[#allocation6 + $0x164] ss:$16 sps:$4 sm:$0xff]  }
  0x4b   :  { %2120 = vmatprep.subr.bf16.mxu1 %v7381_v22  ;;  %v98_v9 = vmul.f32 %v96_v2, %v94_v56  ;;  %v81_v11 = vadd.f32 0.5, %v79_v3  ;;  %v82_v12 = vadd.f32 0.5, %v80_v4  ;;  %v8309_v13 = vadd.f32 0.6666667, %v89_v5  ;;  %v7420_v21 = vld [vmem:[#allocation6 + $0x160] ss:$16 sps:$4 sm:$0xff]  }
  0x4c   :  { %v8311_v14 = vadd.f32 0.6666667, %v90_v6  ;;  %v8313_v15 = vmul.f32 %v97_v8, %v93_v55  ;;  %vm119_vm6 = vcmp.eq.f32.partialorder %v8295_v42, 9.0  ;;  %vm120_vm7 = vcmp.eq.f32.partialorder %v8297_v43, 9.0  ;;  %v7421_v22 = vld [vmem:[#allocation6 + $0x184] ss:$16 sps:$4 sm:$0xff]  }
  0x4d   :  { %1949 = vmatpush1.bf16.msra.mxu0 %v7383_v23  ;;  %v8315_v16 = vmul.f32 %v98_v9, %v94_v56  ;;  %v83_v19 = vmul.f32 %v81_v11, %v67_v46  ;;  %v84_v20 = vmul.f32 %v82_v12, %v68_v47  ;;  %v8070_v23 = vpop.eup %8069  ;;  %vm101_vm8 = vcmp.eq.f32.partialorder %v8295_v42, 0.0  ;;  %v7426_v35 = vld [vmem:[#allocation6 + $0x180] ss:$16 sps:$4 sm:$0xff]   ;;  %v7399_v36 = vld [vmem:[#allocation6 + $0x8] ss:$16 sps:$4 sm:$0xff]  }
  0x4e   :  { %2121 = vmatpush1.bf16.msra.mxu1 %v7384_v24  ;;  %1950 = vmatprep.subr.bf16.mxu0 %v7385_v25  ;;  %v201_v24 = vsel %vm121_vm4, %v8313_v15, 0.0  ;;  %vm102_vm9 = vcmp.eq.f32.partialorder %v8297_v43, 0.0  ;;  %v8072_v30 = vpop.eup %8071  ;;  %vm103_vm10 = vcmp.eq.f32.partialorder %v8295_v42, 1.0  ;;  %vm104_vm11 = vcmp.eq.f32.partialorder %v8297_v43, 1.0  ;;  %v7432_v53 = vld [vmem:[#allocation6 + $0x1a0] ss:$16 sps:$4 sm:$0xff]  }
  0x4f   :  { %2122 = vmatprep.subr.bf16.mxu1 %v7387_v26  ;;  %v202_v25 = vsel %vm122_vm5, %v8315_v16, 0.0  ;;  %v8331_v26 = vadd.f32 0.16666667, %v83_v19  ;;  %vm105_vm12 = vcmp.eq.f32.partialorder %v8295_v42, 2.0  ;;  %vm106_vm13 = vcmp.eq.f32.partialorder %v8297_v43, 2.0 }
  0x50   :  { %vm107_vm14 = vcmp.eq.f32.partialorder %v8295_v42, 3.0  ;;  %vm108_vm15 = vcmp.eq.f32.partialorder %v8297_v43, 3.0  ;;  %v130_v51 = vadd.f32 1.0, %v8072_v30  ;;  %vm109_vm4 = vcmp.eq.f32.partialorder %v8295_v42, 4.0  ;;  %v7433_v56 = vld [vmem:[#allocation6 + $0x1c4] ss:$16 sps:$4 sm:$0xff]  }
  0x51   :  { %1951 = vmatpush1.bf16.msra.mxu0 %v7389_v27  ;;  %v8333_v27 = vadd.f32 0.16666667, %v84_v20  ;;  %v138_v40 = vsel %vm107_vm14, %v8313_v15, 0.0  ;;  %v139_v41 = vsel %vm108_vm15, %v8315_v16, 0.0  ;;  %vm110_vm5 = vcmp.eq.f32.partialorder %v8297_v43, 4.0 }
  0x52   :  { %2123 = vmatpush1.bf16.msra.mxu1 %v7390_v28  ;;  %1952 = vmatprep.subr.bf16.mxu0 %v7391_v29  ;;  %v203_v28 = vsel %vm119_vm6, %v8309_v13, %v201_v24  ;;  %v204_v29 = vsel %vm120_vm7, %v8311_v14, %v202_v25  ;;  %v140_v46 = vsel %vm105_vm12, %v8309_v13, %v138_v40  ;;  %v7413_v58 = vld [vmem:[#allocation6 + $0x4c] ss:$16 sps:$4 sm:$0xff]   ;;  %v147_v61 = vsel %vm109_vm4, %v8313_v15, 0.0  ;;  %v7438_v62 = vld [vmem:[#allocation6 + $0x1c0] ss:$16 sps:$4 sm:$0xff]  }
  0x53   :  { %2124 = vmatprep.subr.bf16.mxu1 %v7393_v31  ;;  %v205_v31 = vsel %vm117_vm0, %v8331_v26, %v203_v28  ;;  %v141_v47 = vsel %vm106_vm13, %v8311_v14, %v139_v41  ;;  %v142_v49 = vsel %vm103_vm10, %v8331_v26, %v140_v46  ;;  %v148_v63 = vsel %vm110_vm5, %v8315_v16, 0.0  ;;  %v7411_v2 = vld [vmem:[#allocation6 + $0x48] ss:$16 sps:$4 sm:$0xff]   ;;  %v7439_v3 = vld [vmem:[#allocation6 + $0x1e4] ss:$16 sps:$4 sm:$0xff]  }
  0x54   :  { %v143_v50 = vsel %vm104_vm11, %v8333_v27, %v141_v47  ;;  %v144_v54 = vsel %vm101_vm8, %v8319_v17, %v142_v49  ;;  %vm112_vm8 = vcmp.eq.f32.partialorder %v8297_v43, 5.0  ;;  %v149_v1 = vsel %vm107_vm14, %v8309_v13, %v147_v61  ;;  %v7419_v5 = vld [vmem:[#allocation6 + $0x6c] ss:$16 sps:$4 sm:$0xff]   ;;  %v7444_v12 = vld [vmem:[#allocation6 + $0x1e0] ss:$16 sps:$4 sm:$0xff]  }
  0x55   :  { %1953 = vmatpush1.bf16.msra.mxu0 %v7395_v34  ;;  %v206_v34 = vsel %vm9965_vm1, %v8333_v27, %v204_v29  ;;  %v145_v55 = vsel %vm102_vm9, %v8321_v18, %v143_v50  ;;  %vm111_vm1 = vcmp.eq.f32.partialorder %v8295_v42, 5.0  ;;  %v157_v60 = vsel %vm112_vm8, %v8315_v16, 0.0  ;;  %v7417_v20 = vld [vmem:[#allocation6 + $0x68] ss:$16 sps:$4 sm:$0xff]   ;;  %v7425_v25 = vld [vmem:[#allocation6 + $0x8c] ss:$16 sps:$4 sm:$0xff]  }
  0x56   :  { %2125 = vmatpush1.bf16.msra.mxu1 %v7396_v37  ;;  %1954 = vmatprep.subr.bf16.mxu0 %v7397_v38  ;;  %v207_v37 = vsel %vm115_vm2, %v8319_v17, %v205_v31  ;;  %v208_v38 = vsel %vm116_vm3, %v8321_v18, %v206_v34  ;;  %v156_v59 = vsel %vm111_vm1, %v8313_v15, 0.0  ;;  %v150_v4 = vsel %vm108_vm15, %v8311_v14, %v148_v63  ;;  %v7423_v30 = vld [vmem:[#allocation6 + $0x88] ss:$16 sps:$4 sm:$0xff]   ;;  %v7451_v41 = vld [vmem:[#allocation6 + $0x220] ss:$16 sps:$4 sm:$0xff]  }
  0x57   :  { %2153 = vmatprep.subr.bf16.mxu1 %v7401_v39  ;;  %v7427_v39 = vld [vmem:[#allocation6 + $0x1a4] ss:$16 sps:$4 sm:$0xff]   ;;  %v8365_v44 = vpack.c.bf16 %v208_v38, %v207_v37  ;;  %v158_v6 = vsel %vm109_vm4, %v8309_v13, %v156_v59  ;;  %v151_v8 = vsel %vm105_vm12, %v8331_v26, %v149_v1  ;;  %v152_v9 = vsel %vm106_vm13, %v8333_v27, %v150_v4  ;;  %v7445_v37 = vld [vmem:[#allocation6 + $0x200] ss:$16 sps:$4 sm:$0xff]   ;;  %v7429_v40 = vld [vmem:[#allocation6 + $0xa8] ss:$16 sps:$4 sm:$0xff]  }
  0x58   :  { %v154_v11 = vsel %vm104_vm11, %v8321_v18, %v152_v9  ;;  %v7435_v46 = vld [vmem:[#allocation6 + $0xc8] ss:$16 sps:$4 sm:$0xff]   ;;  %v7443_v47 = vld [vmem:[#allocation6 + $0xec] ss:$16 sps:$4 sm:$0xff]   ;;  %v7465_v49 = vld [vmem:[#allocation6 + $0x264] ss:$16 sps:$4 sm:$0xff]  }
  0x59   :  { %1955 = vmatpush1.bf16.msra.mxu0 %v7402_v45  ;;  %v7407_v45 = vld [vmem:[#allocation6 + $0x2c] ss:$16 sps:$4 sm:$0xff]   ;;  %2143 = vmatmul.mubr.bf16.vlgmr.msra.gmra.mrb[0].mxu1 %v8365_v44  ;;  %v7441_v50 = vld [vmem:[#allocation6 + $0xe8] ss:$16 sps:$4 sm:$0xff]   ;;  %vm113_vm9 = vcmp.eq.f32.partialorder %v8295_v42, 6.0  ;;  %vm9993_vm11 = vcmp.eq.f32.partialorder %v8297_v43, 8.0 }
  0x5a   :  { %1956 = vmatprep.subr.bf16.mxu0 %v7403_v48  ;;  %v129_v48 = vadd.f32 1.0, %v8070_v23  ;;  %2154 = vmatpush1.bf16.msra.mxu1 %v7399_v36  ;;  %v7431_v36 = vld [vmem:[#allocation6 + $0xac] ss:$16 sps:$4 sm:$0xff]   ;;  %v165_v59 = vsel %vm113_vm9, %v8313_v15, 0.0  ;;  %v7469_v61 = vld [vmem:[#allocation6 + $0x280] ss:$16 sps:$4 sm:$0xff]  }
  0x5b   :  { %2155 = vmatprep.subr.bf16.mxu1 %v7407_v45  ;;  %v7459_v45 = vld [vmem:[#allocation6 + $0x244] ss:$16 sps:$4 sm:$0xff]  }
  0x5c   :  { %8073 = vrcp.f32 %v129_v48  ;;  %v7457_v48 = vld [vmem:[#allocation6 + $0x240] ss:$16 sps:$4 sm:$0xff]  }
  0x5d   :  { %1957 = vmatpush1.bf16.msra.mxu0 %v7408_v52  ;;  %v7405_v52 = vld [vmem:[#allocation6 + $0x28] ss:$16 sps:$4 sm:$0xff]   ;;  %8075 = vrcp.f32 %v130_v51  ;;  %v7450_v51 = vld [vmem:[#allocation6 + $0x10c] ss:$16 sps:$4 sm:$0xff]  }
  0x5e   :  { %1958 = vmatprep.subr.bf16.mxu0 %v7409_v57  ;;  %v146_v57 = vpack.c.bf16 %v145_v55, %v144_v54  ;;  %2156 = vmatpush1.bf16.msra.mxu1 %v7405_v52  ;;  %v7463_v52 = vld [vmem:[#allocation6 + $0x260] ss:$16 sps:$4 sm:$0xff]   ;;  %v174_v54 = vsel %vm115_vm2, %v8313_v15, 0.0  ;;  %v175_v55 = vsel %vm116_vm3, %v8315_v16, 0.0 }
  0x5f   :  { %2157 = vmatprep.subr.bf16.mxu1 %v7413_v58 }
  0x60   :  { %1970 = vmatprep.mubr.bf16.mxu0 %v146_v57  ;;  %2185 = vmatprep.mubr.bf16.mxu1 %v146_v57  ;;  %v176_v57 = vsel %vm113_vm9, %v8309_v13, %v174_v54  ;;  %v7519_v54 = vld [vmem:[#allocation6 + $0x384] ss:$16 sps:$4 sm:$0xff]  }
  0x61   :  { %1959 = vmatpush1.bf16.msra.mxu0 %v7414_v7  ;;  %v159_v7 = vsel %vm110_vm5, %v8311_v14, %v157_v60  ;;  %v7456_v60 = vld [vmem:[#allocation6 + $0x12c] ss:$16 sps:$4 sm:$0xff]  }
  0x62   :  { %1960 = vmatprep.subr.bf16.mxu0 %v7415_v10  ;;  %v153_v10 = vsel %vm103_vm10, %v8319_v17, %v151_v8  ;;  %2158 = vmatpush1.bf16.msra.mxu1 %v7411_v2  ;;  %v161_v23 = vsel %vm108_vm15, %v8333_v27, %v159_v7  ;;  %vm114_vm10 = vcmp.eq.f32.partialorder %v8297_v43, 6.0  ;;  %v167_v2 = vsel %vm111_vm1, %v8309_v13, %v165_v59  ;;  %v7502_v59 = vld [vmem:[#allocation6 + $0x228] ss:$16 sps:$4 sm:$0xff]  }
  0x63   :  { %v8426_v19 = vpack.c.bf16 %v154_v11, %v153_v10  ;;  %2159 = vmatprep.subr.bf16.mxu1 %v7419_v5  ;;  %v177_v58 = vsel %vm114_vm10, %v8311_v14, %v175_v55  ;;  %v166_v1 = vsel %vm114_vm10, %v8315_v16, 0.0  ;;  %v169_v8 = vsel %vm109_vm4, %v8331_v26, %v167_v2  ;;  %v7454_v10 = vld [vmem:[#allocation6 + $0x128] ss:$16 sps:$4 sm:$0xff]   ;;  %v7529_v2 = vld [vmem:[#allocation6 + $0x3c0] ss:$16 sps:$4 sm:$0xff]  }
  0x64   :  { %v179_v63 = vsel %vm112_vm8, %v8333_v27, %v177_v58  ;;  %v171_v11 = vsel %vm107_vm14, %v8319_v17, %v169_v8  ;;  %v7496_v55 = vld [vmem:[#allocation6 + $0x208] ss:$16 sps:$4 sm:$0xff]   ;;  %v7525_v58 = vld [vmem:[#allocation6 + $0x3a4] ss:$16 sps:$4 sm:$0xff]  }
  0x65   :  { %1961 = vmatpush1.bf16.msra.mxu0 %v7420_v21  ;;  %v7447_v21 = vld [vmem:[#allocation6 + $0x204] ss:$16 sps:$4 sm:$0xff]   ;;  %v181_v5 = vsel %vm110_vm5, %v8321_v18, %v179_v63  ;;  %v7508_v63 = vld [vmem:[#allocation6 + $0x248] ss:$16 sps:$4 sm:$0xff]  }
  0x66   :  { %1962 = vmatprep.subr.bf16.mxu0 %v7421_v22  ;;  %v160_v22 = vsel %vm107_vm14, %v8331_v26, %v158_v6  ;;  %v8074_v24 = vpop.eup %8073  ;;  %2160 = vmatpush1.bf16.msra.mxu1 %v7417_v20  ;;  %v168_v6 = vsel %vm112_vm8, %v8311_v14, %v166_v1  ;;  %v7462_v20 = vld [vmem:[#allocation6 + $0x14c] ss:$16 sps:$4 sm:$0xff]   ;;  %v7520_v8 = vld [vmem:[#allocation6 + $0x288] ss:$16 sps:$4 sm:$0xff]  }
  0x67   :  { %v8076_v28 = vpop.eup %8075  ;;  %v135_v29 = vmul.f32 %v8074_v24, %v8289_v32  ;;  %v162_v34 = vsel %vm105_vm12, %v8319_v17, %v160_v22  ;;  %2161 = vmatprep.subr.bf16.mxu1 %v7425_v25  ;;  %v7453_v32 = vld [vmem:[#allocation6 + $0x224] ss:$16 sps:$4 sm:$0xff]   ;;  %v170_v9 = vsel %vm110_vm5, %v8333_v27, %v168_v6  ;;  %v7460_v24 = vld [vmem:[#allocation6 + $0x148] ss:$16 sps:$4 sm:$0xff]   ;;  %v7468_v25 = vld [vmem:[#allocation6 + $0x16c] ss:$16 sps:$4 sm:$0xff]  }
  0x68   :  { %v136_v31 = vmul.f32 %v8076_v28, %v8291_v33  ;;  %v7437_v33 = vld [vmem:[#allocation6 + $0xcc] ss:$16 sps:$4 sm:$0xff]   ;;  %v7481_v28 = vld [vmem:[#allocation6 + $0x2c0] ss:$16 sps:$4 sm:$0xff]   ;;  %v7543_v6 = vld [vmem:[#allocation6 + $0x404] ss:$16 sps:$4 sm:$0xff]  }
  0x69   :  { %1963 = vmatpush1.bf16.msra.mxu0 %v7426_v35  ;;  %v163_v35 = vsel %vm106_vm13, %v8321_v18, %v161_v23  ;;  %v7483_v23 = vld [vmem:[#allocation6 + $0x2c4] ss:$16 sps:$4 sm:$0xff]   ;;  %v7516_v1 = vld [vmem:[#allocation6 + $0x26c] ss:$16 sps:$4 sm:$0xff]  }
  0x6a   :  { %1964 = vmatprep.subr.bf16.mxu0 %v7427_v39  ;;  %v8442_v38 = vpack.c.bf16 %v136_v31, %v135_v29  ;;  %v8444_v39 = vpack.c.bf16 %v163_v35, %v162_v34  ;;  %2162 = vmatpush1.bf16.msra.mxu1 %v7423_v30  ;;  %v7489_v29 = vld [vmem:[#allocation6 + $0x2e4] ss:$16 sps:$4 sm:$0xff]   ;;  %v7466_v30 = vld [vmem:[#allocation6 + $0x168] ss:$16 sps:$4 sm:$0xff]   ;;  %v7474_v31 = vld [vmem:[#allocation6 + $0x18c] ss:$16 sps:$4 sm:$0xff]  }
  0x6b   :  { %2163 = vmatprep.subr.bf16.mxu1 %v7431_v36  ;;  %v7487_v34 = vld [vmem:[#allocation6 + $0x2e0] ss:$16 sps:$4 sm:$0xff]   ;;  %v7495_v35 = vld [vmem:[#allocation6 + $0x304] ss:$16 sps:$4 sm:$0xff]   ;;  %v7472_v36 = vld [vmem:[#allocation6 + $0x188] ss:$16 sps:$4 sm:$0xff]  }
  0x6d   :  { %1965 = vmatpush1.bf16.msra.mxu0 %v7432_v53  ;;  %v7471_v53 = vld [vmem:[#allocation6 + $0x284] ss:$16 sps:$4 sm:$0xff]  }
  0x6e   :  { %1966 = vmatprep.subr.bf16.mxu0 %v7433_v56  ;;  %2164 = vmatpush1.bf16.msra.mxu1 %v7429_v40  ;;  %v7448_v56 = vld [vmem:[#allocation6 + $0x108] ss:$16 sps:$4 sm:$0xff]   ;;  %v7501_v40 = vld [vmem:[#allocation6 + $0x324] ss:$16 sps:$4 sm:$0xff]  }
  0x6f   :  { %2165 = vmatprep.subr.bf16.mxu1 %v7437_v33  ;;  %v7478_v33 = vld [vmem:[#allocation6 + $0x1a8] ss:$16 sps:$4 sm:$0xff]  }
  0x71   :  { %1967 = vmatpush1.bf16.msra.mxu0 %v7438_v62  ;;  %v178_v62 = vsel %vm111_vm1, %v8331_v26, %v176_v57  ;;  %v7517_v57 = vld [vmem:[#allocation6 + $0x380] ss:$16 sps:$4 sm:$0xff]  }
  0x72   :  { %1968 = vmatprep.subr.bf16.mxu0 %v7439_v3  ;;  %2166 = vmatpush1.bf16.msra.mxu1 %v7435_v46  ;;  %v7477_v3 = vld [vmem:[#allocation6 + $0x2a4] ss:$16 sps:$4 sm:$0xff]   ;;  %v180_v4 = vsel %vm109_vm4, %v8319_v17, %v178_v62 }
  0x73   :  { %2167 = vmatprep.subr.bf16.mxu1 %v7443_v47  ;;  %v8486_v7 = vpack.c.bf16 %v181_v5, %v180_v4  ;;  %v7507_v46 = vld [vmem:[#allocation6 + $0x344] ss:$16 sps:$4 sm:$0xff]   ;;  %v7484_v47 = vld [vmem:[#allocation6 + $0x1c8] ss:$16 sps:$4 sm:$0xff]   ;;  %v7535_v5 = vld [vmem:[#allocation6 + $0x3e0] ss:$16 sps:$4 sm:$0xff]  }
  0x74   :  { %v7531_v62 = vld [vmem:[#allocation6 + $0x3c4] ss:$16 sps:$4 sm:$0xff]   ;;  %v7514_v4 = vld [vmem:[#allocation6 + $0x268] ss:$16 sps:$4 sm:$0xff]  }
  0x75   :  { %1969 = vmatpush1.bf16.msra.mxu0 %v7444_v12  ;;  %v172_v12 = vsel %vm108_vm15, %v8321_v18, %v170_v9  ;;  %v7528_v9 = vld [vmem:[#allocation6 + $0x2ac] ss:$16 sps:$4 sm:$0xff]  }
  0x76   :  { %1981 = vmatprep.subr.bf16.mxu0 %v7447_v21  ;;  %2168 = vmatpush1.bf16.msra.mxu1 %v7441_v50  ;;  %v7475_v21 = vld [vmem:[#allocation6 + $0x2a0] ss:$16 sps:$4 sm:$0xff]   ;;  %v8500_v22 = vpack.c.bf16 %v172_v12, %v171_v11  ;;  %v7513_v50 = vld [vmem:[#allocation6 + $0x364] ss:$16 sps:$4 sm:$0xff]   ;;  %v7526_v11 = vld [vmem:[#allocation6 + $0x2a8] ss:$16 sps:$4 sm:$0xff]  }
  0x77   :  { %2169 = vmatprep.subr.bf16.mxu1 %v7450_v51  ;;  %v7490_v51 = vld [vmem:[#allocation6 + $0x1e8] ss:$16 sps:$4 sm:$0xff]   ;;  %v7534_v12 = vld [vmem:[#allocation6 + $0x2cc] ss:$16 sps:$4 sm:$0xff]  }
  0x78   :  { %1971 = vmatmul.mubr.bf16.vlgmr.msra.gmra.mrb[0].mxu0 %v8442_v38 }
  0x79   :  { %1982 = vmatpush1.bf16.msra.mxu0 %v7445_v37  ;;  %2013 = vmatprep.mubr.bf16.mxu0 %v8444_v39  ;;  %v7480_v37 = vld [vmem:[#allocation6 + $0x1ac] ss:$16 sps:$4 sm:$0xff]  }
  0x7a   :  { %1983 = vmatprep.subr.bf16.mxu0 %v7453_v32  ;;  %2170 = vmatpush1.bf16.msra.mxu1 %v7448_v56  ;;  %v7493_v32 = vld [vmem:[#allocation6 + $0x300] ss:$16 sps:$4 sm:$0xff]   ;;  %v7504_v56 = vld [vmem:[#allocation6 + $0x22c] ss:$16 sps:$4 sm:$0xff]  }
  0x7b   :  { %2171 = vmatprep.subr.bf16.mxu1 %v7456_v60  ;;  %v7510_v60 = vld [vmem:[#allocation6 + $0x24c] ss:$16 sps:$4 sm:$0xff]  }
  0x7d   :  { %1984 = vmatpush1.bf16.msra.mxu0 %v7451_v41  ;;  %v7486_v41 = vld [vmem:[#allocation6 + $0x1cc] ss:$16 sps:$4 sm:$0xff]  }
  0x7e   :  { %1985 = vmatprep.subr.bf16.mxu0 %v7459_v45  ;;  %2172 = vmatpush1.bf16.msra.mxu1 %v7454_v10  ;;  %v7499_v45 = vld [vmem:[#allocation6 + $0x320] ss:$16 sps:$4 sm:$0xff]   ;;  %v7549_v10 = vld [vmem:[#allocation6 + $0x424] ss:$16 sps:$4 sm:$0xff]  }
  0x7f   :  { %2173 = vmatprep.subr.bf16.mxu1 %v7462_v20  ;;  %v7547_v20 = vld [vmem:[#allocation6 + $0x420] ss:$16 sps:$4 sm:$0xff]  }
  0x81   :  { %1986 = vmatpush1.bf16.msra.mxu0 %v7457_v48  ;;  %v7492_v48 = vld [vmem:[#allocation6 + $0x1ec] ss:$16 sps:$4 sm:$0xff]  }
  0x82   :  { %1987 = vmatprep.subr.bf16.mxu0 %v7465_v49  ;;  %2174 = vmatpush1.bf16.msra.mxu1 %v7460_v24  ;;  %v7505_v49 = vld [vmem:[#allocation6 + $0x340] ss:$16 sps:$4 sm:$0xff]   ;;  %v7540_v24 = vld [vmem:[#allocation6 + $0x2ec] ss:$16 sps:$4 sm:$0xff]  }
  0x83   :  { %2175 = vmatprep.subr.bf16.mxu1 %v7468_v25  ;;  %v7553_v25 = vld [vmem:[#allocation6 + $0x440] ss:$16 sps:$4 sm:$0xff]  }
  0x85   :  { %1988 = vmatpush1.bf16.msra.mxu0 %v7463_v52  ;;  %v7498_v52 = vld [vmem:[#allocation6 + $0x20c] ss:$16 sps:$4 sm:$0xff]  }
  0x86   :  { %1989 = vmatprep.subr.bf16.mxu0 %v7471_v53  ;;  %2176 = vmatpush1.bf16.msra.mxu1 %v7466_v30  ;;  %v7511_v53 = vld [vmem:[#allocation6 + $0x360] ss:$16 sps:$4 sm:$0xff]   ;;  %v7546_v30 = vld [vmem:[#allocation6 + $0x30c] ss:$16 sps:$4 sm:$0xff]  }
  0x87   :  { %2177 = vmatprep.subr.bf16.mxu1 %v7474_v31  ;;  %v7559_v31 = vld [vmem:[#allocation6 + $0x460] ss:$16 sps:$4 sm:$0xff]  }
  0x89   :  { %1990 = vmatpush1.bf16.msra.mxu0 %v7469_v61  ;;  %v7523_v61 = vld [vmem:[#allocation6 + $0x3a0] ss:$16 sps:$4 sm:$0xff]  }
  0x8a   :  { %1991 = vmatprep.subr.bf16.mxu0 %v7477_v3  ;;  %2178 = vmatpush1.bf16.msra.mxu1 %v7472_v36  ;;  %v7537_v3 = vld [vmem:[#allocation6 + $0x3e4] ss:$16 sps:$4 sm:$0xff]   ;;  %v7552_v36 = vld [vmem:[#allocation6 + $0x32c] ss:$16 sps:$4 sm:$0xff]  }
  0x8b   :  { %2179 = vmatprep.subr.bf16.mxu1 %v7480_v37  ;;  %v7565_v37 = vld [vmem:[#allocation6 + $0x480] ss:$16 sps:$4 sm:$0xff]  }
  0x8d   :  { %1992 = vmatpush1.bf16.msra.mxu0 %v7475_v21  ;;  %v7555_v21 = vld [vmem:[#allocation6 + $0x444] ss:$16 sps:$4 sm:$0xff]  }
  0x8e   :  { %1993 = vmatprep.subr.bf16.mxu0 %v7483_v23  ;;  %2180 = vmatpush1.bf16.msra.mxu1 %v7478_v33  ;;  %v7532_v23 = vld [vmem:[#allocation6 + $0x2c8] ss:$16 sps:$4 sm:$0xff]   ;;  %v7558_v33 = vld [vmem:[#allocation6 + $0x34c] ss:$16 sps:$4 sm:$0xff]  }
  0x8f   :  { %2181 = vmatprep.subr.bf16.mxu1 %v7486_v41  ;;  %v7571_v41 = vld [vmem:[#allocation6 + $0x4a0] ss:$16 sps:$4 sm:$0xff]  }
  0x91   :  { %1994 = vmatpush1.bf16.msra.mxu0 %v7481_v28  ;;  %v7561_v28 = vld [vmem:[#allocation6 + $0x464] ss:$16 sps:$4 sm:$0xff]  }
  0x92   :  { %1995 = vmatprep.subr.bf16.mxu0 %v7489_v29  ;;  %2182 = vmatpush1.bf16.msra.mxu1 %v7484_v47  ;;  %v7538_v29 = vld [vmem:[#allocation6 + $0x2e8] ss:$16 sps:$4 sm:$0xff]   ;;  %v7564_v47 = vld [vmem:[#allocation6 + $0x36c] ss:$16 sps:$4 sm:$0xff]  }
  0x93   :  { %2183 = vmatprep.subr.bf16.mxu1 %v7492_v48  ;;  %v7577_v48 = vld [vmem:[#allocation6 + $0x4c0] ss:$16 sps:$4 sm:$0xff]  }
  0x95   :  { %1996 = vmatpush1.bf16.msra.mxu0 %v7487_v34  ;;  %v7567_v34 = vld [vmem:[#allocation6 + $0x484] ss:$16 sps:$4 sm:$0xff]  }
  0x96   :  { %1997 = vmatprep.subr.bf16.mxu0 %v7495_v35  ;;  %2184 = vmatpush1.bf16.msra.mxu1 %v7490_v51  ;;  %v7544_v35 = vld [vmem:[#allocation6 + $0x308] ss:$16 sps:$4 sm:$0xff]   ;;  %v7570_v51 = vld [vmem:[#allocation6 + $0x38c] ss:$16 sps:$4 sm:$0xff]  }
  0x97   :  { %2196 = vmatprep.subr.bf16.mxu1 %v7498_v52  ;;  %v7583_v52 = vld [vmem:[#allocation6 + $0x4e0] ss:$16 sps:$4 sm:$0xff]  }
  0x99   :  { %1998 = vmatpush1.bf16.msra.mxu0 %v7493_v32  ;;  %2186 = vmatmul.mubr.bf16.vlgmr.msra.gmra.mrb[4].mxu1 %v8442_v38  ;;  %v7522_v38 = vld [vmem:[#allocation6 + $0x28c] ss:$16 sps:$4 sm:$0xff]   ;;  %v7573_v32 = vld [vmem:[#allocation6 + $0x4a4] ss:$16 sps:$4 sm:$0xff]  }
  0x9a   :  { %1999 = vmatprep.subr.bf16.mxu0 %v7501_v40  ;;  %2197 = vmatpush1.bf16.msra.mxu1 %v7496_v55  ;;  %v7550_v40 = vld [vmem:[#allocation6 + $0x328] ss:$16 sps:$4 sm:$0xff]   ;;  %v7576_v55 = vld [vmem:[#allocation6 + $0x3ac] ss:$16 sps:$4 sm:$0xff]  }
  0x9b   :  { %2198 = vmatprep.subr.bf16.mxu1 %v7504_v56  ;;  %2228 = vmatprep.mubr.bf16.mxu1 %v8444_v39  ;;  %v7541_v39 = vld [vmem:[#allocation6 + $0x400] ss:$16 sps:$4 sm:$0xff]  }
  0x9c   :  { %v7589_v56 = vld [vmem:[#allocation6 + $0x500] ss:$16 sps:$4 sm:$0xff]  }
  0x9d   :  { %2000 = vmatpush1.bf16.msra.mxu0 %v7499_v45  ;;  %v7579_v45 = vld [vmem:[#allocation6 + $0x4c4] ss:$16 sps:$4 sm:$0xff]  }
  0x9e   :  { %2001 = vmatprep.subr.bf16.mxu0 %v7507_v46  ;;  %2199 = vmatpush1.bf16.msra.mxu1 %v7502_v59  ;;  %v7556_v46 = vld [vmem:[#allocation6 + $0x348] ss:$16 sps:$4 sm:$0xff]   ;;  %v7582_v59 = vld [vmem:[#allocation6 + $0x3cc] ss:$16 sps:$4 sm:$0xff]  }
  0x9f   :  { %2200 = vmatprep.subr.bf16.mxu1 %v7510_v60  ;;  %v7595_v60 = vld [vmem:[#allocation6 + $0x520] ss:$16 sps:$4 sm:$0xff]  }
  0xa1   :  { %2002 = vmatpush1.bf16.msra.mxu0 %v7505_v49  ;;  %v7585_v49 = vld [vmem:[#allocation6 + $0x4e4] ss:$16 sps:$4 sm:$0xff]  }
  0xa2   :  { %2003 = vmatprep.subr.bf16.mxu0 %v7513_v50  ;;  %2201 = vmatpush1.bf16.msra.mxu1 %v7508_v63  ;;  %v7562_v50 = vld [vmem:[#allocation6 + $0x368] ss:$16 sps:$4 sm:$0xff]   ;;  %v7588_v63 = vld [vmem:[#allocation6 + $0x3ec] ss:$16 sps:$4 sm:$0xff]  }
  0xa3   :  { %2202 = vmatprep.subr.bf16.mxu1 %v7516_v1  ;;  %v7601_v1 = vld [vmem:[#allocation6 + $0x540] ss:$16 sps:$4 sm:$0xff]  }
  0xa5   :  { %2004 = vmatpush1.bf16.msra.mxu0 %v7511_v53  ;;  %v7591_v53 = vld [vmem:[#allocation6 + $0x504] ss:$16 sps:$4 sm:$0xff]  }
  0xa6   :  { %2005 = vmatprep.subr.bf16.mxu0 %v7519_v54  ;;  %2203 = vmatpush1.bf16.msra.mxu1 %v7514_v4  ;;  %v7568_v54 = vld [vmem:[#allocation6 + $0x388] ss:$16 sps:$4 sm:$0xff]   ;;  %v7594_v4 = vld [vmem:[#allocation6 + $0x40c] ss:$16 sps:$4 sm:$0xff]  }
  0xa7   :  { %2204 = vmatprep.subr.bf16.mxu1 %v7522_v38  ;;  %v7607_v38 = vld [vmem:[#allocation6 + $0x560] ss:$16 sps:$4 sm:$0xff]  }
  0xa9   :  { %2006 = vmatpush1.bf16.msra.mxu0 %v7517_v57  ;;  %v7597_v57 = vld [vmem:[#allocation6 + $0x524] ss:$16 sps:$4 sm:$0xff]  }
  0xaa   :  { %2007 = vmatprep.subr.bf16.mxu0 %v7525_v58  ;;  %2205 = vmatpush1.bf16.msra.mxu1 %v7520_v8  ;;  %v7574_v58 = vld [vmem:[#allocation6 + $0x3a8] ss:$16 sps:$4 sm:$0xff]   ;;  %v7600_v8 = vld [vmem:[#allocation6 + $0x42c] ss:$16 sps:$4 sm:$0xff]  }
  0xab   :  { %2206 = vmatprep.subr.bf16.mxu1 %v7528_v9  ;;  %v7613_v9 = vld [vmem:[#allocation6 + $0x580] ss:$16 sps:$4 sm:$0xff]  }
  0xad   :  { %2008 = vmatpush1.bf16.msra.mxu0 %v7523_v61  ;;  %v7603_v61 = vld [vmem:[#allocation6 + $0x544] ss:$16 sps:$4 sm:$0xff]  }
  0xae   :  { %2009 = vmatprep.subr.bf16.mxu0 %v7531_v62  ;;  %2207 = vmatpush1.bf16.msra.mxu1 %v7526_v11  ;;  %v7580_v62 = vld [vmem:[#allocation6 + $0x3c8] ss:$16 sps:$4 sm:$0xff]   ;;  %v7606_v11 = vld [vmem:[#allocation6 + $0x44c] ss:$16 sps:$4 sm:$0xff]  }
  0xaf   :  { %2208 = vmatprep.subr.bf16.mxu1 %v7534_v12  ;;  %v7619_v12 = vld [vmem:[#allocation6 + $0x5a0] ss:$16 sps:$4 sm:$0xff]  }
  0xb1   :  { %2010 = vmatpush1.bf16.msra.mxu0 %v7529_v2  ;;  %v7609_v2 = vld [vmem:[#allocation6 + $0x564] ss:$16 sps:$4 sm:$0xff]  }
  0xb2   :  { %2011 = vmatprep.subr.bf16.mxu0 %v7537_v3  ;;  %2209 = vmatpush1.bf16.msra.mxu1 %v7532_v23  ;;  %v7586_v3 = vld [vmem:[#allocation6 + $0x3e8] ss:$16 sps:$4 sm:$0xff]   ;;  %v193_v23 = vsel %vm120_vm7, %v8315_v16, 0.0 }
  0xb3   :  { %2210 = vmatprep.subr.bf16.mxu1 %v7540_v24  ;;  %v7604_v24 = vld [vmem:[#allocation6 + $0x448] ss:$16 sps:$4 sm:$0xff]  }
  0xb5   :  { %2012 = vmatpush1.bf16.msra.mxu0 %v7535_v5  ;;  %v7615_v5 = vld [vmem:[#allocation6 + $0x584] ss:$16 sps:$4 sm:$0xff]  }
  0xb6   :  { %2024 = vmatprep.subr.bf16.mxu0 %v7543_v6  ;;  %2211 = vmatpush1.bf16.msra.mxu1 %v7538_v29  ;;  %v7592_v6 = vld [vmem:[#allocation6 + $0x408] ss:$16 sps:$4 sm:$0xff]   ;;  %v195_v29 = vsel %vm9993_vm11, %v8311_v14, %v193_v23  ;;  %v7693_v23 = vld [vmem:[#allocation6 + $0x724] ss:$16 sps:$4 sm:$0xff]  }
  0xb7   :  { %2212 = vmatprep.subr.bf16.mxu1 %v7546_v30  ;;  %v7610_v30 = vld [vmem:[#allocation6 + $0x468] ss:$16 sps:$4 sm:$0xff]  }
  0xb8   :  { %2014 = vmatmul.mubr.bf16.vlgmr.msra.gmra.mrb[0].mxu0 %v8426_v19 }
  0xb9   :  { %2025 = vmatpush1.bf16.msra.mxu0 %v7541_v39  ;;  %2056 = vmatprep.mubr.bf16.mxu0 %v8486_v7  ;;  %v7621_v39 = vld [vmem:[#allocation6 + $0x5a4] ss:$16 sps:$4 sm:$0xff]  }
  0xba   :  { %2026 = vmatprep.subr.bf16.mxu0 %v7549_v10  ;;  %2213 = vmatpush1.bf16.msra.mxu1 %v7544_v35  ;;  %v7598_v10 = vld [vmem:[#allocation6 + $0x428] ss:$16 sps:$4 sm:$0xff]  }
  0xbb   :  { %2214 = vmatprep.subr.bf16.mxu1 %v7552_v36  ;;  %v197_v36 = vsel %vm116_vm3, %v8333_v27, %v195_v29  ;;  %v7697_v29 = vld [vmem:[#allocation6 + $0x740] ss:$16 sps:$4 sm:$0xff]  }
  0xbd   :  { %2027 = vmatpush1.bf16.msra.mxu0 %v7547_v20  ;;  %v7627_v20 = vld [vmem:[#allocation6 + $0x5c4] ss:$16 sps:$4 sm:$0xff]  }
  0xbe   :  { %2028 = vmatprep.subr.bf16.mxu0 %v7555_v21  ;;  %2215 = vmatpush1.bf16.msra.mxu1 %v7550_v40  ;;  %v192_v21 = vsel %vm119_vm6, %v8313_v15, 0.0  ;;  %v7624_v40 = vld [vmem:[#allocation6 + $0x4ac] ss:$16 sps:$4 sm:$0xff]   ;;  %vm9994_vm6 = vmmov %vm9993_vm11 }
  0xbf   :  { %2216 = vmatprep.subr.bf16.mxu1 %v7558_v33 }
  0xc1   :  { %2029 = vmatpush1.bf16.msra.mxu0 %v7553_v25  ;;  %v7625_v25 = vld [vmem:[#allocation6 + $0x5c0] ss:$16 sps:$4 sm:$0xff]  }
  0xc2   :  { %2030 = vmatprep.subr.bf16.mxu0 %v7561_v28  ;;  %2217 = vmatpush1.bf16.msra.mxu1 %v7556_v46  ;;  %v7633_v28 = vld [vmem:[#allocation6 + $0x5e4] ss:$16 sps:$4 sm:$0xff]  }
  0xc3   :  { %2218 = vmatprep.subr.bf16.mxu1 %v7564_v47  ;;  %v7645_v46 = vld [vmem:[#allocation6 + $0x624] ss:$16 sps:$4 sm:$0xff]   ;;  %v8535_v47 = vsel %vm117_vm0, %v8313_v15, 0.0  ;;  %v7636_v15 = vld [vmem:[#allocation6 + $0x4ec] ss:$16 sps:$4 sm:$0xff]  }
  0xc5   :  { %2031 = vmatpush1.bf16.msra.mxu0 %v7559_v31  ;;  %v7618_v31 = vld [vmem:[#allocation6 + $0x48c] ss:$16 sps:$4 sm:$0xff]  }
  0xc6   :  { %2032 = vmatprep.subr.bf16.mxu0 %v7567_v34  ;;  %2219 = vmatpush1.bf16.msra.mxu1 %v7562_v50  ;;  %v7631_v34 = vld [vmem:[#allocation6 + $0x5e0] ss:$16 sps:$4 sm:$0xff]  }
  0xc7   :  { %2220 = vmatprep.subr.bf16.mxu1 %v7570_v51  ;;  %v7630_v51 = vld [vmem:[#allocation6 + $0x4cc] ss:$16 sps:$4 sm:$0xff]  }
  0xc9   :  { %2033 = vmatpush1.bf16.msra.mxu0 %v7565_v37  ;;  %v7639_v37 = vld [vmem:[#allocation6 + $0x604] ss:$16 sps:$4 sm:$0xff]  }
  0xca   :  { %2034 = vmatprep.subr.bf16.mxu0 %v7573_v32  ;;  %2221 = vmatpush1.bf16.msra.mxu1 %v7568_v54  ;;  %v7616_v32 = vld [vmem:[#allocation6 + $0x488] ss:$16 sps:$4 sm:$0xff]  }
  0xcb   :  { %2222 = vmatprep.subr.bf16.mxu1 %v7576_v55  ;;  %v7628_v54 = vld [vmem:[#allocation6 + $0x4c8] ss:$16 sps:$4 sm:$0xff]   ;;  %v7657_v55 = vld [vmem:[#allocation6 + $0x664] ss:$16 sps:$4 sm:$0xff]  }
  0xcd   :  { %2035 = vmatpush1.bf16.msra.mxu0 %v7571_v41  ;;  %v199_v41 = vsel %vm114_vm10, %v8321_v18, %v197_v36  ;;  %v7690_v36 = vld [vmem:[#allocation6 + $0x60c] ss:$16 sps:$4 sm:$0xff]  }
  0xce   :  { %2036 = vmatprep.subr.bf16.mxu0 %v7579_v45  ;;  %2223 = vmatpush1.bf16.msra.mxu1 %v7574_v58  ;;  %v7637_v45 = vld [vmem:[#allocation6 + $0x600] ss:$16 sps:$4 sm:$0xff]  }
  0xcf   :  { %2224 = vmatprep.subr.bf16.mxu1 %v7582_v59  ;;  %v7655_v58 = vld [vmem:[#allocation6 + $0x660] ss:$16 sps:$4 sm:$0xff]   ;;  %v7663_v59 = vld [vmem:[#allocation6 + $0x684] ss:$16 sps:$4 sm:$0xff]  }
  0xd1   :  { %2037 = vmatpush1.bf16.msra.mxu0 %v7577_v48  ;;  %v8540_v48 = vsel %vm9994_vm6, %v8315_v16, 0.0  ;;  %v7649_v16 = vld [vmem:[#allocation6 + $0x640] ss:$16 sps:$4 sm:$0xff]  }
  0xd2   :  { %2038 = vmatprep.subr.bf16.mxu0 %v7585_v49  ;;  %2225 = vmatpush1.bf16.msra.mxu1 %v7580_v62  ;;  %v7622_v49 = vld [vmem:[#allocation6 + $0x4a8] ss:$16 sps:$4 sm:$0xff]   ;;  %v7648_v62 = vld [vmem:[#allocation6 + $0x52c] ss:$16 sps:$4 sm:$0xff]  }
  0xd3   :  { %2226 = vmatprep.subr.bf16.mxu1 %v7588_v63  ;;  %v7669_v63 = vld [vmem:[#allocation6 + $0x6a4] ss:$16 sps:$4 sm:$0xff]  }
  0xd5   :  { %2039 = vmatpush1.bf16.msra.mxu0 %v7583_v52  ;;  %v7643_v52 = vld [vmem:[#allocation6 + $0x620] ss:$16 sps:$4 sm:$0xff]  }
  0xd6   :  { %2040 = vmatprep.subr.bf16.mxu0 %v7591_v53  ;;  %2227 = vmatpush1.bf16.msra.mxu1 %v7586_v3  ;;  %v7651_v53 = vld [vmem:[#allocation6 + $0x644] ss:$16 sps:$4 sm:$0xff]   ;;  %v7654_v3 = vld [vmem:[#allocation6 + $0x54c] ss:$16 sps:$4 sm:$0xff]  }
  0xd7   :  { %2239 = vmatprep.subr.bf16.mxu1 %v7594_v4  ;;  %v7675_v4 = vld [vmem:[#allocation6 + $0x6c4] ss:$16 sps:$4 sm:$0xff]  }
  0xd9   :  { %2041 = vmatpush1.bf16.msra.mxu0 %v7589_v56  ;;  %2229 = vmatmul.mubr.bf16.vlgmr.msra.gmra.mrb[4].mxu1 %v8426_v19  ;;  %v7612_v19 = vld [vmem:[#allocation6 + $0x46c] ss:$16 sps:$4 sm:$0xff]   ;;  %v7634_v56 = vld [vmem:[#allocation6 + $0x4e8] ss:$16 sps:$4 sm:$0xff]  }
  0xda   :  { %2042 = vmatprep.subr.bf16.mxu0 %v7597_v57  ;;  %2240 = vmatpush1.bf16.msra.mxu1 %v7592_v6  ;;  %v7642_v57 = vld [vmem:[#allocation6 + $0x50c] ss:$16 sps:$4 sm:$0xff]  }
  0xdb   :  { %2241 = vmatprep.subr.bf16.mxu1 %v7600_v8  ;;  %2271 = vmatprep.mubr.bf16.mxu1 %v8486_v7  ;;  %v194_v7 = vsel %vm117_vm0, %v8309_v13, %v192_v21  ;;  %v7660_v6 = vld [vmem:[#allocation6 + $0x56c] ss:$16 sps:$4 sm:$0xff]   ;;  %v7681_v8 = vld [vmem:[#allocation6 + $0x6e4] ss:$16 sps:$4 sm:$0xff]  }
  0xdc   :  { %v196_v35 = vsel %vm115_vm2, %v8331_v26, %v194_v7  ;;  %v7672_v21 = vld [vmem:[#allocation6 + $0x5ac] ss:$16 sps:$4 sm:$0xff]   ;;  %v7676_v7 = vld [vmem:[#allocation6 + $0x5c8] ss:$16 sps:$4 sm:$0xff]  }
  0xdd   :  { %2043 = vmatpush1.bf16.msra.mxu0 %v7595_v60  ;;  %v198_v33 = vsel %vm113_vm9, %v8319_v17, %v196_v35  ;;  %v7640_v60 = vld [vmem:[#allocation6 + $0x508] ss:$16 sps:$4 sm:$0xff]   ;;  %v7703_v35 = vld [vmem:[#allocation6 + $0x760] ss:$16 sps:$4 sm:$0xff]  }
  0xde   :  { %2044 = vmatprep.subr.bf16.mxu0 %v7603_v61  ;;  %2242 = vmatpush1.bf16.msra.mxu1 %v7598_v10  ;;  %v8542_v50 = vpack.c.bf16 %v199_v41, %v198_v33  ;;  %v7661_v61 = vld [vmem:[#allocation6 + $0x680] ss:$16 sps:$4 sm:$0xff]   ;;  %v7666_v10 = vld [vmem:[#allocation6 + $0x58c] ss:$16 sps:$4 sm:$0xff]   ;;  %v7717_v41 = vld [vmem:[#allocation6 + $0x7a4] ss:$16 sps:$4 sm:$0xff]  }
  0xdf   :  { %2243 = vmatprep.subr.bf16.mxu1 %v7606_v11  ;;  %v7687_v11 = vld [vmem:[#allocation6 + $0x704] ss:$16 sps:$4 sm:$0xff]   ;;  %v7696_v33 = vld [vmem:[#allocation6 + $0x62c] ss:$16 sps:$4 sm:$0xff]  }
  0xe1   :  { %2045 = vmatpush1.bf16.msra.mxu0 %v7601_v1  ;;  %v7646_v1 = vld [vmem:[#allocation6 + $0x528] ss:$16 sps:$4 sm:$0xff]  }
  0xe2   :  { %2046 = vmatprep.subr.bf16.mxu0 %v7609_v2  ;;  %2244 = vmatpush1.bf16.msra.mxu1 %v7604_v24  ;;  %v7667_v2 = vld [vmem:[#allocation6 + $0x6a0] ss:$16 sps:$4 sm:$0xff]   ;;  %v7670_v24 = vld [vmem:[#allocation6 + $0x5a8] ss:$16 sps:$4 sm:$0xff]  }
  0xe3   :  { %2245 = vmatprep.subr.bf16.mxu1 %v7612_v19  ;;  %v7691_v19 = vld [vmem:[#allocation6 + $0x720] ss:$16 sps:$4 sm:$0xff]  }
  0xe5   :  { %2047 = vmatpush1.bf16.msra.mxu0 %v7607_v38  ;;  %v7652_v38 = vld [vmem:[#allocation6 + $0x548] ss:$16 sps:$4 sm:$0xff]  }
  0xe6   :  { %2048 = vmatprep.subr.bf16.mxu0 %v7615_v5  ;;  %2246 = vmatpush1.bf16.msra.mxu1 %v7610_v30  ;;  %v7673_v5 = vld [vmem:[#allocation6 + $0x6c0] ss:$16 sps:$4 sm:$0xff]   ;;  %v7684_v30 = vld [vmem:[#allocation6 + $0x5ec] ss:$16 sps:$4 sm:$0xff]  }
  0xe7   :  { %2247 = vmatprep.subr.bf16.mxu1 %v7618_v31  ;;  %v7705_v31 = vld [vmem:[#allocation6 + $0x764] ss:$16 sps:$4 sm:$0xff]  }
  0xe9   :  { %2049 = vmatpush1.bf16.msra.mxu0 %v7613_v9  ;;  %v7658_v9 = vld [vmem:[#allocation6 + $0x568] ss:$16 sps:$4 sm:$0xff]  }
  0xea   :  { %2050 = vmatprep.subr.bf16.mxu0 %v7621_v39  ;;  %2248 = vmatpush1.bf16.msra.mxu1 %v7616_v32  ;;  %v7679_v39 = vld [vmem:[#allocation6 + $0x6e0] ss:$16 sps:$4 sm:$0xff]   ;;  %v7688_v32 = vld [vmem:[#allocation6 + $0x608] ss:$16 sps:$4 sm:$0xff]  }
  0xeb   :  { %2249 = vmatprep.subr.bf16.mxu1 %v7624_v40  ;;  %v7709_v40 = vld [vmem:[#allocation6 + $0x780] ss:$16 sps:$4 sm:$0xff]  }
  0xed   :  { %2051 = vmatpush1.bf16.msra.mxu0 %v7619_v12  ;;  %v7664_v12 = vld [vmem:[#allocation6 + $0x588] ss:$16 sps:$4 sm:$0xff]  }
  0xee   :  { %2052 = vmatprep.subr.bf16.mxu0 %v7627_v20  ;;  %2250 = vmatpush1.bf16.msra.mxu1 %v7622_v49  ;;  %v7685_v20 = vld [vmem:[#allocation6 + $0x700] ss:$16 sps:$4 sm:$0xff]   ;;  %v7702_v49 = vld [vmem:[#allocation6 + $0x64c] ss:$16 sps:$4 sm:$0xff]  }
  0xef   :  { %2251 = vmatprep.subr.bf16.mxu1 %v7630_v51  ;;  %v7723_v51 = vld [vmem:[#allocation6 + $0x7c4] ss:$16 sps:$4 sm:$0xff]  }
  0xf1   :  { %2053 = vmatpush1.bf16.msra.mxu0 %v7625_v25  ;;  %v7678_v25 = vld [vmem:[#allocation6 + $0x5cc] ss:$16 sps:$4 sm:$0xff]  }
  0xf2   :  { %2054 = vmatprep.subr.bf16.mxu0 %v7633_v28  ;;  %2252 = vmatpush1.bf16.msra.mxu1 %v7628_v54  ;;  %v7699_v28 = vld [vmem:[#allocation6 + $0x744] ss:$16 sps:$4 sm:$0xff]   ;;  %v185_v54 = vsel %vm115_vm2, %v8309_v13, %v8535_v47  ;;  %v7706_v47 = vld [vmem:[#allocation6 + $0x668] ss:$16 sps:$4 sm:$0xff]  }
  0xf3   :  { %2253 = vmatprep.subr.bf16.mxu1 %v7636_v15  ;;  %v186_v15 = vsel %vm116_vm3, %v8311_v14, %v8540_v48 }
  0xf4   :  { %v188_v13 = vsel %vm114_vm10, %v8333_v27, %v186_v15  ;;  %v7718_v27 = vld [vmem:[#allocation6 + $0x6a8] ss:$16 sps:$4 sm:$0xff]  }
  0xf5   :  { %2055 = vmatpush1.bf16.msra.mxu0 %v7631_v34  ;;  %v7682_v34 = vld [vmem:[#allocation6 + $0x5e8] ss:$16 sps:$4 sm:$0xff]   ;;  %v190_v48 = vsel %vm112_vm8, %v8321_v18, %v188_v13  ;;  %v7795_v13 = vld [vmem:[#allocation8 + $0x320] sm:$0xff]  }
  0xf6   :  { %2067 = vmatprep.subr.bf16.mxu0 %v7639_v37  ;;  %2254 = vmatpush1.bf16.msra.mxu1 %v7634_v56  ;;  %v7711_v37 = vld [vmem:[#allocation6 + $0x784] ss:$16 sps:$4 sm:$0xff]   ;;  %v7727_v56 = vld [vmem:[#allocation6 + $0x7e0] ss:$16 sps:$4 sm:$0xff]   ;;  %v7790_v15 = vld [vmem:[#allocation8 + $0x248] sm:$0xff]  }
  0xf7   :  { %2255 = vmatprep.subr.bf16.mxu1 %v7642_v57  ;;  %v7714_v57 = vld [vmem:[#allocation6 + $0x68c] ss:$16 sps:$4 sm:$0xff]  }
  0xf8   :  { %2057 = vmatmul.mubr.bf16.vlgmr.msra.gmra.mrb[0].mxu0 %v8500_v22 }
  0xf9   :  { %2068 = vmatpush1.bf16.msra.mxu0 %v7637_v45  ;;  %2099 = vmatprep.mubr.bf16.mxu0 %v8542_v50  ;;  %v7694_v45 = vld [vmem:[#allocation6 + $0x628] ss:$16 sps:$4 sm:$0xff]  }
  0xfa   :  { %2069 = vmatprep.subr.bf16.mxu0 %v7645_v46  ;;  %2256 = vmatpush1.bf16.msra.mxu1 %v7640_v60  ;;  %v7715_v46 = vld [vmem:[#allocation6 + $0x7a0] ss:$16 sps:$4 sm:$0xff]   ;;  %v7724_v60 = vld [vmem:[#allocation6 + $0x6c8] ss:$16 sps:$4 sm:$0xff]  }
  0xfb   :  { %2257 = vmatprep.subr.bf16.mxu1 %v7648_v62  ;;  %v7730_v62 = vld [vmem:[#allocation6 + $0x6e8] ss:$16 sps:$4 sm:$0xff]  }
  0xfd   :  { %2070 = vmatpush1.bf16.msra.mxu0 %v7643_v52  ;;  %v7700_v52 = vld [vmem:[#allocation6 + $0x648] ss:$16 sps:$4 sm:$0xff]  }
  0xfe   :  { %2071 = vmatprep.subr.bf16.mxu0 %v7651_v53  ;;  %2258 = vmatpush1.bf16.msra.mxu1 %v7646_v1  ;;  %v7721_v53 = vld [vmem:[#allocation6 + $0x7c0] ss:$16 sps:$4 sm:$0xff]   ;;  %v7733_v1 = vld [vmem:[#allocation6 + $0x708] ss:$16 sps:$4 sm:$0xff]  }
  0xff   :  { %2259 = vmatprep.subr.bf16.mxu1 %v7654_v3  ;;  %v7736_v3 = vld [vmem:[#allocation6 + $0x728] ss:$16 sps:$4 sm:$0xff]  }
 0x101   :  { %2072 = vmatpush1.bf16.msra.mxu0 %v7649_v16  ;;  %v7729_v16 = vld [vmem:[#allocation6 + $0x7e4] ss:$16 sps:$4 sm:$0xff]  }
 0x102   :  { %2073 = vmatprep.subr.bf16.mxu0 %v7657_v55  ;;  %2260 = vmatpush1.bf16.msra.mxu1 %v7652_v38  ;;  %v187_v55 = vsel %vm113_vm9, %v8331_v26, %v185_v54  ;;  %v7712_v26 = vld [vmem:[#allocation6 + $0x688] ss:$16 sps:$4 sm:$0xff]   ;;  %v7789_v54 = vld [vmem:[#allocation8 + $0x2d0] sm:$0xff]  }
 0x103   :  { %2261 = vmatprep.subr.bf16.mxu1 %v7660_v6  ;;  %v189_v14 = vsel %vm111_vm1, %v8319_v17, %v187_v55  ;;  %v7732_v17 = vld [vmem:[#allocation6 + $0x6ec] ss:$16 sps:$4 sm:$0xff]   ;;  %v7739_v38 = vld [vmem:[#allocation6 + $0x748] ss:$16 sps:$4 sm:$0xff]   ;;  %v7794_v55 = vld [vmem:[#allocation8 + $0x250] sm:$0xff]  }
 0x104   :  { %v7742_v6 = vld [vmem:[#allocation6 + $0x768] ss:$16 sps:$4 sm:$0xff]  }
 0x105   :  { %2074 = vmatpush1.bf16.msra.mxu0 %v7655_v58  ;;  %v191_v58 = vpack.c.bf16 %v190_v48, %v189_v14  ;;  %v7799_v14 = vld [vmem:[#allocation8 + $0x328] sm:$0xff]   ;;  %v7800_v48 = vld [vmem:[#allocation8 + $0x2a0] sm:$0xff]  }
 0x106   :  { %2075 = vmatprep.subr.bf16.mxu0 %v7663_v59  ;;  %2262 = vmatpush1.bf16.msra.mxu1 %v7658_v9  ;;  %v7726_v59 = vld [vmem:[#allocation6 + $0x6cc] ss:$16 sps:$4 sm:$0xff]   ;;  %v7745_v9 = vld [vmem:[#allocation6 + $0x788] ss:$16 sps:$4 sm:$0xff]  }
 0x107   :  { %2263 = vmatprep.subr.bf16.mxu1 %v7666_v10  ;;  %v7748_v10 = vld [vmem:[#allocation6 + $0x7a8] ss:$16 sps:$4 sm:$0xff]  }
 0x109   :  { %2076 = vmatpush1.bf16.msra.mxu0 %v7661_v61 }
 0x10a   :  { %2077 = vmatprep.subr.bf16.mxu0 %v7669_v63  ;;  %2264 = vmatpush1.bf16.msra.mxu1 %v7664_v12  ;;  %v7735_v63 = vld [vmem:[#allocation6 + $0x70c] ss:$16 sps:$4 sm:$0xff]   ;;  %v7751_v12 = vld [vmem:[#allocation6 + $0x7c8] ss:$16 sps:$4 sm:$0xff]  }
 0x10b   :  { %2265 = vmatprep.subr.bf16.mxu1 %v7672_v21  ;;  %v7754_v21 = vld [vmem:[#allocation6 + $0x7e8] ss:$16 sps:$4 sm:$0xff]  }
 0x10d   :  { %2078 = vmatpush1.bf16.msra.mxu0 %v7667_v2  ;;  %v7738_v2 = vld [vmem:[#allocation6 + $0x72c] ss:$16 sps:$4 sm:$0xff]  }
 0x10e   :  { %2079 = vmatprep.subr.bf16.mxu0 %v7675_v4  ;;  %2266 = vmatpush1.bf16.msra.mxu1 %v7670_v24  ;;  %v7741_v4 = vld [vmem:[#allocation6 + $0x74c] ss:$16 sps:$4 sm:$0xff]   ;;  %v7757_v24 = vld [vmem:[#allocation6 + $0x808] ss:$16 sps:$4 sm:$0xff]  }
 0x10f   :  { %2267 = vmatprep.subr.bf16.mxu1 %v7678_v25  ;;  %v7760_v25 = vld [vmem:[#allocation6 + $0x828] ss:$16 sps:$4 sm:$0xff]  }
 0x111   :  { %2080 = vmatpush1.bf16.msra.mxu0 %v7673_v5  ;;  %v7744_v5 = vld [vmem:[#allocation6 + $0x76c] ss:$16 sps:$4 sm:$0xff]  }
 0x112   :  { %2081 = vmatprep.subr.bf16.mxu0 %v7681_v8  ;;  %2268 = vmatpush1.bf16.msra.mxu1 %v7676_v7  ;;  %v7747_v8 = vld [vmem:[#allocation6 + $0x78c] ss:$16 sps:$4 sm:$0xff]   ;;  %v7763_v7 = vld [vmem:[#allocation6 + $0x848] ss:$16 sps:$4 sm:$0xff]  }
 0x113   :  { %2269 = vmatprep.subr.bf16.mxu1 %v7684_v30  ;;  %v7766_v30 = vld [vmem:[#allocation6 + $0x868] ss:$16 sps:$4 sm:$0xff]  }
 0x115   :  { %2082 = vmatpush1.bf16.msra.mxu0 %v7679_v39  ;;  %v7750_v39 = vld [vmem:[#allocation6 + $0x7ac] ss:$16 sps:$4 sm:$0xff]  }
 0x116   :  { %2083 = vmatprep.subr.bf16.mxu0 %v7687_v11  ;;  %2270 = vmatpush1.bf16.msra.mxu1 %v7682_v34  ;;  %v7753_v11 = vld [vmem:[#allocation6 + $0x7cc] ss:$16 sps:$4 sm:$0xff]   ;;  %v7769_v34 = vld [vmem:[#allocation6 + $0x888] ss:$16 sps:$4 sm:$0xff]  }
 0x117   :  { %2282 = vmatprep.subr.bf16.mxu1 %v7690_v36  ;;  %v7772_v36 = vld [vmem:[#allocation6 + $0x8a8] ss:$16 sps:$4 sm:$0xff]  }
 0x119   :  { %2084 = vmatpush1.bf16.msra.mxu0 %v7685_v20  ;;  %2272 = vmatmul.mubr.bf16.vlgmr.msra.gmra.mrb[4].mxu1 %v8500_v22  ;;  %v7708_v22 = vld [vmem:[#allocation6 + $0x66c] ss:$16 sps:$4 sm:$0xff]  }
 0x11a   :  { %2085 = vmatprep.subr.bf16.mxu0 %v7693_v23  ;;  %2283 = vmatpush1.bf16.msra.mxu1 %v7688_v32  ;;  %v7756_v20 = vld [vmem:[#allocation6 + $0x7ec] ss:$16 sps:$4 sm:$0xff]   ;;  %v7775_v32 = vld [vmem:[#allocation6 + $0x8c8] ss:$16 sps:$4 sm:$0xff]  }
 0x11b   :  { %2284 = vmatprep.subr.bf16.mxu1 %v7696_v33  ;;  %2314 = vmatprep.mubr.bf16.mxu1 %v8542_v50  ;;  %v7720_v50 = vld [vmem:[#allocation6 + $0x6ac] ss:$16 sps:$4 sm:$0xff]   ;;  %v7781_v33 = vld [vmem:[#allocation8 + $0x300] sm:$0xff]  }
 0x11c   :  { %v7759_v23 = vld [vmem:[#allocation6 + $0x80c] ss:$16 sps:$4 sm:$0xff]  }
 0x11d   :  { %2086 = vmatpush1.bf16.msra.mxu0 %v7691_v19  ;;  %v7762_v19 = vld [vmem:[#allocation6 + $0x82c] ss:$16 sps:$4 sm:$0xff]  }
 0x11e   :  { %2087 = vmatprep.subr.bf16.mxu0 %v7699_v28  ;;  %2285 = vmatpush1.bf16.msra.mxu1 %v7694_v45  ;;  %v7765_v28 = vld [vmem:[#allocation6 + $0x84c] ss:$16 sps:$4 sm:$0xff]  }
 0x11f   :  { %2286 = vmatprep.subr.bf16.mxu1 %v7702_v49  ;;  %v7783_v45 = vld [vmem:[#allocation8 + $0x308] sm:$0xff]  }
 0x120   :  { %v7785_v49 = vld [vmem:[#allocation8 + $0x2c8] sm:$0xff]  }
 0x121   :  { %2088 = vmatpush1.bf16.msra.mxu0 %v7697_v29  ;;  %v7768_v29 = vld [vmem:[#allocation6 + $0x86c] ss:$16 sps:$4 sm:$0xff]  }
 0x122   :  { %2089 = vmatprep.subr.bf16.mxu0 %v7705_v31  ;;  %2287 = vmatpush1.bf16.msra.mxu1 %v7700_v52  ;;  %v7771_v31 = vld [vmem:[#allocation6 + $0x88c] ss:$16 sps:$4 sm:$0xff]   ;;  %v7787_v52 = vld [vmem:[#allocation8 + $0x310] sm:$0xff]  }
 0x123   :  { %2288 = vmatprep.subr.bf16.mxu1 %v7708_v22  ;;  %v7792_v22 = vld [vmem:[#allocation8 + $0x290] sm:$0xff]  }
 0x125   :  { %2090 = vmatpush1.bf16.msra.mxu0 %v7703_v35  ;;  %v7774_v35 = vld [vmem:[#allocation6 + $0x8ac] ss:$16 sps:$4 sm:$0xff]  }
 0x126   :  { %2091 = vmatprep.subr.bf16.mxu0 %v7711_v37  ;;  %2289 = vmatpush1.bf16.msra.mxu1 %v7706_v47  ;;  %v7777_v37 = vld [vmem:[#allocation6 + $0x8cc] ss:$16 sps:$4 sm:$0xff]  }
 0x127   :  { %2290 = vmatprep.subr.bf16.mxu1 %v7714_v57  ;;  %v7796_v47 = vld [vmem:[#allocation8 + $0x298] sm:$0xff]  }
 0x128   :  { %v7798_v57 = vld [vmem:[#allocation8 + $0x258] sm:$0xff]  }
 0x129   :  { %2092 = vmatpush1.bf16.msra.mxu0 %v7709_v40  ;;  %v7780_v40 = vld [vmem:[#allocation6 + $0x8ec] ss:$16 sps:$4 sm:$0xff]  }
 0x12a   :  { %2093 = vmatprep.subr.bf16.mxu0 %v7717_v41  ;;  %2291 = vmatpush1.bf16.msra.mxu1 %v7712_v26  ;;  %v7782_v41 = vld [vmem:[#allocation8 + $0x2c0] sm:$0xff]   ;;  %v7801_v26 = vld [vmem:[#allocation8 + $0x2e8] sm:$0xff]  }
 0x12b   :  { %2292 = vmatprep.subr.bf16.mxu1 %v7720_v50  ;;  %v7802_v50 = vld [vmem:[#allocation8 + $0x260] sm:$0xff]  }
 0x12c   :  { %v8568_v42 = vpop.f32.mrb[0].mxu1 }
 0x12d   :  { %2094 = vmatpush1.bf16.msra.mxu0 %v7715_v46  ;;  %v8570_v61 = vpop.f32.mrb[1].mxu1  ;;  %v7784_v46 = vld [vmem:[#allocation8 + $0x280] sm:$0xff]  }
 0x12e   :  { %2095 = vmatprep.subr.bf16.mxu0 %v7723_v51  ;;  %2293 = vmatpush1.bf16.msra.mxu1 %v7718_v27  ;;  %v8572_v43 = vpop.f32.mrb[2].mxu1  ;;  %v7786_v51 = vld [vmem:[#allocation8 + $0x240] sm:$0xff]   ;;  %v7804_v27 = vld [vmem:[#allocation8 + $0x2a8] sm:$0xff]  }
 0x12f   :  { %2294 = vmatprep.subr.bf16.mxu1 %v7726_v59  ;;  %v8574_v18 = vpop.f32.mrb[3].mxu1  ;;  %v7805_v59 = vld [vmem:[#allocation8 + $0x2f0] sm:$0xff]  }
 0x131   :  { %2096 = vmatpush1.bf16.msra.mxu0 %v7721_v53  ;;  %v7788_v53 = vld [vmem:[#allocation8 + $0x288] sm:$0xff]  }
 0x132   :  { %2097 = vmatprep.subr.bf16.mxu0 %v7729_v16  ;;  %2295 = vmatpush1.bf16.msra.mxu1 %v7724_v60  ;;  %v7793_v16 = vld [vmem:[#allocation8 + $0x2d8] sm:$0xff]   ;;  %v7806_v60 = vld [vmem:[#allocation8 + $0x268] sm:$0xff]  }
 0x133   :  { %2296 = vmatprep.subr.bf16.mxu1 %v7732_v17  ;;  %v7807_v17 = vld [vmem:[#allocation8 + $0x338] sm:$0xff]  }
 0x135   :  { %2098 = vmatpush1.bf16.msra.mxu0 %v7727_v56  ;;  %v7797_v56 = vld [vmem:[#allocation8 + $0x2e0] sm:$0xff]  }
 0x136   :  { %2297 = vmatpush1.bf16.msra.mxu1 %v7730_v62  ;;  %6810 = vmatprep.subr.bf16.mxu0 %v7784_v46  ;;  %v7808_v62 = vld [vmem:[#allocation8 + $0x2b0] sm:$0xff]  }
 0x137   :  { %2298 = vmatprep.subr.bf16.mxu1 %v7735_v63  ;;  %v7809_v63 = vld [vmem:[#allocation8 + $0x2f8] sm:$0xff]  }
 0x138   :  { %2100 = vmatmul.mubr.bf16.vlgmr.msra.gmra.mrb[0].mxu0 %v191_v58 }
 0x139   :  { %6811 = vmatpush3.bf16.msra.mxu0 %v7786_v51 }
 0x13a   :  { %2299 = vmatpush1.bf16.msra.mxu1 %v7733_v1  ;;  %6812 = vmatprep.subr.bf16.mxu0 %v7788_v53  ;;  %v7810_v1 = vld [vmem:[#allocation8 + $0x270] sm:$0xff]  }
 0x13b   :  { %2300 = vmatprep.subr.bf16.mxu1 %v7738_v2  ;;  %v7811_v2 = vld [vmem:[#allocation8 + $0x400] sm:$0xff]  }
 0x13d   :  { %6813 = vmatpush3.bf16.msra.mxu0 %v7790_v15 }
 0x13e   :  { %2301 = vmatpush1.bf16.msra.mxu1 %v7736_v3  ;;  %6814 = vmatprep.subr.bf16.mxu0 %v7792_v22  ;;  %v7812_v3 = vld [vmem:[#allocation8 + $0x2b8] sm:$0xff]  }
 0x13f   :  { %2302 = vmatprep.subr.bf16.mxu1 %v7741_v4  ;;  %v7814_v4 = vld [vmem:[#allocation8 + $0x278] sm:$0xff]  }
 0x141   :  { %6815 = vmatpush3.bf16.msra.mxu0 %v7794_v55 }
 0x142   :  { %2303 = vmatpush1.bf16.msra.mxu1 %v7739_v38  ;;  %6816 = vmatprep.subr.bf16.mxu0 %v7796_v47  ;;  %v7816_v38 = vld [vmem:[#allocation8 + $0x380] sm:$0xff]  }
 0x143   :  { %2304 = vmatprep.subr.bf16.mxu1 %v7744_v5 }
 0x145   :  { %6817 = vmatpush3.bf16.msra.mxu0 %v7798_v57 }
 0x146   :  { %2305 = vmatpush1.bf16.msra.mxu1 %v7742_v6  ;;  %6818 = vmatprep.subr.bf16.mxu0 %v7800_v48 }
 0x147   :  { %2306 = vmatprep.subr.bf16.mxu1 %v7747_v8 }
 0x149   :  { %6819 = vmatpush3.bf16.msra.mxu0 %v7802_v50 }
 0x14a   :  { %2307 = vmatpush1.bf16.msra.mxu1 %v7745_v9  ;;  %6820 = vmatprep.subr.bf16.mxu0 %v7804_v27 }
 0x14b   :  { %2308 = vmatprep.subr.bf16.mxu1 %v7750_v39 }
 0x14d   :  { %6821 = vmatpush3.bf16.msra.mxu0 %v7806_v60 }
 0x14e   :  { %2309 = vmatpush1.bf16.msra.mxu1 %v7748_v10  ;;  %6822 = vmatprep.subr.bf16.mxu0 %v7808_v62 }
 0x14f   :  { %2310 = vmatprep.subr.bf16.mxu1 %v7753_v11 }
 0x151   :  { %6823 = vmatpush3.bf16.msra.mxu0 %v7810_v1 }
 0x152   :  { %2311 = vmatpush1.bf16.msra.mxu1 %v7751_v12  ;;  %6824 = vmatprep.subr.bf16.mxu0 %v7812_v3 }
 0x153   :  { %2312 = vmatprep.subr.bf16.mxu1 %v7756_v20 }
 0x155   :  { %6825 = vmatpush3.bf16.msra.mxu0 %v7814_v4 }
 0x156   :  { %2313 = vmatpush1.bf16.msra.mxu1 %v7754_v21  ;;  %6854 = vmatprep.subr.bf16.mxu0 %v7816_v38 }
 0x157   :  { %2325 = vmatprep.subr.bf16.mxu1 %v7759_v23 }
 0x159   :  { %2315 = vmatmul.mubr.bf16.vlgmr.msra.gmra.mrb[4].mxu1 %v191_v58  ;;  %v7803_v58 = vld [vmem:[#allocation8 + $0x330] sm:$0xff]  }
 0x15a   :  { %2326 = vmatpush1.bf16.msra.mxu1 %v7757_v24  ;;  %2357 = vmatprep.mubr.bf16.mxu1 %v8226_v0  ;;  %v7778_v0 = vld [vmem:[#allocation6 + $0x8e8] ss:$16 sps:$4 sm:$0xff]  }
 0x15b   :  { %2327 = vmatprep.subr.bf16.mxu1 %v7762_v19 }
 0x15e   :  { %2328 = vmatpush1.bf16.msra.mxu1 %v7760_v25 }
 0x15f   :  { %2329 = vmatprep.subr.bf16.mxu1 %v7765_v28 }
 0x162   :  { %2330 = vmatpush1.bf16.msra.mxu1 %v7763_v7 }
 0x163   :  { %2331 = vmatprep.subr.bf16.mxu1 %v7768_v29 }
 0x166   :  { %2332 = vmatpush1.bf16.msra.mxu1 %v7766_v30 }
 0x167   :  { %2333 = vmatprep.subr.bf16.mxu1 %v7771_v31 }
 0x16a   :  { %2334 = vmatpush1.bf16.msra.mxu1 %v7769_v34 }
 0x16b   :  { %2335 = vmatprep.subr.bf16.mxu1 %v7774_v35 }
 0x16e   :  { %2336 = vmatpush1.bf16.msra.mxu1 %v7772_v36 }
 0x16f   :  { %2337 = vmatprep.subr.bf16.mxu1 %v7777_v37 }
 0x172   :  { %2338 = vmatpush1.bf16.msra.mxu1 %v7775_v32 }
 0x173   :  { %2339 = vmatprep.subr.bf16.mxu1 %v7780_v40 }
 0x176   :  { %2340 = vmatpush1.bf16.msra.mxu1 %v7778_v0 }
 0x177   :  { %6832 = vmatprep.subr.bf16.mxu1 %v7781_v33 }
 0x179   :  { %2358 = vmatmul.mubr.bf16.vlgmr.msra.gmra.mrb[4].mxu1 %v8365_v44  ;;  %v7791_v44 = vld [vmem:[#allocation8 + $0x318] sm:$0xff]  }
 0x17a   :  { %6833 = vmatpush3.bf16.msra.mxu1 %v7782_v41 }
 0x17b   :  { %6834 = vmatprep.subr.bf16.mxu1 %v7783_v45 }
 0x17e   :  { %6835 = vmatpush3.bf16.msra.mxu1 %v7785_v49 }
 0x17f   :  { %6836 = vmatprep.subr.bf16.mxu1 %v7787_v52 }
 0x182   :  { %6837 = vmatpush3.bf16.msra.mxu1 %v7789_v54 }
 0x183   :  { %6838 = vmatprep.subr.bf16.mxu1 %v7791_v44 }
 0x186   :  { %6839 = vmatpush3.bf16.msra.mxu1 %v7793_v16 }
 0x187   :  { %6840 = vmatprep.subr.bf16.mxu1 %v7795_v13 }
 0x18a   :  { %6841 = vmatpush3.bf16.msra.mxu1 %v7797_v56 }
 0x18b   :  { %6842 = vmatprep.subr.bf16.mxu1 %v7799_v14 }
 0x18e   :  { %6843 = vmatpush3.bf16.msra.mxu1 %v7801_v26 }
 0x18f   :  { %6844 = vmatprep.subr.bf16.mxu1 %v7803_v58 }
 0x192   :  { %6845 = vmatpush3.bf16.msra.mxu1 %v7805_v59 }
 0x193   :  { %6846 = vmatprep.subr.bf16.mxu1 %v7807_v17 }
 0x196   :  { %6847 = vmatpush3.bf16.msra.mxu1 %v7809_v63 }
 0x197   :  { %6876 = vmatprep.subr.bf16.mxu1 %v7811_v2 }
 0x20b   :  { %v2101_v5 = vpop.f32.mrb[0].mxu0 }
 0x20c   :  { %v7278_v6 = vadd.f32 %v8568_v42, %v2101_v5  ;;  %v2103_v8 = vpop.f32.mrb[1].mxu0 }
 0x20d   :  { %v7279_v9 = vadd.f32 %v8570_v61, %v2103_v8  ;;  %v2105_v39 = vpop.f32.mrb[2].mxu0 }
 0x20e   :  { %v2368_v10 = vmul.f32 %v7278_v6, %v7278_v6  ;;  %v7280_v11 = vadd.f32 %v8572_v43, %v2105_v39  ;;  %v2107_v12 = vpop.f32.mrb[3].mxu0 }
 0x20f   :  { %v2369_v20 = vmul.f32 %v7279_v9, %v7279_v9  ;;  %v7281_v21 = vadd.f32 %v8574_v18, %v2107_v12 }
 0x210   :  { %v2376_v23 = vmul.f32 %v7278_v6, %v2368_v10  ;;  %v2372_v24 = vmul.f32 %v7280_v11, %v7280_v11 }
 0x211   :  { %v2377_v19 = vmul.f32 %v7279_v9, %v2369_v20  ;;  %v2373_v25 = vmul.f32 %v7281_v21, %v7281_v21 }
 0x212   :  { %v2384_v28 = vmul.f32 0.044715, %v2376_v23  ;;  %v2380_v7 = vmul.f32 %v7280_v11, %v2372_v24 }
 0x213   :  { %v2385_v29 = vmul.f32 0.044715, %v2377_v19  ;;  %v2381_v30 = vmul.f32 %v7281_v21, %v2373_v25 }
 0x214   :  { %v2392_v42 = vadd.f32 %v7278_v6, %v2384_v28  ;;  %v2388_v31 = vmul.f32 0.044715, %v2380_v7 }
 0x215   :  { %v2393_v34 = vadd.f32 %v7279_v9, %v2385_v29  ;;  %v2389_v61 = vmul.f32 0.044715, %v2381_v30 }
 0x216   :  { %v2400_v35 = vmul.f32 0.7978846, %v2392_v42  ;;  %v2396_v36 = vadd.f32 %v7280_v11, %v2388_v31 }
 0x217   :  { %v2401_v37 = vmul.f32 0.7978846, %v2393_v34  ;;  %v2397_v43 = vadd.f32 %v7281_v21, %v2389_v61 }
 0x218   :  { %8077 = vtanh.f32 %v2400_v35  ;;  %v2404_v32 = vmul.f32 0.7978846, %v2396_v36 }
 0x219   :  { %8079 = vtanh.f32 %v2401_v37  ;;  %v2405_v18 = vmul.f32 0.7978846, %v2397_v43 }
 0x21a   :  { %8081 = vtanh.f32 %v2404_v32 }
 0x21b   :  { %8083 = vtanh.f32 %v2405_v18 }
 0x222   :  { %v8078_v40 = vpop.eup %8077 }
 0x223   :  { %v8080_v0 = vpop.eup %8079  ;;  %v2416_v33 = vadd.f32 1.0, %v8078_v40 }
 0x224   :  { %v8082_v41 = vpop.eup %8081  ;;  %v2417_v45 = vadd.f32 1.0, %v8080_v0 }
 0x225   :  { %v8084_v46 = vpop.eup %8083  ;;  %v2424_v49 = vmul.f32 0.5, %v2416_v33  ;;  %v2420_v51 = vadd.f32 1.0, %v8082_v41 }
 0x226   :  { %v2425_v52 = vmul.f32 0.5, %v2417_v45  ;;  %v2421_v53 = vadd.f32 1.0, %v8084_v46 }
 0x227   :  { %v8582_v54 = vmul.f32 %v7278_v6, %v2424_v49  ;;  %v2428_v15 = vmul.f32 0.5, %v2420_v51 }
 0x228   :  { %v8584_v44 = vmul.f32 %v7279_v9, %v2425_v52  ;;  %v2429_v22 = vmul.f32 0.5, %v2421_v53 }
 0x229   :  { %v6494_v16 = vadd.f32 2.2, %v8582_v54  ;;  %v6498_v55 = vmul.f32 -1.442695, %v8582_v54  ;;  %v8588_v13 = vmul.f32 %v7280_v11, %v2428_v15 }
 0x22a   :  { %v6500_v47 = vadd.f32 2.2, %v8584_v44  ;;  %v6504_v56 = vmul.f32 -1.442695, %v8584_v44  ;;  %v8592_v57 = vmul.f32 %v7281_v21, %v2429_v22 }
 0x22b   :  { %v2452_v14 = vmul.f32 2.5, %v6494_v16  ;;  %8085 = vpow2.f32 %v6498_v55  ;;  %v6495_v48 = vadd.f32 2.2, %v8588_v13  ;;  %v6499_v26 = vmul.f32 -1.442695, %v8588_v13 }
 0x22c   :  { %v2747_v50 = vmul.f32 2.5, %v6500_v47  ;;  %8087 = vpow2.f32 %v6504_v56  ;;  %v6501_v58 = vadd.f32 2.2, %v8592_v57  ;;  %v6505_v27 = vmul.f32 -1.442695, %v8592_v57 }
 0x22d   :  { %v8598_v59 = vfloor.f32 %v2452_v14  ;;  %v2453_v60 = vmul.f32 2.5, %v6495_v48  ;;  %8089 = vpow2.f32 %v6499_v26 }
 0x22e   :  { %v8600_v17 = vfloor.f32 %v2747_v50  ;;  %v2748_v62 = vmul.f32 2.5, %v6501_v58  ;;  %8091 = vpow2.f32 %v6505_v27 }
 0x22f   :  { %v2456_v63 = vsub.f32 %v2452_v14, %v8598_v59  ;;  %v8604_v2 = vfloor.f32 %v2453_v60 }
 0x230   :  { %v2751_v1 = vsub.f32 %v2747_v50, %v8600_v17  ;;  %v8606_v39 = vfloor.f32 %v2748_v62  ;;  %vm2787_vm0 = vcmp.eq.f32.partialorder %v8600_v17, 1.0  ;;  %vm2785_vm1 = vcmp.eq.f32.partialorder %v8600_v17, 0.0 }
 0x231   :  { %v2458_v3 = vmul.f32 %v2456_v63, %v2456_v63  ;;  %v2460_v4 = vmul.f32 0.16666667, %v2456_v63  ;;  %v2464_v38 = vmul.f32 0.5, %v2456_v63  ;;  %v2482_v5 = vsub.f32 1.0, %v2456_v63 }
 0x232   :  { %v2753_v6 = vmul.f32 %v2751_v1, %v2751_v1  ;;  %v2759_v8 = vmul.f32 0.5, %v2751_v1  ;;  %v2777_v9 = vsub.f32 1.0, %v2751_v1  ;;  %v2755_v20 = vmul.f32 0.16666667, %v2751_v1 }
 0x233   :  { %v2466_v10 = vsub.f32 0.5, %v2464_v38  ;;  %v6496_v11 = vadd.f32 -1.0, %v2464_v38  ;;  %v2484_v12 = vmul.f32 0.16666667, %v2482_v5  ;;  %v8608_v21 = vmul.f32 %v2460_v4, %v2458_v3 }
 0x234   :  { %v2761_v23 = vsub.f32 0.5, %v2759_v8  ;;  %v6502_v24 = vadd.f32 -1.0, %v2759_v8  ;;  %v2779_v19 = vmul.f32 0.16666667, %v2777_v9  ;;  %v2457_v30 = vsub.f32 %v2453_v60, %v8604_v2 }
 0x235   :  { %v8086_v25 = vpop.eup %8085  ;;  %v2468_v28 = vmul.f32 %v2466_v10, %v2456_v63  ;;  %v2478_v7 = vmul.f32 %v6496_v11, %v2458_v3  ;;  %v2486_v29 = vmul.f32 %v2484_v12, %v2482_v5  ;;  %v8613_v43 = vmul.f32 %v2755_v20, %v2753_v6 }
 0x236   :  { %v8088_v42 = vpop.eup %8087  ;;  %v2518_v31 = vadd.f32 1.0, %v8086_v25  ;;  %v2763_v34 = vmul.f32 %v2761_v23, %v2751_v1  ;;  %v2773_v61 = vmul.f32 %v6502_v24, %v2753_v6  ;;  %v2781_v35 = vmul.f32 %v2779_v19, %v2777_v9 }
 0x237   :  { %v2470_v36 = vadd.f32 0.5, %v2468_v28  ;;  %v8611_v37 = vadd.f32 0.6666667, %v2478_v7  ;;  %v2813_v32 = vadd.f32 1.0, %v8088_v42  ;;  %v8090_v18 = vpop.eup %8089  ;;  %v8615_v40 = vmul.f32 %v2486_v29, %v2482_v5 }
 0x238   :  { %8093 = vrcp.f32 %v2518_v31  ;;  %v2765_v0 = vadd.f32 0.5, %v2763_v34  ;;  %v8617_v33 = vadd.f32 0.6666667, %v2773_v61  ;;  %v8092_v41 = vpop.eup %8091  ;;  %v8619_v46 = vmul.f32 %v2781_v35, %v2777_v9 }
 0x239   :  { %v2472_v45 = vmul.f32 %v2470_v36, %v2456_v63  ;;  %v2459_v49 = vmul.f32 %v2457_v30, %v2457_v30  ;;  %v2461_v51 = vmul.f32 0.16666667, %v2457_v30  ;;  %8095 = vrcp.f32 %v2813_v32 }
 0x23a   :  { %v2767_v52 = vmul.f32 %v2765_v0, %v2751_v1  ;;  %v2465_v53 = vmul.f32 0.5, %v2457_v30  ;;  %v2483_v15 = vsub.f32 1.0, %v2457_v30  ;;  %v2519_v55 = vadd.f32 1.0, %v8090_v18 }
 0x23b   :  { %v8621_v22 = vadd.f32 0.16666667, %v2472_v45  ;;  %v8623_v16 = vmul.f32 %v2461_v51, %v2459_v49  ;;  %v2752_v47 = vsub.f32 %v2748_v62, %v8606_v39  ;;  %v2814_v26 = vadd.f32 1.0, %v8092_v41 }
 0x23c   :  { %v2467_v56 = vsub.f32 0.5, %v2465_v53  ;;  %v6497_v14 = vadd.f32 -1.0, %v2465_v53  ;;  %v2485_v48 = vmul.f32 0.16666667, %v2483_v15  ;;  %v8626_v50 = vadd.f32 0.16666667, %v2767_v52 }
 0x23d   :  { %v2754_v58 = vmul.f32 %v2752_v47, %v2752_v47  ;;  %v2756_v27 = vmul.f32 0.16666667, %v2752_v47  ;;  %v2760_v60 = vmul.f32 0.5, %v2752_v47  ;;  %v2778_v4 = vsub.f32 1.0, %v2752_v47 }
 0x23e   :  { %v2469_v63 = vmul.f32 %v2467_v56, %v2457_v30  ;;  %v2479_v1 = vmul.f32 %v6497_v14, %v2459_v49  ;;  %v2487_v3 = vmul.f32 %v2485_v48, %v2483_v15  ;;  %8097 = vrcp.f32 %v2519_v55 }
 0x23f   :  { %v8630_v38 = vmul.f32 %v2756_v27, %v2754_v58  ;;  %v2762_v62 = vsub.f32 0.5, %v2760_v60  ;;  %v6503_v5 = vadd.f32 -1.0, %v2760_v60  ;;  %v2780_v9 = vmul.f32 0.16666667, %v2778_v4 }
 0x240   :  { %v2471_v6 = vadd.f32 0.5, %v2469_v63  ;;  %v8632_v8 = vadd.f32 0.6666667, %v2479_v1  ;;  %8099 = vrcp.f32 %v2814_v26  ;;  %v8634_v10 = vmul.f32 %v2487_v3, %v2483_v15 }
 0x241   :  { %v2764_v11 = vmul.f32 %v2762_v62, %v2752_v47  ;;  %v2774_v12 = vmul.f32 %v6503_v5, %v2754_v58  ;;  %vm2786_vm2 = vcmp.eq.f32.partialorder %v8606_v39, 0.0  ;;  %v2782_v24 = vmul.f32 %v2780_v9, %v2778_v4  ;;  %v7813_v62 = vld [vmem:[#allocation8 + $0x3c0] sm:$0xff]  }
 0x242   :  { %v8637_v20 = vpop.eup %8093  ;;  %v2473_v23 = vmul.f32 %v2471_v6, %v2457_v30  ;;  %vm2788_vm3 = vcmp.eq.f32.partialorder %v8606_v39, 1.0  ;;  %vm2789_vm7 = vcmp.eq.f32.partialorder %v8600_v17, 2.0  ;;  %vm2790_vm12 = vcmp.eq.f32.partialorder %v8606_v39, 2.0  ;;  %v7815_v6 = vld [vmem:[#allocation8 + $0x408] sm:$0xff]  }
 0x243   :  { %v2766_v19 = vadd.f32 0.5, %v2764_v11  ;;  %v8641_v25 = vadd.f32 0.6666667, %v2774_v12  ;;  %vm2791_vm13 = vcmp.eq.f32.partialorder %v8600_v17, 3.0  ;;  %v8096_v28 = vpop.eup %8095  ;;  %v8645_v7 = vmul.f32 %v2782_v24, %v2778_v4 }
 0x244   :  { %vm2792_vm14 = vcmp.eq.f32.partialorder %v8606_v39, 3.0  ;;  %v2822_v29 = vsel %vm2791_vm13, %v8619_v46, 0.0  ;;  %vm2793_vm15 = vcmp.eq.f32.partialorder %v8600_v17, 4.0  ;;  %vm2794_vm4 = vcmp.eq.f32.partialorder %v8606_v39, 4.0 }
 0x245   :  { %v2768_v30 = vmul.f32 %v2766_v19, %v2752_v47  ;;  %v2824_v42 = vsel %vm2789_vm7, %v8617_v33, %v2822_v29  ;;  %vm2795_vm5 = vcmp.eq.f32.partialorder %v8600_v17, 5.0  ;;  %v2823_v31 = vsel %vm2792_vm14, %v8645_v7, 0.0  ;;  %v7817_v29 = vld [vmem:[#allocation8 + $0x3c8] sm:$0xff]  }
 0x246   :  { %v2826_v34 = vsel %vm2787_vm0, %v8626_v50, %v2824_v42  ;;  %vm2796_vm8 = vcmp.eq.f32.partialorder %v8606_v39, 5.0  ;;  %v2840_v61 = vsel %vm2795_vm5, %v8619_v46, 0.0  ;;  %v2825_v36 = vsel %vm2790_vm12, %v8641_v25, %v2823_v31 }
 0x247   :  { %v8667_v35 = vadd.f32 0.16666667, %v2768_v30  ;;  %v2828_v32 = vsel %vm2785_vm1, %v8613_v43, %v2826_v34  ;;  %v2841_v18 = vsel %vm2796_vm8, %v8645_v7, 0.0  ;;  %v2842_v0 = vsel %vm2793_vm15, %v8617_v33, %v2840_v61  ;;  %v7818_v61 = vld [vmem:[#allocation8 + $0x340] sm:$0xff]  }
 0x248   :  { %v2843_v41 = vsel %vm2794_vm4, %v8641_v25, %v2841_v18  ;;  %v2831_v45 = vsel %vm2793_vm15, %v8619_v46, 0.0  ;;  %v2832_v49 = vsel %vm2794_vm4, %v8645_v7, 0.0  ;;  %v8690_v51 = vpop.eup %8097  ;;  %v2844_v53 = vsel %vm2791_vm13, %v8626_v50, %v2842_v0 }
 0x249   :  { %v2827_v52 = vsel %vm2788_vm3, %v8667_v35, %v2825_v36  ;;  %v2845_v15 = vsel %vm2792_vm14, %v8667_v35, %v2843_v41  ;;  %v2833_v55 = vsel %vm2791_vm13, %v8617_v33, %v2831_v45  ;;  %v2846_v14 = vsel %vm2789_vm7, %v8613_v43, %v2844_v53  ;;  %v7820_v41 = vld [vmem:[#allocation8 + $0x388] sm:$0xff]  }
 0x24a   :  { %v8100_v47 = vpop.eup %8099  ;;  %v2829_v56 = vsel %vm2786_vm2, %v8630_v38, %v2827_v52  ;;  %v2847_v48 = vsel %vm2790_vm12, %v8630_v38, %v2845_v15  ;;  %v2834_v26 = vsel %vm2792_vm14, %v8641_v25, %v2832_v49  ;;  %v2835_v60 = vsel %vm2789_vm7, %v8626_v50, %v2833_v55 }
 0x24b   :  { %v2830_v58 = vpack.c.bf16 %v2829_v56, %v2828_v32  ;;  %v2848_v27 = vpack.c.bf16 %v2847_v48, %v2846_v14  ;;  %v2836_v63 = vsel %vm2790_vm12, %v8667_v35, %v2834_v26  ;;  %v8722_v1 = vadd.f32 0.16666667, %v2473_v23  ;;  %v7821_v14 = vld [vmem:[#allocation8 + $0x3d0] sm:$0xff]   ;;  %v7822_v26 = vld [vmem:[#allocation8 + $0x348] sm:$0xff]  }
 0x24c   :  { %v2837_v3 = vsel %vm2787_vm0, %v8613_v43, %v2835_v60  ;;  %v2838_v4 = vsel %vm2788_vm3, %v8630_v38, %v2836_v63  ;;  %vm2797_vm9 = vcmp.eq.f32.partialorder %v8600_v17, 6.0  ;;  %vm2798_vm10 = vcmp.eq.f32.partialorder %v8606_v39, 6.0 }
 0x24d   :  { %3502 = vmatprep.mubr.bf16.mxu0 %v2830_v58  ;;  %3543 = vmatprep.mubr.bf16.mxu1 %v2848_v27  ;;  %v2839_v5 = vpack.c.bf16 %v2838_v4, %v2837_v3  ;;  %vm9966_vm11 = vcmp.eq.f32.partialorder %v8600_v17, 7.0  ;;  %vm9967_vm6 = vcmp.eq.f32.partialorder %v8606_v39, 7.0  ;;  %vm9969_vm1 = vcmp.eq.f32.partialorder %v8600_v17, 8.0  ;;  %v7823_v58 = vld [vmem:[#allocation8 + $0x418] sm:$0xff]   ;;  %v7824_v3 = vld [vmem:[#allocation8 + $0x390] sm:$0xff]  }
 0x24e   :  { %vm9968_vm0 = vcmp.eq.f32.partialorder %v8606_v39, 8.0  ;;  %vm2803_vm2 = vcmp.eq.f32.partialorder %v8600_v17, 9.0  ;;  %vm2804_vm3 = vcmp.eq.f32.partialorder %v8606_v39, 9.0  ;;  %v2849_v9 = vsel %vm2797_vm9, %v8619_v46, 0.0 }
 0x24f   :  { %3544 = vmatmul.mubr.bf16.vlgmr.msra.gmra.mrb[8].mxu1 %v2839_v5  ;;  %v2867_v11 = vsel %vm9969_vm1, %v8619_v46, 0.0  ;;  %v2868_v12 = vsel %vm9968_vm0, %v8645_v7, 0.0  ;;  %v2876_v23 = vsel %vm2803_vm2, %v8619_v46, 0.0  ;;  %v2877_v24 = vsel %vm2804_vm3, %v8645_v7, 0.0 }
 0x250   :  { %6877 = vmatpush3.bf16.msra.mxu1 %v7813_v62  ;;  %v2878_v19 = vsel %vm9969_vm1, %v8617_v33, %v2876_v23  ;;  %v2819_v30 = vmul.f32 %v8096_v28, %v8584_v44  ;;  %v2820_v42 = vmul.f32 %v8100_v47, %v8592_v57  ;;  %v2879_v31 = vsel %vm9968_vm0, %v8641_v25, %v2877_v24  ;;  %v7819_v28 = vld [vmem:[#allocation8 + $0x410] sm:$0xff]  }
 0x251   :  { %v2880_v34 = vsel %vm9966_vm11, %v8626_v50, %v2878_v19  ;;  %6878 = vmatprep.subr.bf16.mxu1 %v7815_v6  ;;  %v2858_v36 = vsel %vm9966_vm11, %v8619_v46, 0.0  ;;  %v2859_v44 = vsel %vm9967_vm6, %v8645_v7, 0.0  ;;  %vm2492_vm7 = vcmp.eq.f32.partialorder %v8598_v59, 1.0  ;;  %v7825_v6 = vld [vmem:[#allocation8 + $0x3d8] sm:$0xff]   ;;  %v7826_v19 = vld [vmem:[#allocation8 + $0x350] sm:$0xff]  }
 0x252   :  { %v2881_v57 = vsel %vm9967_vm6, %v8667_v35, %v2879_v31  ;;  %v2882_v32 = vsel %vm2797_vm9, %v8613_v43, %v2880_v34  ;;  %v2821_v18 = vpack.c.bf16 %v2820_v42, %v2819_v30  ;;  %v2860_v0 = vsel %vm2797_vm9, %v8617_v33, %v2858_v36 }
 0x253   :  { %vm2490_vm12 = vcmp.eq.f32.partialorder %v8598_v59, 0.0  ;;  %v2883_v45 = vsel %vm2798_vm10, %v8630_v38, %v2881_v57  ;;  %v2861_v49 = vsel %vm2798_vm10, %v8641_v25, %v2859_v44  ;;  %v2862_v52 = vsel %vm2795_vm5, %v8626_v50, %v2860_v0 }
 0x254   :  { %v2869_v53 = vsel %vm9966_vm11, %v8617_v33, %v2867_v11  ;;  %v2850_v15 = vsel %vm2798_vm10, %v8645_v7, 0.0  ;;  %v2884_v55 = vpack.c.bf16 %v2883_v45, %v2882_v32  ;;  %6879 = vmatpush3.bf16.msra.mxu1 %v7817_v29  ;;  %3503 = vmatmul.mubr.bf16.vlgmr.msra.gmra.mrb[4].mxu0 %v2821_v18  ;;  %v2863_v47 = vsel %vm2796_vm8, %v8667_v35, %v2861_v49  ;;  %v7827_v29 = vld [vmem:[#allocation8 + $0x420] sm:$0xff]  }
 0x255   :  { %v2864_v56 = vsel %vm2793_vm15, %v8613_v43, %v2862_v52  ;;  %6855 = vmatpush3.bf16.msra.mxu0 %v7818_v61  ;;  %v2865_v48 = vsel %vm2794_vm4, %v8630_v38, %v2863_v47  ;;  %6880 = vmatprep.subr.bf16.mxu1 %v7819_v28  ;;  %v2870_v27 = vsel %vm9967_vm6, %v8641_v25, %v2868_v12  ;;  %vm2491_vm11 = vcmp.eq.f32.partialorder %v8604_v2, 0.0  ;;  %v8862_v28 = vpop.f32.mrb[4].mxu1  ;;  %v7829_v49 = vld [vmem:[#allocation8 + $0x3e0] sm:$0xff]   ;;  %v7830_v47 = vld [vmem:[#allocation8 + $0x358] sm:$0xff]  }
 0x256   :  { %v2871_v60 = vsel %vm2797_vm9, %v8626_v50, %v2869_v53  ;;  %3625 = vmatprep.mubr.bf16.mxu1 %v2884_v55  ;;  %v2866_v63 = vpack.c.bf16 %v2865_v48, %v2864_v56  ;;  %6856 = vmatprep.subr.bf16.mxu0 %v7820_v41  ;;  %v2872_v4 = vsel %vm2798_vm10, %v8667_v35, %v2870_v27  ;;  %vm2494_vm6 = vcmp.eq.f32.partialorder %v8598_v59, 2.0  ;;  %v8886_v45 = vpop.f32.mrb[5].mxu1  ;;  %v7831_v56 = vld [vmem:[#allocation8 + $0x428] sm:$0xff]  }
 0x257   :  { %v8818_v62 = vsel %vm2795_vm5, %v8613_v43, %v2871_v60  ;;  %v8824_v5 = vsel %vm2796_vm8, %v8630_v38, %v2872_v4  ;;  %vm2495_vm9 = vcmp.eq.f32.partialorder %v8604_v2, 2.0  ;;  %vm2496_vm0 = vcmp.eq.f32.partialorder %v8598_v59, 3.0  ;;  %v8895_v55 = vpop.f32.mrb[6].mxu1  ;;  %v7832_v60 = vld [vmem:[#allocation8 + $0x3a0] sm:$0xff]  }
 0x258   :  { %vm2497_vm1 = vcmp.eq.f32.partialorder %v8604_v2, 3.0  ;;  %3584 = vmatprep.mubr.bf16.mxu0 %v2866_v63  ;;  %6881 = vmatpush3.bf16.msra.mxu1 %v7821_v14  ;;  %v2875_v11 = vpack.c.bf16 %v8824_v5, %v8818_v62  ;;  %v2527_v12 = vsel %vm2496_vm0, %v8615_v40, 0.0  ;;  %v2851_v24 = vsel %vm2795_vm5, %v8617_v33, %v2849_v9  ;;  %v7828_v9 = vld [vmem:[#allocation8 + $0x398] sm:$0xff]   ;;  %v8909_v27 = vpop.f32.mrb[7].mxu1  ;;  %v7848_v5 = vld [vmem:[#allocation8 + $0x8] sm:$0xff]  }
 0x259   :  { %v2528_v23 = vsel %vm2497_vm1, %v8634_v10, 0.0  ;;  %6857 = vmatpush3.bf16.msra.mxu0 %v7822_v26  ;;  %6882 = vmatprep.subr.bf16.mxu1 %v7823_v58  ;;  %vm2493_vm10 = vcmp.eq.f32.partialorder %v8604_v2, 1.0  ;;  %v2529_v30 = vsel %vm2494_vm6, %v8611_v37, %v2527_v12  ;;  %v2852_v31 = vsel %vm2796_vm8, %v8641_v25, %v2850_v15  ;;  %v7834_v12 = vld [vmem:[#allocation8 + $0x360] sm:$0xff]  }
 0x25a   :  { %v2530_v42 = vsel %vm2495_vm9, %v8632_v8, %v2528_v23  ;;  %6858 = vmatprep.subr.bf16.mxu0 %v7824_v3  ;;  %v2531_v34 = vsel %vm2492_vm7, %v8621_v22, %v2529_v30  ;;  %v2853_v36 = vsel %vm2793_vm15, %v8626_v50, %v2851_v24  ;;  %v2854_v44 = vsel %vm2794_vm4, %v8667_v35, %v2852_v31  ;;  %v7833_v3 = vld [vmem:[#allocation8 + $0x3e8] sm:$0xff]   ;;  %v7835_v23 = vld [vmem:[#allocation8 + $0x430] sm:$0xff]  }
 0x25b   :  { %v2532_v61 = vsel %vm2493_vm10, %v8722_v1, %v2530_v42  ;;  %v8867_v57 = vsel %vm2490_vm12, %v8608_v21, %v2531_v34  ;;  %v8877_v18 = vsel %vm2791_vm13, %v8613_v43, %v2853_v36  ;;  %v8882_v0 = vsel %vm2792_vm14, %v8630_v38, %v2854_v44  ;;  %v7836_v30 = vld [vmem:[#allocation8 + $0x3a8] sm:$0xff]  }
 0x25c   :  { %v8872_v32 = vsel %vm2491_vm11, %v8623_v16, %v2532_v61  ;;  %v2370_v41 = vmul.f32 %v8862_v28, %v8862_v28  ;;  %6883 = vmatpush3.bf16.msra.mxu1 %v7825_v6  ;;  %v2857_v53 = vpack.c.bf16 %v8882_v0, %v8877_v18  ;;  %vm2498_vm13 = vcmp.eq.f32.partialorder %v8598_v59, 4.0 }
 0x25d   :  { %v2535_v52 = vpack.c.bf16 %v8872_v32, %v8867_v57  ;;  %v2371_v15 = vmul.f32 %v8886_v45, %v8886_v45  ;;  %6859 = vmatpush3.bf16.msra.mxu0 %v7826_v19  ;;  %6884 = vmatprep.subr.bf16.mxu1 %v7827_v29  ;;  %v8899_v14 = vmul.f32 %v8637_v20, %v8582_v54  ;;  %vm2499_vm14 = vcmp.eq.f32.partialorder %v8604_v2, 4.0  ;;  %v7849_v57 = vld [vmem:[#allocation8 + $0x440] sm:$0xff]   ;;  %v7850_v32 = vld [vmem:[#allocation8 + $0x50] sm:$0xff]  }
 0x25e   :  { %v8903_v48 = vmul.f32 %v8690_v51, %v8588_v13  ;;  %v2378_v26 = vmul.f32 %v2370_v41, %v8862_v28  ;;  %v2374_v58 = vmul.f32 %v8895_v55, %v8895_v55  ;;  %6860 = vmatprep.subr.bf16.mxu0 %v7828_v9  ;;  %vm2500_vm15 = vcmp.eq.f32.partialorder %v8598_v59, 5.0 }
 0x25f   :  { %vm2501_vm4 = vcmp.eq.f32.partialorder %v8604_v2, 5.0  ;;  %v2379_v54 = vmul.f32 %v2371_v15, %v8886_v45  ;;  %v2375_v13 = vmul.f32 %v8909_v27, %v8909_v27  ;;  %vm2502_vm5 = vcmp.eq.f32.partialorder %v8598_v59, 6.0 }
 0x260   :  { %v2386_v51 = vmul.f32 0.044715, %v2378_v26  ;;  %v2382_v63 = vmul.f32 %v2374_v58, %v8895_v55  ;;  %6885 = vmatpush3.bf16.msra.mxu1 %v7829_v49  ;;  %vm2503_vm8 = vcmp.eq.f32.partialorder %v8604_v2, 6.0  ;;  %vm9971_vm11 = vcmp.eq.f32.partialorder %v8598_v59, 7.0  ;;  %v7837_v49 = vld [vmem:[#allocation8 + $0x3f0] sm:$0xff]   ;;  %v7838_v58 = vld [vmem:[#allocation8 + $0x368] sm:$0xff]  }
 0x261   :  { %v2387_v4 = vmul.f32 0.044715, %v2379_v54  ;;  %v2383_v6 = vmul.f32 %v2375_v13, %v8909_v27  ;;  %6861 = vmatpush3.bf16.msra.mxu0 %v7830_v47  ;;  %6886 = vmatprep.subr.bf16.mxu1 %v7831_v56  ;;  %vm9970_vm12 = vcmp.eq.f32.partialorder %v8604_v2, 7.0  ;;  %v8927_v24 = vsel %vm2498_vm13, %v8615_v40, 0.0 }
 0x262   :  { %v2394_v19 = vadd.f32 %v2386_v51, %v8862_v28  ;;  %v2390_v29 = vmul.f32 0.044715, %v2382_v63  ;;  %6862 = vmatprep.subr.bf16.mxu0 %v7832_v60  ;;  %v2563_v42 = vsel %vm9971_vm11, %v8615_v40, 0.0  ;;  %v2564_v31 = vsel %vm9970_vm12, %v8634_v10, 0.0  ;;  %v7839_v60 = vld [vmem:[#allocation8 + $0x438] sm:$0xff]   ;;  %v7840_v63 = vld [vmem:[#allocation8 + $0x3b0] sm:$0xff]  }
 0x263   :  { %v2395_v9 = vadd.f32 %v2387_v4, %v8886_v45  ;;  %v2391_v34 = vmul.f32 0.044715, %v2383_v6  ;;  %v2565_v61 = vsel %vm2502_vm5, %v8611_v37, %v2563_v42  ;;  %v2566_v36 = vsel %vm2503_vm8, %v8632_v8, %v2564_v31  ;;  %v7843_v42 = vld [vmem:[#allocation8 + $0x40] sm:$0xff]   ;;  %v7844_v31 = vld [vmem:[#allocation8 + $0x3b8] sm:$0xff]  }
 0x264   :  { %v2402_v44 = vmul.f32 0.7978846, %v2394_v19  ;;  %v2398_v41 = vadd.f32 %v2390_v29, %v8895_v55  ;;  %6887 = vmatpush3.bf16.msra.mxu1 %v7833_v3  ;;  %v2567_v15 = vsel %vm2500_vm15, %v8621_v22, %v2565_v61  ;;  %v2568_v47 = vsel %vm2501_vm4, %v8722_v1, %v2566_v36  ;;  %v7845_v36 = vld [vmem:[#allocation8] sm:$0xff]  }
 0x265   :  { %v2403_v56 = vmul.f32 0.7978846, %v2395_v9  ;;  %v2399_v26 = vadd.f32 %v2391_v34, %v8909_v27  ;;  %6863 = vmatpush3.bf16.msra.mxu0 %v7834_v12  ;;  %6888 = vmatprep.subr.bf16.mxu1 %v7835_v23  ;;  %v2537_v54 = vsel %vm2499_vm14, %v8634_v10, 0.0  ;;  %v8957_v13 = vsel %vm2498_vm13, %v8608_v21, %v2567_v15  ;;  %v7841_v12 = vld [vmem:[#allocation8 + $0x3f8] sm:$0xff]   ;;  %v7847_v15 = vld [vmem:[#allocation8 + $0x48] sm:$0xff]  }
 0x266   :  { %8101 = vtanh.f32 %v2402_v44  ;;  %v2406_v51 = vmul.f32 0.7978846, %v2398_v41  ;;  %6864 = vmatprep.subr.bf16.mxu0 %v7836_v30  ;;  %v8962_v3 = vsel %vm2499_vm14, %v8623_v16, %v2568_v47  ;;  %vm2805_vm12 = vcmp.eq.f32.partialorder %v8600_v17, 10.0  ;;  %v7842_v30 = vld [vmem:[#allocation8 + $0x370] sm:$0xff]  }
 0x267   :  { %8103 = vtanh.f32 %v2403_v56  ;;  %v2407_v4 = vmul.f32 0.7978846, %v2399_v26  ;;  %vm2806_vm11 = vcmp.eq.f32.partialorder %v8606_v39, 10.0  ;;  %v2885_v6 = vsel %vm2805_vm12, %v8619_v46, 0.0 }
 0x268   :  { %8105 = vtanh.f32 %v2406_v51  ;;  %6889 = vmatpush3.bf16.msra.mxu1 %v7837_v49  ;;  %v2886_v23 = vsel %vm2806_vm11, %v8645_v7, 0.0  ;;  %v2887_v19 = vsel %vm2803_vm2, %v8617_v33, %v2885_v6  ;;  %v2545_v29 = vsel %vm2500_vm15, %v8615_v40, 0.0  ;;  %v7846_v49 = vld [vmem:[#allocation8 + $0x378] sm:$0xff]  }
 0x269   :  { %8107 = vtanh.f32 %v2407_v4  ;;  %6865 = vmatpush3.bf16.msra.mxu0 %v7838_v58  ;;  %6890 = vmatprep.subr.bf16.mxu1 %v7839_v60  ;;  %v2888_v46 = vsel %vm2804_vm3, %v8641_v25, %v2886_v23  ;;  %vm9995_vm11 = vcmp.eq.f32.partialorder %v8600_v17, 8.0  ;;  %v2546_v33 = vsel %vm2501_vm4, %v8634_v10, 0.0 }
 0x26a   :  { %v2889_v7 = vsel %vm9995_vm11, %v8626_v50, %v2887_v19  ;;  %6866 = vmatprep.subr.bf16.mxu0 %v7840_v63  ;;  %vm9996_vm2 = vcmp.eq.f32.partialorder %v8606_v39, 8.0  ;;  %vm9997_vm12 = vcmp.eq.f32.partialorder %v8600_v17, 7.0  ;;  %v2547_v25 = vsel %vm2498_vm13, %v8611_v37, %v2545_v29 }
 0x26b   :  { %v2890_v9 = vsel %vm9996_vm2, %v8667_v35, %v2888_v46  ;;  %v8989_v34 = vsel %vm9997_vm12, %v8613_v43, %v2889_v7  ;;  %v2548_v50 = vsel %vm2499_vm14, %v8632_v8, %v2546_v33  ;;  %vm9998_vm3 = vcmp.eq.f32.partialorder %v8606_v39, 7.0 }
 0x26c   :  { %v9000_v61 = vsel %vm9998_vm3, %v8630_v38, %v2890_v9  ;;  %v2549_v35 = vsel %vm2496_vm0, %v8621_v22, %v2547_v25  ;;  %v2550_v17 = vsel %vm2497_vm1, %v8722_v1, %v2548_v50  ;;  %v2554_v43 = vsel %vm2502_vm5, %v8615_v40, 0.0  ;;  %6891 = vmatpush3.bf16.msra.mxu1 %v7841_v12 }
 0x26d   :  { %v9018_v38 = vsel %vm2494_vm6, %v8608_v21, %v2549_v35  ;;  %v2555_v41 = vsel %vm2503_vm8, %v8634_v10, 0.0  ;;  %6867 = vmatpush3.bf16.msra.mxu0 %v7842_v30  ;;  %6907 = vmatprep.subr.bf16.mxu1 %v7843_v42  ;;  %v9026_v47 = vsel %vm2495_vm9, %v8623_v16, %v2550_v17  ;;  %v2556_v56 = vsel %vm2500_vm15, %v8611_v37, %v2554_v43  ;;  %v7851_v43 = vld [vmem:[#allocation8 + $0x10] sm:$0xff]  }
 0x26e   :  { %v2557_v26 = vsel %vm2501_vm4, %v8632_v8, %v2555_v41  ;;  %6868 = vmatprep.subr.bf16.mxu0 %v7844_v31  ;;  %v2558_v58 = vsel %vm2498_vm13, %v8621_v22, %v2556_v56  ;;  %v2538_v51 = vsel %vm2496_vm0, %v8611_v37, %v8927_v24  ;;  %v2539_v63 = vsel %vm2497_vm1, %v8632_v8, %v2537_v54  ;;  %v7852_v56 = vld [vmem:[#allocation8 + $0x448] sm:$0xff]  }
 0x26f   :  { %v2559_v60 = vsel %vm2499_vm14, %v8722_v1, %v2557_v26  ;;  %3626 = vmatmul.mubr.bf16.vlgmr.msra.gmra.mrb[12].mxu1 %v2875_v11  ;;  %v9053_v4 = vsel %vm2496_vm0, %v8608_v21, %v2558_v58  ;;  %v2540_v24 = vsel %vm2494_vm6, %v8621_v22, %v2538_v51  ;;  %v2541_v54 = vsel %vm2495_vm9, %v8722_v1, %v2539_v63  ;;  %v7853_v26 = vld [vmem:[#allocation8 + $0x58] sm:$0xff]  }
 0x270   :  { %9999 = vst [vmem:[#allocation13_spill] sm:$0xff] %v9053_v4  ;;  %v9058_v6 = vsel %vm2497_vm1, %v8623_v16, %v2559_v60  ;;  %v8102_v62 = vpop.eup %8101  ;;  %6908 = vmatpush3.bf16.msra.mxu1 %v7845_v36  ;;  %4139 = vmatprep.mubr.bf16.mxu1 %v2535_v52  ;;  %v9074_v12 = vsel %vm2492_vm7, %v8608_v21, %v2540_v24  ;;  %vm2506_vm6 = vcmp.eq.f32.partialorder %v8598_v59, 8.0  ;;  %vm2508_vm1 = vcmp.eq.f32.partialorder %v8598_v59, 9.0 }
 0x271   :  { %10000 = vst [vmem:[#allocation14_spill] sm:$0xff] %v9058_v6  ;;  %10001 = vst [vmem:[#allocation15_spill] sm:$0xff] %v9074_v12  ;;  %v9079_v23 = vsel %vm2493_vm10, %v8623_v16, %v2541_v54  ;;  %v8104_v19 = vpop.eup %8103  ;;  %v2418_v29 = vadd.f32 1.0, %v8102_v62  ;;  %6869 = vmatpush3.bf16.msra.mxu0 %v7846_v49  ;;  %6909 = vmatprep.subr.bf16.mxu1 %v7847_v15  ;;  %v9977_v46 = vmov 0.0   ;;  %vm9983_vm0 = vcmp.eq.f32.partialorder %v8604_v2, 8.0 }
 0x272   :  { %10002 = vst [vmem:[#allocation16_spill] sm:$0xff] %v9079_v23  ;;  %v8106_v30 = vpop.eup %8105  ;;  %v2419_v42 = vadd.f32 1.0, %v8104_v19  ;;  %7198 = vmatprep.subr.bf16.mxu0 %v9977_v46  ;;  %vm2509_vm7 = vcmp.eq.f32.partialorder %v8604_v2, 9.0  ;;  %v2581_v7 = vsel %vm2508_vm1, %v8615_v40, 0.0  ;;  %vm10003_vm9 = vcmp.eq.f32.partialorder %v8598_v59, 7.0  ;;  %v7854_v19 = vld [vmem:[#allocation8 + $0x18] sm:$0xff]  }
 0x273   :  { %v8108_v33 = vpop.eup %8107  ;;  %v2426_v31 = vmul.f32 0.5, %v2418_v29  ;;  %v2422_v9 = vadd.f32 1.0, %v8106_v30  ;;  %v2582_v25 = vsel %vm2509_vm7, %v8634_v10, 0.0  ;;  %v2583_v50 = vsel %vm2506_vm6, %v8611_v37, %v2581_v7  ;;  %v7855_v29 = vld [vmem:[#allocation8 + $0x450] sm:$0xff]   ;;  %vm10008_vm14 = vmmov %vm10003_vm9 }
 0x274   :  { %v2427_v35 = vmul.f32 0.5, %v2419_v42  ;;  %v2423_v17 = vadd.f32 1.0, %v8108_v33  ;;  %3585 = vmatmul.mubr.bf16.vlgmr.msra.gmra.mrb[8].mxu0 %v2857_v53  ;;  %6910 = vmatpush3.bf16.msra.mxu1 %v7848_v5  ;;  %v2584_v36 = vsel %vm9983_vm0, %v8632_v8, %v2582_v25  ;;  %v2585_v41 = vsel %vm10003_vm9, %v8621_v22, %v2583_v50  ;;  %v7856_v42 = vld [vmem:[#allocation8 + $0x60] sm:$0xff]  }
 0x275   :  { %v9107_v49 = vmul.f32 %v2426_v31, %v8862_v28  ;;  %v2430_v15 = vmul.f32 0.5, %v2422_v9  ;;  %7199 = vmatpush3.bf16.msra.mxu0 %v7849_v57  ;;  %6911 = vmatprep.subr.bf16.mxu1 %v7850_v32  ;;  %vm10004_vm10 = vcmp.eq.f32.partialorder %v8604_v2, 7.0  ;;  %vm9981_vm13 = vmmov 0  }
 0x276   :  { %v2586_v0 = vsel %vm10004_vm10, %v8722_v1, %v2584_v36  ;;  %v9115_v53 = vmul.f32 %v2427_v35, %v8886_v45  ;;  %v2431_v58 = vmul.f32 0.5, %v2423_v17  ;;  %7200 = vmatprep.subr.bf16.mxu0 %v9977_v46  ;;  %7214 = vmatprep.mubr.msk.bf16.mxu0 %vm9981_vm13, %v9977_v46  ;;  %v2572_v28 = vsel %vm2506_vm6, %v8615_v40, 0.0  ;;  %v7857_v17 = vld [vmem:[#allocation8 + $0x20] sm:$0xff]   ;;  %vm10009_vm11 = vmmov %vm10004_vm10 }
 0x277   :  { %v2573_v60 = vsel %vm9983_vm0, %v8634_v10, 0.0  ;;  %v6650_v51 = vadd.f32 2.2, %v9107_v49  ;;  %v6654_v45 = vmul.f32 -1.442695, %v9107_v49  ;;  %v9129_v63 = vmul.f32 %v2430_v15, %v8895_v55  ;;  %v7859_v15 = vld [vmem:[#allocation8 + $0x68] sm:$0xff]  }
 0x278   :  { %v9134_v24 = vsel %vm2502_vm5, %v8608_v21, %v2585_v41  ;;  %v6728_v54 = vadd.f32 2.2, %v9115_v53  ;;  %v6732_v62 = vmul.f32 -1.442695, %v9115_v53  ;;  %v9139_v5 = vmul.f32 %v2431_v58, %v8909_v27  ;;  %6912 = vmatpush3.bf16.msra.mxu1 %v7851_v43  ;;  %v7858_v41 = vld [vmem:[#allocation8 + $0x458] sm:$0xff]  }
 0x279   :  { %10005 = vst [vmem:[#allocation17_spill] sm:$0xff] %v9134_v24  ;;  %v9144_v55 = vsel %vm2503_vm8, %v8623_v16, %v2586_v0  ;;  %v4316_v57 = vmul.f32 2.5, %v6650_v51  ;;  %8109 = vpow2.f32 %v6654_v45  ;;  %v6651_v32 = vadd.f32 2.2, %v9129_v63  ;;  %7201 = vmatpush3.bf16.msra.mxu0 %v7852_v56  ;;  %6913 = vmatprep.subr.bf16.mxu1 %v7853_v26 }
 0x27a   :  { %10006 = vst [vmem:[#allocation18_spill] sm:$0xff] %v9139_v5  ;;  %10007 = vst [vmem:[#allocation19_spill] sm:$0xff] %v9144_v55  ;;  %v6655_v30 = vmul.f32 -1.442695, %v9129_v63  ;;  %v5250_v7 = vmul.f32 2.5, %v6728_v54  ;;  %8111 = vpow2.f32 %v6732_v62  ;;  %7202 = vmatprep.subr.bf16.mxu0 %v9977_v46  ;;  %v2574_v25 = vsel %vm10008_vm14, %v8611_v37, %v2572_v28 }
 0x27b   :  { %v6729_v27 = vadd.f32 2.2, %v9139_v5  ;;  %v6733_v33 = vmul.f32 -1.442695, %v9139_v5  ;;  %v9151_v31 = vfloor.f32 %v4316_v57  ;;  %v4317_v9 = vmul.f32 2.5, %v6651_v32 }
 0x27c   :  { %8113 = vpow2.f32 %v6655_v30  ;;  %v9156_v50 = vfloor.f32 %v5250_v7  ;;  %6914 = vmatpush3.bf16.msra.mxu1 %v7854_v19  ;;  %v2575_v56 = vsel %vm10009_vm11, %v8632_v8, %v2573_v60  ;;  %v9169_v26 = vsel %vm2502_vm5, %v8621_v22, %v2574_v25  ;;  %v7860_v30 = vld [vmem:[#allocation8 + $0x28] sm:$0xff]   ;;  %v7861_v25 = vld [vmem:[#allocation8 + $0x460] sm:$0xff]  }
 0x27d   :  { %v9158_v35 = vmul.f32 2.5, %v6729_v27  ;;  %8115 = vpow2.f32 %v6733_v33  ;;  %v4320_v36 = vsub.f32 %v4316_v57, %v9151_v31  ;;  %7203 = vmatpush3.bf16.msra.mxu0 %v7855_v29  ;;  %6915 = vmatprep.subr.bf16.mxu1 %v7856_v42  ;;  %v9172_v58 = vfloor.f32 %v4317_v9 }
 0x27e   :  { %v5254_v0 = vsub.f32 %v5250_v7, %v9156_v50  ;;  %7204 = vmatprep.subr.bf16.mxu0 %v9977_v46  ;;  %v9181_v51 = vsel %vm2503_vm8, %v8722_v1, %v2575_v56  ;;  %v7862_v56 = vld [vmem:[#allocation8 + $0x70] sm:$0xff]   ;;  %vm9986_vm5 = vcmp.eq.f32.partialorder %v9151_v31, 3.0  ;;  %vm4358_vm8 = vcmp.eq.f32.partialorder %v9151_v31, 2.0 }
 0x27f   :  { %v9175_v28 = vfloor.f32 %v9158_v35  ;;  %v4322_v60 = vmul.f32 %v4320_v36, %v4320_v36  ;;  %v4324_v45 = vmul.f32 0.16666667, %v4320_v36  ;;  %v4328_v54 = vmul.f32 0.5, %v4320_v36 }
 0x280   :  { %v4346_v62 = vsub.f32 1.0, %v4320_v36  ;;  %v5256_v19 = vmul.f32 %v5254_v0, %v5254_v0  ;;  %v5258_v29 = vmul.f32 0.16666667, %v5254_v0  ;;  %v5262_v57 = vmul.f32 0.5, %v5254_v0  ;;  %6916 = vmatpush3.bf16.msra.mxu1 %v7857_v17 }
 0x281   :  { %v5280_v32 = vsub.f32 1.0, %v5254_v0  ;;  %v9183_v42 = vmul.f32 %v4324_v45, %v4322_v60  ;;  %v4330_v7 = vsub.f32 0.5, %v4328_v54  ;;  %v6652_v27 = vadd.f32 -1.0, %v4328_v54  ;;  %7205 = vmatpush3.bf16.msra.mxu0 %v7858_v41  ;;  %6917 = vmatprep.subr.bf16.mxu1 %v7859_v15 }
 0x282   :  { %v4348_v33 = vmul.f32 0.16666667, %v4346_v62  ;;  %v9185_v43 = vmul.f32 %v5258_v29, %v5256_v19  ;;  %v5264_v52 = vsub.f32 0.5, %v5262_v57  ;;  %v6730_v11 = vadd.f32 -1.0, %v5262_v57  ;;  %7206 = vmatprep.subr.bf16.mxu0 %v9977_v46  ;;  %v7863_v29 = vld [vmem:[#allocation8 + $0x30] sm:$0xff]  }
 0x283   :  { %v5282_v18 = vmul.f32 0.16666667, %v5280_v32  ;;  %v8110_v39 = vpop.eup %8109  ;;  %v4332_v44 = vmul.f32 %v4330_v7, %v4320_v36  ;;  %v4342_v17 = vmul.f32 %v6652_v27, %v4322_v60  ;;  %v9189_v45 = vsub.f32 %v4317_v9, %v9172_v58  ;;  %v7864_v60 = vld [vmem:[#allocation8 + $0x468] sm:$0xff]   ;;  %v7865_v7 = vld [vmem:[#allocation8 + $0x78] sm:$0xff]  }
 0x284   :  { %v4350_v20 = vmul.f32 %v4348_v33, %v4346_v62  ;;  %v8112_v54 = vpop.eup %8111  ;;  %v4382_v24 = vadd.f32 1.0, %v8110_v39  ;;  %v5266_v41 = vmul.f32 %v5264_v52, %v5254_v0  ;;  %v5276_v15 = vmul.f32 %v6730_v11, %v5256_v19  ;;  %6918 = vmatpush3.bf16.msra.mxu1 %v7860_v30  ;;  %v7866_v33 = vld [vmem:[#allocation8 + $0x38] sm:$0xff]  }
 0x285   :  { %v5284_v55 = vmul.f32 %v5282_v18, %v5280_v32  ;;  %v4334_v23 = vadd.f32 0.5, %v4332_v44  ;;  %v9191_v57 = vadd.f32 0.6666667, %v4342_v17  ;;  %v5316_v46 = vadd.f32 1.0, %v8112_v54  ;;  %7207 = vmatpush3.bf16.msra.mxu0 %v7861_v25  ;;  %6919 = vmatprep.subr.bf16.mxu1 %v7862_v56 }
 0x286   :  { %v8114_v12 = vpop.eup %8113  ;;  %v9193_v4 = vmul.f32 %v4350_v20, %v4346_v62  ;;  %8117 = vrcp.f32 %v4382_v24  ;;  %v5268_v27 = vadd.f32 0.5, %v5266_v41  ;;  %v9195_v39 = vadd.f32 0.6666667, %v5276_v15 }
 0x287   :  { %v8116_v9 = vpop.eup %8115  ;;  %v9197_v11 = vmul.f32 %v5284_v55, %v5280_v32  ;;  %v10010_v52 = vmov 0.0   ;;  %v4336_v18 = vmul.f32 %v4334_v23, %v4320_v36  ;;  %8119 = vrcp.f32 %v5316_v46  ;;  %v7867_v36 = vld [vmem:[#allocation8 + $0x470] sm:$0xff]  }
 0x288   :  { %7208 = vmatprep.subr.bf16.mxu0 %v10010_v52  ;;  %v4323_v20 = vmul.f32 %v9189_v45, %v9189_v45  ;;  %v4325_v44 = vmul.f32 0.16666667, %v9189_v45  ;;  %v5270_v62 = vmul.f32 %v5268_v27, %v5254_v0  ;;  %v4329_v19 = vmul.f32 0.5, %v9189_v45  ;;  %6920 = vmatpush3.bf16.msra.mxu1 %v7863_v29  ;;  %v7868_v0 = vld [vmem:[#allocation8 + $0x140] sm:$0xff]  }
 0x289   :  { %v4347_v30 = vsub.f32 1.0, %v9189_v45  ;;  %v4383_v24 = vadd.f32 1.0, %v8114_v12  ;;  %v9206_v55 = vadd.f32 0.16666667, %v4336_v18  ;;  %v9212_v23 = vsub.f32 %v9158_v35, %v9175_v28  ;;  %7209 = vmatpush3.bf16.msra.mxu0 %v7864_v60  ;;  %6921 = vmatprep.subr.bf16.mxu1 %v7865_v7 }
 0x28a   :  { %v9208_v32 = vmul.f32 %v4325_v44, %v4323_v20  ;;  %v5317_v46 = vadd.f32 1.0, %v8116_v9  ;;  %v9215_v12 = vadd.f32 0.16666667, %v5270_v62  ;;  %v4331_v25 = vsub.f32 0.5, %v4329_v19  ;;  %7210 = vmatprep.subr.bf16.mxu0 %v10010_v52  ;;  %v7869_v9 = vld [vmem:[#allocation8 + $0x100] sm:$0xff]   ;;  %v7870_v62 = vld [vmem:[#allocation8 + $0x478] sm:$0xff]  }
 0x28b   :  { %v6653_v56 = vadd.f32 -1.0, %v4329_v19  ;;  %v4349_v17 = vmul.f32 0.16666667, %v4347_v30  ;;  %vm4356_vm2 = vcmp.eq.f32.partialorder %v9151_v31, 1.0  ;;  %8121 = vrcp.f32 %v4383_v24  ;;  %v7871_v19 = vld [vmem:[#allocation8 + $0x148] sm:$0xff]  }
 0x28c   :  { %v5257_v35 = vmul.f32 %v9212_v23, %v9212_v23  ;;  %v5259_v54 = vmul.f32 0.16666667, %v9212_v23  ;;  %v5263_v41 = vmul.f32 0.5, %v9212_v23  ;;  %vm4354_vm12 = vcmp.eq.f32.partialorder %v9151_v31, 0.0  ;;  %6922 = vmatpush3.bf16.msra.mxu1 %v7866_v33 }
 0x28d   :  { %v4333_v15 = vmul.f32 %v4331_v25, %v9189_v45  ;;  %v4343_v29 = vmul.f32 %v6653_v56, %v4323_v20  ;;  %v4351_v60 = vmul.f32 %v4349_v17, %v4347_v30  ;;  %v5281_v7 = vsub.f32 1.0, %v9212_v23  ;;  %7211 = vmatpush3.bf16.msra.mxu0 %v7867_v36  ;;  %6951 = vmatprep.subr.bf16.mxu1 %v7868_v0  ;;  %v7872_v25 = vld [vmem:[#allocation8 + $0xc0] sm:$0xff]  }
 0x28e   :  { %v9226_v27 = vmul.f32 %v5259_v54, %v5257_v35  ;;  %v5265_v18 = vsub.f32 0.5, %v5263_v41  ;;  %v6731_v44 = vadd.f32 -1.0, %v5263_v41  ;;  %8123 = vrcp.f32 %v5317_v46  ;;  %7212 = vmatprep.subr.bf16.mxu0 %v10010_v52  ;;  %v7873_v54 = vld [vmem:[#allocation8 + $0x108] sm:$0xff]   ;;  %v7874_v41 = vld [vmem:[#allocation8 + $0x80] sm:$0xff]  }
 0x28f   :  { %v4335_v24 = vadd.f32 0.5, %v4333_v15  ;;  %v9228_v6 = vadd.f32 0.6666667, %v4343_v29  ;;  %v9230_v5 = vmul.f32 %v4351_v60, %v4347_v30  ;;  %v5283_v20 = vmul.f32 0.16666667, %v5281_v7  ;;  %v7875_v29 = vld [vmem:[#allocation8 + $0x150] sm:$0xff]  }
 0x290   :  { %v5267_v33 = vmul.f32 %v5265_v18, %v9212_v23  ;;  %v5277_v56 = vmul.f32 %v6731_v44, %v5257_v35  ;;  %v10011_v17 = vpack.c.bf16 %v8903_v48, %v8899_v14  ;;  %vm4355_vm3 = vcmp.eq.f32.partialorder %v9172_v58, 0.0  ;;  %v8118_v46 = vpop.eup %8117  ;;  %v7876_v60 = vld [vmem:[#allocation8 + $0xc8] sm:$0xff]  }
 0x291   :  { %vm4357_vm9 = vcmp.eq.f32.partialorder %v9172_v58, 1.0  ;;  %v4337_v36 = vmul.f32 %v4335_v24, %v9189_v45  ;;  %v5285_v30 = vmul.f32 %v5283_v20, %v5281_v7  ;;  %v10012_v0 = vpack.c.bf16 %v8962_v3, %v8957_v13  ;;  %v9245_v14 = vpop.eup %8119  ;;  %7213 = vmatpush3.bf16.msra.mxu0 %v7870_v62  ;;  %v7877_v24 = vld [vmem:[#allocation8 + $0x110] sm:$0xff]  }
 0x292   :  { %4140 = vmatmul.mubr.bf16.vlgmr.msra.gmra.mrb[16].mxu1 %v10011_v17  ;;  %vm4359_vm10 = vcmp.eq.f32.partialorder %v9172_v58, 2.0  ;;  %vm9985_vm14 = vcmp.eq.f32.partialorder %v9172_v58, 3.0  ;;  %v5269_v48 = vadd.f32 0.5, %v5267_v33  ;;  %v9247_v35 = vadd.f32 0.6666667, %v5277_v56  ;;  %6929 = vmatprep.subr.bf16.mxu0 %v7872_v25  ;;  %v7879_v33 = vld [vmem:[#allocation8 + $0x158] sm:$0xff]  }
 0x293   :  { %6952 = vmatpush3.bf16.msra.mxu1 %v7869_v9  ;;  %4221 = vmatprep.mubr.bf16.mxu1 %v10012_v0  ;;  %v4391_v45 = vsel %vm9986_vm5, %v9193_v4, 0.0  ;;  %v4392_v13 = vsel %vm9985_vm14, %v9230_v5, 0.0  ;;  %v9255_v3 = vadd.f32 0.16666667, %v4337_v36  ;;  %v9257_v15 = vmul.f32 %v5285_v30, %v5281_v7 }
 0x294   :  { %6953 = vmatprep.subr.bf16.mxu1 %v7871_v19  ;;  %v4393_v9 = vsel %vm4358_vm8, %v9191_v57, %v4391_v45  ;;  %v4394_v18 = vsel %vm4359_vm10, %v9228_v6, %v4392_v13  ;;  %v5271_v44 = vmul.f32 %v5269_v48, %v9212_v23  ;;  %v9270_v7 = vmul.f32 %v8118_v46, %v9107_v49  ;;  %v7880_v46 = vld [vmem:[#allocation8 + $0xd0] sm:$0xff]   ;;  %v7881_v45 = vld [vmem:[#allocation8 + $0x118] sm:$0xff]  }
 0x295   :  { %v4395_v62 = vsel %vm4356_vm2, %v9206_v55, %v4393_v9  ;;  %vm4362_vm11 = vcmp.eq.f32.partialorder %v9151_v31, 4.0  ;;  %v10013_v19 = vpack.c.bf16 %v9000_v61, %v8989_v34  ;;  %v4396_v20 = vsel %vm4357_vm9, %v9255_v3, %v4394_v18  ;;  %v8122_v49 = vpop.eup %8121  ;;  %v7878_v61 = vld [vmem:[#allocation8 + $0x88] sm:$0xff]   ;;  %v7883_v9 = vld [vmem:[#allocation8 + $0x160] sm:$0xff]  }
 0x296   :  { %v9282_v23 = vsel %vm4354_vm12, %v9183_v42, %v4395_v62  ;;  %vm9984_vm13 = vcmp.eq.f32.partialorder %v9172_v58, 4.0  ;;  %vm4364_vm0 = vcmp.eq.f32.partialorder %v9151_v31, 5.0  ;;  %v9286_v25 = vadd.f32 0.16666667, %v5271_v44 }
 0x297   :  { %7215 = vmatmul.mubr.bf16.vlgmr.msra.gmra.mrb[12].mxu0 %v10013_v19  ;;  %6954 = vmatpush3.bf16.msra.mxu1 %v7873_v54  ;;  %v10014_v34 = vpack.c.bf16 %v9026_v47, %v9018_v38  ;;  %v9294_v56 = vsel %vm4355_vm3, %v9208_v32, %v4396_v20  ;;  %vm4365_vm12 = vcmp.eq.f32.partialorder %v9172_v58, 5.0  ;;  %v4409_v17 = vsel %vm4364_vm0, %v9193_v4, 0.0  ;;  %v7884_v19 = vld [vmem:[#allocation8 + $0xd8] sm:$0xff]  }
 0x298   :  { %6930 = vmatpush3.bf16.msra.mxu0 %v7874_v41  ;;  %6955 = vmatprep.subr.bf16.mxu1 %v7875_v29  ;;  %v4399_v38 = vpack.c.bf16 %v9294_v56, %v9282_v23  ;;  %v9303_v47 = vmul.f32 %v8122_v49, %v9129_v63  ;;  %v4410_v36 = vsel %vm4365_vm12, %v9230_v5, 0.0  ;;  %v4411_v30 = vsel %vm4362_vm11, %v9191_v57, %v4409_v17  ;;  %v9311_v0 = vpop.eup %8123  ;;  %v7906_v23 = vld [vmem:[#allocation8 + $0x180] sm:$0xff]  }
 0x299   :  { %4180 = vmatprep.mubr.bf16.mxu0 %v10014_v34  ;;  %6931 = vmatprep.subr.bf16.mxu0 %v7876_v60  ;;  %v4412_v54 = vsel %vm9984_vm13, %v9228_v6, %v4410_v36  ;;  %v4413_v48 = vsel %vm9986_vm5, %v9206_v55, %v4411_v30  ;;  %v9323_v63 = vsel %vm2500_vm15, %v8608_v21, %v9169_v26  ;;  %v4400_v44 = vsel %vm4362_vm11, %v9193_v4, 0.0  ;;  %v7886_v36 = vld [vmem:[#allocation8 + $0x98] sm:$0xff]   ;;  %v7887_v30 = vld [vmem:[#allocation8 + $0x168] sm:$0xff]   ;;  %v7891_v60 = vld [vmem:[#allocation8 + $0x170] sm:$0xff]  }
 0x29a   :  { %v9329_v41 = vsel %vm2501_vm4, %v8623_v16, %v9181_v51  ;;  %v4390_v13 = vpack.c.bf16 %v9303_v47, %v9270_v7  ;;  %v4414_v29 = vsel %vm9985_vm14, %v9255_v3, %v4412_v54  ;;  %v9339_v26 = vsel %vm4358_vm8, %v9183_v42, %v4413_v48  ;;  %v7882_v51 = vld [vmem:[#allocation8 + $0x90] sm:$0xff]   ;;  %v7940_v7 = vld [vmem:[#allocation8 + $0x208] sm:$0xff]   ;;  %v7941_v47 = vld [vmem:[#allocation8 + $0x558] sm:$0xff]  }
 0x29b   :  { %6956 = vmatpush3.bf16.msra.mxu1 %v7877_v24  ;;  %v9346_v18 = vsel %vm4359_vm10, %v9208_v32, %v4414_v29  ;;  %v4401_v62 = vsel %vm9984_vm13, %v9230_v5, 0.0  ;;  %vm4366_vm15 = vcmp.eq.f32.partialorder %v9151_v31, 6.0  ;;  %v4402_v20 = vsel %vm9986_vm5, %v9191_v57, %v4400_v44 }
 0x29c   :  { %6932 = vmatpush3.bf16.msra.mxu0 %v7878_v61  ;;  %6957 = vmatprep.subr.bf16.mxu1 %v7879_v33  ;;  %v4417_v24 = vpack.c.bf16 %v9346_v18, %v9339_v26  ;;  %v4403_v49 = vsel %vm9985_vm14, %v9228_v6, %v4401_v62  ;;  %vm4367_vm4 = vcmp.eq.f32.partialorder %v9172_v58, 6.0  ;;  %v4404_v34 = vsel %vm4358_vm8, %v9206_v55, %v4402_v20  ;;  %v7885_v33 = vld [vmem:[#allocation8 + $0x120] sm:$0xff]   ;;  %v7889_v20 = vld [vmem:[#allocation8 + $0x128] sm:$0xff]   ;;  %v7943_v26 = vld [vmem:[#allocation8 + $0x210] sm:$0xff]  }
 0x29d   :  { %6933 = vmatprep.subr.bf16.mxu0 %v7880_v46  ;;  %v4405_v61 = vsel %vm4359_vm10, %v9255_v3, %v4403_v49  ;;  %vm4368_vm3 = vcmp.eq.f32.partialorder %v9151_v31, 7.0  ;;  %vm9987_vm13 = vcmp.eq.f32.partialorder %v9172_v58, 7.0  ;;  %v9375_v17 = vsel %vm4356_vm2, %v9183_v42, %v4404_v34  ;;  %v7944_v18 = vld [vmem:[#allocation8 + $0x560] sm:$0xff]  }
 0x29e   :  { %v9380_v46 = vsel %vm4357_vm9, %v9208_v32, %v4405_v61  ;;  %vm4370_vm8 = vcmp.eq.f32.partialorder %v9151_v31, 8.0  ;;  %vm4371_vm10 = vcmp.eq.f32.partialorder %v9172_v58, 8.0  ;;  %vm4372_vm14 = vcmp.eq.f32.partialorder %v9151_v31, 9.0 }
 0x29f   :  { %6958 = vmatpush3.bf16.msra.mxu1 %v7881_v45  ;;  %vm4373_vm2 = vcmp.eq.f32.partialorder %v9172_v58, 9.0  ;;  %v9391_v48 = vsel %vm4366_vm15, %v9193_v4, 0.0  ;;  %v7888_v45 = vld [vmem:[#allocation8 + $0xe0] sm:$0xff]   ;;  %v9396_v29 = vsel %vm4367_vm4, %v9230_v5, 0.0  ;;  %v4445_v44 = vsel %vm4372_vm14, %v9193_v4, 0.0 }
 0x2a0   :  { %6934 = vmatpush3.bf16.msra.mxu0 %v7882_v51  ;;  %6959 = vmatprep.subr.bf16.mxu1 %v7883_v9  ;;  %v4436_v51 = vsel %vm4370_vm8, %v9193_v4, 0.0  ;;  %v4437_v9 = vsel %vm4371_vm10, %v9230_v5, 0.0  ;;  %v4446_v62 = vsel %vm4373_vm2, %v9230_v5, 0.0  ;;  %vm2510_vm9 = vcmp.eq.f32.partialorder %v8598_v59, 10.0 }
 0x2a1   :  { %6935 = vmatprep.subr.bf16.mxu0 %v7884_v19  ;;  %v4447_v19 = vsel %vm4370_vm8, %v9191_v57, %v4445_v44  ;;  %vm2511_vm5 = vcmp.eq.f32.partialorder %v8604_v2, 10.0  ;;  %v4448_v49 = vsel %vm4371_vm10, %v9228_v6, %v4446_v62  ;;  %v2590_v61 = vsel %vm2510_vm9, %v8615_v40, 0.0  ;;  %v7890_v44 = vld [vmem:[#allocation8 + $0xa0] sm:$0xff]  }
 0x2a2   :  { %v4449_v34 = vsel %vm4368_vm3, %v9206_v55, %v4447_v19  ;;  %v2591_v54 = vsel %vm2511_vm5, %v8634_v10, 0.0  ;;  %v2592_v19 = vsel %vm2508_vm1, %v8611_v37, %v2590_v61  ;;  %v4427_v40 = vsel %vm4368_vm3, %v9193_v4, 0.0  ;;  %v7892_v10 = vld [vmem:[#allocation8 + $0xe8] sm:$0xff]  }
 0x2a3   :  { %6960 = vmatpush3.bf16.msra.mxu1 %v7885_v33  ;;  %v4450_v33 = vsel %vm9987_vm13, %v9255_v3, %v4448_v49  ;;  %v9429_v62 = vsel %vm4366_vm15, %v9183_v42, %v4449_v34  ;;  %v2594_v49 = vsel %vm2506_vm6, %v8621_v22, %v2592_v19  ;;  %v4428_v37 = vsel %vm9987_vm13, %v9230_v5, 0.0 }
 0x2a4   :  { %6936 = vmatpush3.bf16.msra.mxu0 %v7886_v36  ;;  %6961 = vmatprep.subr.bf16.mxu1 %v7887_v30  ;;  %v9440_v36 = vsel %vm4367_vm4, %v9208_v32, %v4450_v33  ;;  %v2593_v30 = vsel %vm2509_vm7, %v8632_v8, %v2591_v54  ;;  %vm10015_vm1 = vcmp.eq.f32.partialorder %v8604_v2, 8.0  ;;  %vm10016_vm5 = vcmp.eq.f32.partialorder %v8598_v59, 7.0  ;;  %v7893_v8 = vld [vmem:[#allocation8 + $0x130] sm:$0xff]   ;;  %v7895_v33 = vld [vmem:[#allocation8 + $0x178] sm:$0xff]  }
 0x2a5   :  { %6937 = vmatprep.subr.bf16.mxu0 %v7888_v45  ;;  %v4453_v45 = vpack.c.bf16 %v9440_v36, %v9429_v62  ;;  %v2595_v34 = vsel %vm10015_vm1, %v8722_v1, %v2593_v30  ;;  %v9459_v61 = vsel %vm10016_vm5, %v8608_v21, %v2594_v49  ;;  %v4429_v22 = vsel %vm4366_vm15, %v9191_v57, %v4427_v40  ;;  %v7968_v62 = vld [vmem:[#allocation8 + $0x5d0] sm:$0xff]   ;;  %v7969_v36 = vld [vmem:[#allocation8 + $0x618] sm:$0xff]  }
 0x2a6   :  { %vm10017_vm6 = vcmp.eq.f32.partialorder %v8604_v2, 7.0  ;;  %v4430_v1 = vsel %vm4367_vm4, %v9228_v6, %v4428_v37  ;;  %v4431_v59 = vsel %vm4364_vm0, %v9206_v55, %v4429_v22  ;;  %v4438_v21 = vsel %vm4368_vm3, %v9191_v57, %v4436_v51  ;;  %v7896_v51 = vld [vmem:[#allocation8 + $0xf0] sm:$0xff]   ;;  %v7899_v22 = vld [vmem:[#allocation8 + $0x4c0] sm:$0xff]  }
 0x2a7   :  { %6962 = vmatpush3.bf16.msra.mxu1 %v7889_v20  ;;  %v9467_v54 = vsel %vm10017_vm6, %v8623_v16, %v2595_v34  ;;  %v7894_v20 = vld [vmem:[#allocation8 + $0xa8] sm:$0xff]   ;;  %v4432_v16 = vsel %vm4365_vm12, %v9255_v3, %v4430_v1  ;;  %v9486_v19 = vsel %vm4362_vm11, %v9183_v42, %v4431_v59  ;;  %vm5288_vm7 = vcmp.eq.f32.partialorder %v9156_v50, 0.0  ;;  %v7898_v34 = vld [vmem:[#allocation8 + $0xb0] sm:$0xff]   ;;  %v7900_v59 = vld [vmem:[#allocation8 + $0xf8] sm:$0xff]  }
 0x2a8   :  { %6938 = vmatpush3.bf16.msra.mxu0 %v7890_v44  ;;  %6963 = vmatprep.subr.bf16.mxu1 %v7891_v60  ;;  %v2598_v2 = vpack.c.bf16 %v9467_v54, %v9459_v61  ;;  %vm10018_vm9 = vcmp.eq.f32.partialorder %v9172_v58, 4.0  ;;  %v4439_v44 = vsel %vm9987_vm13, %v9228_v6, %v4437_v9  ;;  %v4440_v40 = vsel %vm4366_vm15, %v9206_v55, %v4438_v21  ;;  %v7897_v9 = vld [vmem:[#allocation8 + $0x138] sm:$0xff]   ;;  %v7973_v54 = vld [vmem:[#allocation8 + $0x620] sm:$0xff]  }
 0x2a9   :  { %6939 = vmatprep.subr.bf16.mxu0 %v7892_v10  ;;  %v9492_v60 = vsel %vm10018_vm9, %v9208_v32, %v4432_v16  ;;  %vm5289_vm1 = vcmp.eq.f32.partialorder %v9175_v28, 0.0  ;;  %v4441_v10 = vsel %vm4367_vm4, %v9255_v3, %v4439_v44  ;;  %v9509_v49 = vsel %vm4364_vm0, %v9183_v42, %v4440_v40  ;;  %v7901_v40 = vld [vmem:[#allocation8 + $0x480] sm:$0xff]   ;;  %v7972_v61 = vld [vmem:[#allocation8 + $0x5d8] sm:$0xff]  }
 0x2aa   :  { %v4435_v30 = vpack.c.bf16 %v9492_v60, %v9486_v19  ;;  %vm9990_vm5 = vcmp.eq.f32.partialorder %v9156_v50, 1.0  ;;  %v9515_v37 = vsel %vm4365_vm12, %v9208_v32, %v4441_v10  ;;  %vm9989_vm15 = vcmp.eq.f32.partialorder %v9175_v28, 1.0  ;;  %v7975_v19 = vld [vmem:[#allocation8 + $0x668] sm:$0xff]   ;;  %v7976_v60 = vld [vmem:[#allocation8 + $0x5e0] sm:$0xff]  }
 0x2ab   :  { %6964 = vmatpush3.bf16.msra.mxu1 %v7893_v8  ;;  %vm9992_vm6 = vcmp.eq.f32.partialorder %v9156_v50, 2.0  ;;  %vm9991_vm4 = vcmp.eq.f32.partialorder %v9175_v28, 2.0  ;;  %vm5294_vm9 = vcmp.eq.f32.partialorder %v9156_v50, 3.0  ;;  %vm9988_vm13 = vcmp.eq.f32.partialorder %v9175_v28, 3.0 }
 0x2ac   :  { %6940 = vmatpush3.bf16.msra.mxu0 %v7894_v20  ;;  %6965 = vmatprep.subr.bf16.mxu1 %v7895_v33  ;;  %v4420_v8 = vsel %vm4364_vm0, %v9191_v57, %v9391_v48  ;;  %v5325_v21 = vsel %vm5294_vm9, %v9197_v11, 0.0  ;;  %v5326_v20 = vsel %vm9988_vm13, %v9257_v15, 0.0  ;;  %v4421_v33 = vsel %vm4365_vm12, %v9228_v6, %v9396_v29 }
 0x2ad   :  { %6941 = vmatprep.subr.bf16.mxu0 %v7896_v51  ;;  %v4422_v16 = vsel %vm4362_vm11, %v9206_v55, %v4420_v8  ;;  %v5327_v48 = vsel %vm9992_vm6, %v9195_v39, %v5325_v21  ;;  %v5328_v51 = vsel %vm9991_vm4, %v9247_v35, %v5326_v20  ;;  %vm10019_vm0 = vcmp.eq.f32.partialorder %v9172_v58, 4.0 }
 0x2ae   :  { %v4423_v44 = vsel %vm10019_vm0, %v9255_v3, %v4421_v33  ;;  %vm10020_vm13 = vcmp.eq.f32.partialorder %v9151_v31, 3.0  ;;  %v5329_v10 = vsel %vm9990_vm5, %v9215_v12, %v5327_v48  ;;  %v5330_v8 = vsel %vm9989_vm15, %v9286_v25, %v5328_v51  ;;  %v7903_v33 = vld [vmem:[#allocation8 + $0x4c8] sm:$0xff]  }
 0x2af   :  { %v9553_v29 = vsel %vm10020_vm13, %v9183_v42, %v4422_v16  ;;  %6966 = vmatpush3.bf16.msra.mxu1 %v7897_v9  ;;  %vm10021_vm11 = vcmp.eq.f32.partialorder %v9172_v58, 3.0  ;;  %v9568_v20 = vmul.f32 %v9245_v14, %v9115_v53  ;;  %v7902_v9 = vld [vmem:[#allocation8 + $0xb8] sm:$0xff]   ;;  %v9573_v16 = vsel %vm5288_vm7, %v9185_v43, %v5329_v10  ;;  %v7904_v53 = vld [vmem:[#allocation8 + $0x1c0] sm:$0xff]   ;;  %v10024_v10 = vld [vmem:[#allocation13_spill] sm:$0xff] }
 0x2b0   :  { %v9564_v21 = vsel %vm10021_vm11, %v9208_v32, %v4423_v44  ;;  %6942 = vmatpush3.bf16.msra.mxu0 %v7898_v34  ;;  %7004 = vmatprep.subr.bf16.mxu1 %v7899_v22  ;;  %v9578_v48 = vsel %vm5289_vm1, %v9226_v27, %v5330_v8  ;;  %vm5296_vm13 = vcmp.eq.f32.partialorder %v9156_v50, 4.0  ;;  %v10022_v34 = vld [vmem:[#allocation18_spill] sm:$0xff]  ;;  %vm5297_vm12 = vcmp.eq.f32.partialorder %v9175_v28, 4.0  ;;  %v10026_v14 = vld [vmem:[#allocation16_spill] sm:$0xff] }
 0x2b1   :  { %6943 = vmatprep.subr.bf16.mxu0 %v7900_v59  ;;  %v9587_v22 = vmul.f32 %v9311_v0, %v10022_v34  ;;  %vm5298_vm7 = vcmp.eq.f32.partialorder %v9156_v50, 5.0  ;;  %v10023_v44 = vld [vmem:[#allocation14_spill] sm:$0xff]  ;;  %vm5299_vm1 = vcmp.eq.f32.partialorder %v9175_v28, 5.0  ;;  %vm5300_vm0 = vcmp.eq.f32.partialorder %v9156_v50, 6.0  ;;  %v7905_v0 = vld [vmem:[#allocation8 + $0x488] sm:$0xff]  }
 0x2b2   :  { %v10025_v8 = vpack.c.bf16 %v10023_v44, %v10024_v10  ;;  %vm5301_vm11 = vcmp.eq.f32.partialorder %v9175_v28, 6.0  ;;  %vm5302_vm15 = vcmp.eq.f32.partialorder %v9156_v50, 7.0  ;;  %vm5303_vm5 = vcmp.eq.f32.partialorder %v9175_v28, 7.0  ;;  %v7908_v10 = vld [vmem:[#allocation8 + $0x1c8] sm:$0xff]  }
 0x2b3   :  { %v9607_v34 = vsel %vm5296_vm13, %v9197_v11, 0.0  ;;  %v9612_v44 = vsel %vm5297_vm12, %v9257_v15, 0.0  ;;  %v5361_v56 = vsel %vm5302_vm15, %v9197_v11, 0.0  ;;  %vm4374_vm4 = vcmp.eq.f32.partialorder %v9151_v31, 10.0 }
 0x2b4   :  { %4222 = vmatmul.mubr.bf16.vlgmr.msra.gmra.mrb[20].mxu1 %v10025_v8  ;;  %6944 = vmatpush3.bf16.msra.mxu0 %v7902_v9  ;;  %vm4375_vm6 = vcmp.eq.f32.partialorder %v9172_v58, 10.0  ;;  %v5363_v9 = vsel %vm5300_vm0, %v9195_v39, %v5361_v56  ;;  %v4454_v8 = vsel %vm4374_vm4, %v9193_v4, 0.0  ;;  %v10027_v4 = vld [vmem:[#allocation15_spill] sm:$0xff] }
 0x2b5   :  { %7005 = vmatpush3.bf16.msra.mxu1 %v7901_v40  ;;  %5071 = vmatprep.mubr.bf16.mxu1 %v4399_v38  ;;  %v5362_v38 = vsel %vm5303_vm5, %v9257_v15, 0.0  ;;  %v7907_v40 = vld [vmem:[#allocation8 + $0x4d0] sm:$0xff]   ;;  %v4455_v59 = vsel %vm4375_vm6, %v9230_v5, 0.0  ;;  %v5365_v51 = vsel %vm5298_vm7, %v9215_v12, %v5363_v9  ;;  %v4456_v56 = vsel %vm4372_vm14, %v9191_v57, %v4454_v8 }
 0x2b6   :  { %7006 = vmatprep.subr.bf16.mxu1 %v7903_v33  ;;  %6973 = vmatprep.subr.bf16.mxu0 %v7904_v53  ;;  %v5364_v33 = vsel %vm5301_vm11, %v9247_v35, %v5362_v38  ;;  %v4457_v38 = vsel %vm4373_vm2, %v9228_v6, %v4455_v59  ;;  %v10028_v1 = vpack.c.bf16 %v10026_v14, %v10027_v4  ;;  %v7909_v5 = vld [vmem:[#allocation8 + $0x490] sm:$0xff]   ;;  %v5343_v57 = vsel %vm5298_vm7, %v9197_v11, 0.0  ;;  %v7911_v59 = vld [vmem:[#allocation8 + $0x4d8] sm:$0xff]  }
 0x2b7   :  { %v5366_v53 = vsel %vm5299_vm1, %v9286_v25, %v5364_v33  ;;  %v9648_v9 = vsel %vm5296_vm13, %v9185_v43, %v5365_v51  ;;  %v4458_v6 = vsel %vm4370_vm8, %v9206_v55, %v4456_v56  ;;  %v10030_v14 = vld [vmem:[#allocation17_spill] sm:$0xff]  ;;  %v7910_v51 = vld [vmem:[#allocation8 + $0x188] sm:$0xff]   ;;  %vm10032_vm14 = vcmp.eq.f32.partialorder %v9172_v58, 7.0 }
 0x2b8   :  { %4181 = vmatmul.mubr.bf16.vlgmr.msra.gmra.mrb[16].mxu0 %v10028_v1  ;;  %v9653_v33 = vsel %vm5297_vm12, %v9226_v27, %v5366_v53  ;;  %v10029_v1 = vld [vmem:[#allocation19_spill] sm:$0xff]  ;;  %v4459_v53 = vsel %vm4371_vm10, %v9255_v3, %v4457_v38  ;;  %v9672_v55 = vsel %vm4368_vm3, %v9183_v42, %v4458_v6  ;;  %v7912_v56 = vld [vmem:[#allocation8 + $0x1d0] sm:$0xff]   ;;  %v5345_v3 = vsel %vm5296_vm13, %v9195_v39, %v5343_v57  ;;  %v7913_v38 = vld [vmem:[#allocation8 + $0x498] sm:$0xff]  }
 0x2b9   :  { %7007 = vmatpush3.bf16.msra.mxu1 %v7905_v0  ;;  %6974 = vmatpush3.bf16.msra.mxu0 %v7906_v23  ;;  %v10031_v0 = vpack.c.bf16 %v10029_v1, %v10030_v14  ;;  %v5369_v8 = vpack.c.bf16 %v9653_v33, %v9648_v9  ;;  %v5344_v23 = vsel %vm5299_vm1, %v9257_v15, 0.0  ;;  %v9680_v4 = vsel %vm10032_vm14, %v9208_v32, %v4459_v53  ;;  %v7921_v53 = vld [vmem:[#allocation8 + $0x4a8] sm:$0xff]   ;;  %v8023_v9 = vld [vmem:[#allocation8 + $0x818] sm:$0xff]   ;;  %v8024_v33 = vld [vmem:[#allocation8 + $0x790] sm:$0xff]  }
 0x2ba   :  { %7008 = vmatprep.subr.bf16.mxu1 %v7907_v40  ;;  %6975 = vmatprep.subr.bf16.mxu0 %v7908_v10  ;;  %v5346_v31 = vsel %vm5297_vm12, %v9247_v35, %v5344_v23  ;;  %v5352_v42 = vsel %vm5300_vm0, %v9197_v11, 0.0  ;;  %v5347_v58 = vsel %vm5294_vm9, %v9215_v12, %v5345_v3  ;;  %vm10033_vm3 = vcmp.eq.f32.partialorder %v9175_v28, 3.0  ;;  %v7925_v40 = vld [vmem:[#allocation8 + $0x4b0] sm:$0xff]  }
 0x2bb   :  { %4262 = vmatprep.mubr.bf16.mxu0 %v10031_v0  ;;  %v5348_v32 = vsel %vm10033_vm3, %v9286_v25, %v5346_v31  ;;  %v5353_v10 = vsel %vm5301_vm11, %v9257_v15, 0.0  ;;  %vm10034_vm8 = vcmp.eq.f32.partialorder %v9156_v50, 2.0  ;;  %vm10035_vm10 = vcmp.eq.f32.partialorder %v9175_v28, 2.0  ;;  %v7915_v0 = vld [vmem:[#allocation8 + $0x4e0] sm:$0xff]   ;;  %v7916_v31 = vld [vmem:[#allocation8 + $0x1d8] sm:$0xff]   ;;  %vm10036_vm6 = vmmov %vm10033_vm3 }
 0x2bc   :  { %v9705_v6 = vsel %vm10034_vm8, %v9185_v43, %v5347_v58  ;;  %v9710_v57 = vsel %vm10035_vm10, %v9226_v27, %v5348_v32  ;;  %v5354_v1 = vsel %vm5298_vm7, %v9195_v39, %v5352_v42  ;;  %v5355_v14 = vsel %vm5299_vm1, %v9247_v35, %v5353_v10  ;;  %vm10037_vm4 = vmmov %vm10033_vm3 }
 0x2bd   :  { %7009 = vmatpush3.bf16.msra.mxu1 %v7909_v5  ;;  %6976 = vmatpush3.bf16.msra.mxu0 %v7910_v51  ;;  %v7914_v5 = vld [vmem:[#allocation8 + $0x190] sm:$0xff]   ;;  %v5356_v23 = vsel %vm5296_vm13, %v9215_v12, %v5354_v1  ;;  %v5357_v3 = vsel %vm5297_vm12, %v9286_v25, %v5355_v14  ;;  %vm5304_vm2 = vcmp.eq.f32.partialorder %v9156_v50, 8.0  ;;  %v5336_v42 = vsel %vm5294_vm9, %v9195_v39, %v9607_v34  ;;  %vm10038_vm13 = vmmov %vm10034_vm8  ;;  %v7917_v34 = vld [vmem:[#allocation8 + $0x4a0] sm:$0xff]  }
 0x2be   :  { %7010 = vmatprep.subr.bf16.mxu1 %v7911_v59  ;;  %6977 = vmatprep.subr.bf16.mxu0 %v7912_v56  ;;  %v9730_v51 = vsel %vm5294_vm9, %v9185_v43, %v5356_v23  ;;  %v9735_v59 = vsel %vm10036_vm6, %v9226_v27, %v5357_v3  ;;  %v5337_v56 = vsel %vm10037_vm4, %v9247_v35, %v9612_v44  ;;  %vm10039_vm12 = vmmov %vm10035_vm10  ;;  %vm5305_vm14 = vcmp.eq.f32.partialorder %v9175_v28, 8.0  ;;  %v7918_v14 = vld [vmem:[#allocation8 + $0x198] sm:$0xff]   ;;  %v7919_v23 = vld [vmem:[#allocation8 + $0x4e8] sm:$0xff]  }
 0x2bf   :  { %v5338_v32 = vsel %vm10038_vm13, %v9215_v12, %v5336_v42  ;;  %v5339_v10 = vsel %vm10039_vm12, %v9286_v25, %v5337_v56  ;;  %vm10040_vm9 = vcmp.eq.f32.partialorder %v9156_v50, 1.0  ;;  %vm10041_vm3 = vcmp.eq.f32.partialorder %v9175_v28, 1.0 }
 0x2c0   :  { %v9757_v1 = vsel %vm10040_vm9, %v9185_v43, %v5338_v32  ;;  %v9762_v44 = vsel %vm10041_vm3, %v9226_v27, %v5339_v10  ;;  %vm5306_vm8 = vcmp.eq.f32.partialorder %v9156_v50, 9.0  ;;  %vm5307_vm10 = vcmp.eq.f32.partialorder %v9175_v28, 9.0 }
 0x2c1   :  { %7011 = vmatpush3.bf16.msra.mxu1 %v7913_v38  ;;  %6978 = vmatpush3.bf16.msra.mxu0 %v7914_v5  ;;  %v5370_v3 = vsel %vm5304_vm2, %v9197_v11, 0.0  ;;  %v5371_v42 = vsel %vm5305_vm14, %v9257_v15, 0.0  ;;  %v5379_v56 = vsel %vm5306_vm8, %v9197_v11, 0.0  ;;  %v7920_v5 = vld [vmem:[#allocation8 + $0x1e0] sm:$0xff]  }
 0x2c2   :  { %7012 = vmatprep.subr.bf16.mxu1 %v7915_v0  ;;  %6979 = vmatprep.subr.bf16.mxu0 %v7916_v31  ;;  %v5380_v0 = vsel %vm5307_vm10, %v9257_v15, 0.0  ;;  %v5381_v32 = vsel %vm5304_vm2, %v9195_v39, %v5379_v56  ;;  %v5372_v10 = vsel %vm5302_vm15, %v9195_v39, %v5370_v3  ;;  %v5373_v38 = vsel %vm5303_vm5, %v9247_v35, %v5371_v42 }
 0x2c3   :  { %v5382_v31 = vsel %vm5305_vm14, %v9247_v35, %v5380_v0  ;;  %v5383_v58 = vsel %vm5302_vm15, %v9215_v12, %v5381_v32  ;;  %v5374_v56 = vsel %vm5300_vm0, %v9215_v12, %v5372_v10  ;;  %v5375_v3 = vsel %vm5301_vm11, %v9286_v25, %v5373_v38  ;;  %v7923_v10 = vld [vmem:[#allocation8 + $0x4f0] sm:$0xff]  }
 0x2c4   :  { %v5384_v42 = vsel %vm5303_vm5, %v9286_v25, %v5382_v31  ;;  %v9807_v0 = vsel %vm5300_vm0, %v9185_v43, %v5383_v58  ;;  %v9812_v32 = vsel %vm5298_vm7, %v9185_v43, %v5374_v56  ;;  %v9817_v38 = vsel %vm5299_vm1, %v9226_v27, %v5375_v3  ;;  %v7924_v56 = vld [vmem:[#allocation8 + $0x1e8] sm:$0xff]  }
 0x2c5   :  { %7013 = vmatpush3.bf16.msra.mxu1 %v7917_v34  ;;  %6980 = vmatpush3.bf16.msra.mxu0 %v7918_v14  ;;  %v7922_v34 = vld [vmem:[#allocation8 + $0x1a0] sm:$0xff]   ;;  %v9822_v31 = vsel %vm5301_vm11, %v9226_v27, %v5384_v42  ;;  %vm5308_vm7 = vcmp.eq.f32.partialorder %v9156_v50, 10.0  ;;  %vm5309_vm0 = vcmp.eq.f32.partialorder %v9175_v28, 10.0  ;;  %v7927_v14 = vld [vmem:[#allocation8 + $0x4f8] sm:$0xff]  }
 0x2c6   :  { %7014 = vmatprep.subr.bf16.mxu1 %v7919_v23  ;;  %6981 = vmatprep.subr.bf16.mxu0 %v7920_v5  ;;  %v5388_v23 = vsel %vm5308_vm7, %v9197_v11, 0.0  ;;  %v5389_v3 = vsel %vm5309_vm0, %v9257_v15, 0.0  ;;  %v7926_v15 = vld [vmem:[#allocation8 + $0x1a8] sm:$0xff]   ;;  %v7932_v50 = vld [vmem:[#allocation8 + $0x1f8] sm:$0xff]  }
 0x2c7   :  { %v5390_v42 = vsel %vm5306_vm8, %v9195_v39, %v5388_v23  ;;  %v5391_v58 = vsel %vm5307_vm10, %v9247_v35, %v5389_v3  ;;  %v7934_v28 = vld [vmem:[#allocation8 + $0x1b8] sm:$0xff]   ;;  %v7939_v23 = vld [vmem:[#allocation8 + $0x510] sm:$0xff]   ;;  %v7948_v3 = vld [vmem:[#allocation8 + $0x528] sm:$0xff]  }
 0x2c8   :  { %v5392_v5 = vsel %vm5304_vm2, %v9215_v12, %v5390_v42  ;;  %v5393_v11 = vsel %vm5305_vm14, %v9286_v25, %v5391_v58  ;;  %v7928_v12 = vld [vmem:[#allocation8 + $0x1f0] sm:$0xff]   ;;  %v7929_v25 = vld [vmem:[#allocation8 + $0x4b8] sm:$0xff]   ;;  %v7937_v58 = vld [vmem:[#allocation8 + $0x200] sm:$0xff]  }
 0x2c9   :  { %7015 = vmatpush3.bf16.msra.mxu1 %v7921_v53  ;;  %6982 = vmatpush3.bf16.msra.mxu0 %v7922_v34  ;;  %v9847_v39 = vsel %vm5302_vm15, %v9185_v43, %v5392_v5  ;;  %v9852_v35 = vsel %vm5303_vm5, %v9226_v27, %v5393_v11  ;;  %v7930_v34 = vld [vmem:[#allocation8 + $0x1b0] sm:$0xff]   ;;  %v7933_v43 = vld [vmem:[#allocation8 + $0x500] sm:$0xff]   ;;  %v7935_v27 = vld [vmem:[#allocation8 + $0x548] sm:$0xff]   ;;  %vm10043_vm5 = vmmov 0  }
 0x2ca   :  { %7016 = vmatprep.subr.bf16.mxu1 %v7923_v10  ;;  %6983 = vmatprep.subr.bf16.mxu0 %v7924_v56  ;;  %v5396_v53 = vpack.c.bf16 %v9852_v35, %v9847_v39  ;;  %v7931_v10 = vld [vmem:[#allocation8 + $0x540] sm:$0xff]   ;;  %v7938_v56 = vld [vmem:[#allocation8 + $0x550] sm:$0xff]  }
 0x2cb   :  { %v7949_v42 = vld [vmem:[#allocation8 + $0x220] sm:$0xff]   ;;  %v7950_v5 = vld [vmem:[#allocation8 + $0x570] sm:$0xff]  }
 0x2cc   :  { %v7951_v11 = vld [vmem:[#allocation8 + $0x530] sm:$0xff]  }
 0x2cd   :  { %7017 = vmatpush3.bf16.msra.mxu1 %v7925_v40  ;;  %6984 = vmatpush3.bf16.msra.mxu0 %v7926_v15  ;;  %v7936_v40 = vld [vmem:[#allocation8 + $0x508] sm:$0xff]  }
 0x2ce   :  { %7018 = vmatprep.subr.bf16.mxu1 %v7927_v14  ;;  %6985 = vmatprep.subr.bf16.mxu0 %v7928_v12  ;;  %v10042_v14 = vpack.c.bf16 %v9329_v41, %v9323_v63  ;;  %v7945_v63 = vld [vmem:[#allocation8 + $0x520] sm:$0xff]   ;;  %v7946_v41 = vld [vmem:[#allocation8 + $0x218] sm:$0xff]   ;;  %v7952_v15 = vld [vmem:[#allocation8 + $0x228] sm:$0xff]  }
 0x2cf   :  { %v7953_v12 = vld [vmem:[#allocation8 + $0x578] sm:$0xff]  }
 0x2d1   :  { %7019 = vmatpush3.bf16.msra.mxu1 %v7929_v25  ;;  %6986 = vmatpush3.bf16.msra.mxu0 %v7930_v34  ;;  %v7954_v25 = vld [vmem:[#allocation8 + $0x538] sm:$0xff]   ;;  %v7955_v34 = vld [vmem:[#allocation8 + $0x230] sm:$0xff]  }
 0x2d2   :  { %7026 = vmatprep.subr.bf16.mxu1 %v7931_v10  ;;  %6987 = vmatprep.subr.bf16.mxu0 %v7932_v50  ;;  %v7956_v10 = vld [vmem:[#allocation8 + $0x640] sm:$0xff]  }
 0x2d3   :  { %v7957_v50 = vld [vmem:[#allocation8 + $0x600] sm:$0xff]  }
 0x2d4   :  { %5072 = vmatmul.mubr.bf16.vlgmr.msra.gmra.mrb[24].mxu1 %v4390_v13  ;;  %v7942_v13 = vld [vmem:[#allocation8 + $0x518] sm:$0xff]  }
 0x2d5   :  { %7027 = vmatpush3.bf16.msra.mxu1 %v7933_v43  ;;  %5112 = vmatprep.mubr.bf16.mxu1 %v4417_v24  ;;  %v7947_v24 = vld [vmem:[#allocation8 + $0x568] sm:$0xff]   ;;  %v7958_v43 = vld [vmem:[#allocation8 + $0x238] sm:$0xff]  }
 0x2d6   :  { %6988 = vmatpush3.bf16.msra.mxu0 %v7934_v28  ;;  %7028 = vmatprep.subr.bf16.mxu1 %v7935_v27  ;;  %v7959_v28 = vld [vmem:[#allocation8 + $0x648] sm:$0xff]   ;;  %v7960_v27 = vld [vmem:[#allocation8 + $0x5c0] sm:$0xff]  }
 0x2d7   :  { %7218 = vmatprep.subr.bf16.mxu0 %v10010_v52 }
 0x2d9   :  { %4263 = vmatmul.mubr.bf16.vlgmr.msra.gmra.mrb[20].mxu0 %v10042_v14  ;;  %7029 = vmatpush3.bf16.msra.mxu1 %v7936_v40  ;;  %v10044_v40 = vpack.c.bf16 %v9380_v46, %v9375_v17  ;;  %v7963_v14 = vld [vmem:[#allocation8 + $0x650] sm:$0xff]   ;;  %v7966_v17 = vld [vmem:[#allocation8 + $0x588] sm:$0xff]   ;;  %v7967_v46 = vld [vmem:[#allocation8 + $0x658] sm:$0xff]  }
 0x2da   :  { %7219 = vmatpush3.bf16.msra.mxu0 %v7937_v58  ;;  %7030 = vmatprep.subr.bf16.mxu1 %v7938_v56  ;;  %v7961_v58 = vld [vmem:[#allocation8 + $0x608] sm:$0xff]   ;;  %v7962_v56 = vld [vmem:[#allocation8 + $0x580] sm:$0xff]  }
 0x2db   :  { %7220 = vmatprep.subr.bf16.mxu0 %v10010_v52  ;;  %7234 = vmatprep.mubr.msk.bf16.mxu0 %vm10043_vm5, %v10010_v52 }
 0x2dd   :  { %7031 = vmatpush3.bf16.msra.mxu1 %v7939_v23  ;;  %v7964_v23 = vld [vmem:[#allocation8 + $0x5c8] sm:$0xff]  }
 0x2de   :  { %7221 = vmatpush3.bf16.msra.mxu0 %v7940_v7  ;;  %7032 = vmatprep.subr.bf16.mxu1 %v7941_v47  ;;  %v7965_v7 = vld [vmem:[#allocation8 + $0x610] sm:$0xff]   ;;  %v7971_v47 = vld [vmem:[#allocation8 + $0x660] sm:$0xff]  }
 0x2df   :  { %7222 = vmatprep.subr.bf16.mxu0 %v10010_v52 }
 0x2e1   :  { %7033 = vmatpush3.bf16.msra.mxu1 %v7942_v13  ;;  %v7978_v13 = vld [vmem:[#allocation8 + $0x5a0] sm:$0xff]  }
 0x2e2   :  { %7223 = vmatpush3.bf16.msra.mxu0 %v7943_v26  ;;  %7034 = vmatprep.subr.bf16.mxu1 %v7944_v18  ;;  %v7979_v26 = vld [vmem:[#allocation8 + $0x670] sm:$0xff]   ;;  %v7980_v18 = vld [vmem:[#allocation8 + $0x5e8] sm:$0xff]  }
 0x2e3   :  { %7224 = vmatprep.subr.bf16.mxu0 %v10010_v52 }
 0x2e5   :  { %7035 = vmatpush3.bf16.msra.mxu1 %v7945_v63  ;;  %v7981_v63 = vld [vmem:[#allocation8 + $0x630] sm:$0xff]  }
 0x2e6   :  { %7225 = vmatpush3.bf16.msra.mxu0 %v7946_v41  ;;  %7036 = vmatprep.subr.bf16.mxu1 %v7947_v24  ;;  %v7982_v41 = vld [vmem:[#allocation8 + $0x5a8] sm:$0xff]   ;;  %v7983_v24 = vld [vmem:[#allocation8 + $0x678] sm:$0xff]  }
 0x2e7   :  { %7226 = vmatprep.subr.bf16.mxu0 %v10010_v52 }
 0x2e9   :  { %7037 = vmatpush3.bf16.msra.mxu1 %v7948_v3  ;;  %v7984_v3 = vld [vmem:[#allocation8 + $0x5f0] sm:$0xff]  }
 0x2ea   :  { %7227 = vmatpush3.bf16.msra.mxu0 %v7949_v42  ;;  %7038 = vmatprep.subr.bf16.mxu1 %v7950_v5  ;;  %v7985_v42 = vld [vmem:[#allocation8 + $0x638] sm:$0xff]   ;;  %v7986_v5 = vld [vmem:[#allocation8 + $0x5b0] sm:$0xff]  }
 0x2eb   :  { %7228 = vmatprep.subr.bf16.mxu0 %v10010_v52 }
 0x2ed   :  { %7039 = vmatpush3.bf16.msra.mxu1 %v7951_v11  ;;  %v7987_v11 = vld [vmem:[#allocation8 + $0x700] sm:$0xff]  }
 0x2ee   :  { %7229 = vmatpush3.bf16.msra.mxu0 %v7952_v15  ;;  %7040 = vmatprep.subr.bf16.mxu1 %v7953_v12  ;;  %v7988_v15 = vld [vmem:[#allocation8 + $0x5f8] sm:$0xff]   ;;  %v7989_v12 = vld [vmem:[#allocation8 + $0x6c0] sm:$0xff]  }
 0x2ef   :  { %7230 = vmatprep.subr.bf16.mxu0 %v10010_v52 }
 0x2f1   :  { %7041 = vmatpush3.bf16.msra.mxu1 %v7954_v25  ;;  %v7990_v25 = vld [vmem:[#allocation8 + $0x5b8] sm:$0xff]  }
 0x2f2   :  { %7231 = vmatpush3.bf16.msra.mxu0 %v7955_v34  ;;  %7070 = vmatprep.subr.bf16.mxu1 %v7956_v10  ;;  %v7991_v34 = vld [vmem:[#allocation8 + $0x708] sm:$0xff]   ;;  %v10045_v10 = vpack.c.bf16 %v9515_v37, %v9509_v49  ;;  %v7997_v37 = vld [vmem:[#allocation8 + $0x718] sm:$0xff]  }
 0x2f3   :  { %7232 = vmatprep.subr.bf16.mxu0 %v10010_v52  ;;  %v7996_v49 = vld [vmem:[#allocation8 + $0x688] sm:$0xff]  }
 0x2f4   :  { %5113 = vmatmul.mubr.bf16.vlgmr.msra.gmra.mrb[28].mxu1 %v10044_v40  ;;  %v10047_v40 = vpack.c.bf16 %v9564_v21, %v9553_v29  ;;  %v8001_v29 = vld [vmem:[#allocation8 + $0x6e0] sm:$0xff]   ;;  %v8002_v21 = vld [vmem:[#allocation8 + $0x698] sm:$0xff]  }
 0x2f5   :  { %7071 = vmatpush3.bf16.msra.mxu1 %v7957_v50  ;;  %5194 = vmatprep.mubr.bf16.mxu1 %v4453_v45  ;;  %v7970_v45 = vld [vmem:[#allocation8 + $0x590] sm:$0xff]   ;;  %v10046_v50 = vpack.c.bf16 %v9578_v48, %v9573_v16  ;;  %v7998_v16 = vld [vmem:[#allocation8 + $0x6d8] sm:$0xff]  }
 0x2f6   :  { %7233 = vmatpush3.bf16.msra.mxu0 %v7958_v43  ;;  %7072 = vmatprep.subr.bf16.mxu1 %v7959_v28  ;;  %v7992_v43 = vld [vmem:[#allocation8 + $0x6c8] sm:$0xff]   ;;  %v7993_v28 = vld [vmem:[#allocation8 + $0x680] sm:$0xff]   ;;  %v7999_v48 = vld [vmem:[#allocation8 + $0x690] sm:$0xff]  }
 0x2f7   :  { %7048 = vmatprep.subr.bf16.mxu0 %v7960_v27  ;;  %v7994_v27 = vld [vmem:[#allocation8 + $0x710] sm:$0xff]  }
 0x2f9   :  { %7235 = vmatmul.mubr.bf16.vlgmr.msra.gmra.mrb[12].mxu0 %v2598_v2  ;;  %7073 = vmatpush3.bf16.msra.mxu1 %v7961_v58  ;;  %v7974_v2 = vld [vmem:[#allocation8 + $0x598] sm:$0xff]   ;;  %v7995_v58 = vld [vmem:[#allocation8 + $0x6d0] sm:$0xff]  }
 0x2fa   :  { %7049 = vmatpush3.bf16.msra.mxu0 %v7962_v56  ;;  %5153 = vmatprep.mubr.bf16.mxu0 %v4435_v30  ;;  %v7977_v30 = vld [vmem:[#allocation8 + $0x628] sm:$0xff]   ;;  %v8000_v56 = vld [vmem:[#allocation8 + $0x720] sm:$0xff]  }
 0x2fb   :  { %7074 = vmatprep.subr.bf16.mxu1 %v7963_v14  ;;  %7050 = vmatprep.subr.bf16.mxu0 %v7964_v23  ;;  %v8003_v14 = vld [vmem:[#allocation8 + $0x728] sm:$0xff]  }
 0x2fc   :  { %v8004_v23 = vld [vmem:[#allocation8 + $0x6e8] sm:$0xff]  }
 0x2fd   :  { %7075 = vmatpush3.bf16.msra.mxu1 %v7965_v7  ;;  %v8005_v7 = vld [vmem:[#allocation8 + $0x6a0] sm:$0xff]  }
 0x2fe   :  { %7051 = vmatpush3.bf16.msra.mxu0 %v7966_v17  ;;  %7076 = vmatprep.subr.bf16.mxu1 %v7967_v46  ;;  %v8006_v17 = vld [vmem:[#allocation8 + $0x730] sm:$0xff]  }
 0x2ff   :  { %7052 = vmatprep.subr.bf16.mxu0 %v7968_v62 }
 0x301   :  { %7077 = vmatpush3.bf16.msra.mxu1 %v7969_v36 }
 0x302   :  { %7053 = vmatpush3.bf16.msra.mxu0 %v7970_v45  ;;  %7078 = vmatprep.subr.bf16.mxu1 %v7971_v47  ;;  %v8007_v47 = vld [vmem:[#allocation8 + $0x6f0] sm:$0xff]  }
 0x303   :  { %7054 = vmatprep.subr.bf16.mxu0 %v7972_v61 }
 0x305   :  { %7079 = vmatpush3.bf16.msra.mxu1 %v7973_v54  ;;  %v8008_v54 = vld [vmem:[#allocation8 + $0x6a8] sm:$0xff]  }
 0x306   :  { %7055 = vmatpush3.bf16.msra.mxu0 %v7974_v2  ;;  %7080 = vmatprep.subr.bf16.mxu1 %v7975_v19  ;;  %v8009_v2 = vld [vmem:[#allocation8 + $0x738] sm:$0xff]  }
 0x307   :  { %7056 = vmatprep.subr.bf16.mxu0 %v7976_v60 }
 0x309   :  { %7081 = vmatpush3.bf16.msra.mxu1 %v7977_v30 }
 0x30a   :  { %7057 = vmatpush3.bf16.msra.mxu0 %v7978_v13  ;;  %7082 = vmatprep.subr.bf16.mxu1 %v7979_v26  ;;  %v8010_v13 = vld [vmem:[#allocation8 + $0x6f8] sm:$0xff]  }
 0x30b   :  { %7058 = vmatprep.subr.bf16.mxu0 %v7980_v18 }
 0x30d   :  { %7083 = vmatpush3.bf16.msra.mxu1 %v7981_v63  ;;  %v8011_v63 = vld [vmem:[#allocation8 + $0x6b0] sm:$0xff]  }
 0x30e   :  { %7059 = vmatpush3.bf16.msra.mxu0 %v7982_v41  ;;  %7084 = vmatprep.subr.bf16.mxu1 %v7983_v24  ;;  %v8012_v41 = vld [vmem:[#allocation8 + $0x800] sm:$0xff]  }
 0x30f   :  { %7060 = vmatprep.subr.bf16.mxu0 %v7984_v3 }
 0x311   :  { %7085 = vmatpush3.bf16.msra.mxu1 %v7985_v42 }
 0x312   :  { %7061 = vmatpush3.bf16.msra.mxu0 %v7986_v5  ;;  %7101 = vmatprep.subr.bf16.mxu1 %v7987_v11  ;;  %v8013_v5 = vld [vmem:[#allocation8 + $0x7c0] sm:$0xff]  }
 0x313   :  { %7062 = vmatprep.subr.bf16.mxu0 %v7988_v15  ;;  %v8014_v15 = vld [vmem:[#allocation8 + $0x6b8] sm:$0xff]  }
 0x314   :  { %5195 = vmatmul.mubr.bf16.vlgmr.msra.gmra.mrb[32].mxu1 %v10045_v10  ;;  %v8017_v10 = vld [vmem:[#allocation8 + $0x7c8] sm:$0xff]  }
 0x315   :  { %7102 = vmatpush3.bf16.msra.mxu1 %v7989_v12  ;;  %6005 = vmatprep.mubr.bf16.mxu1 %v10046_v50  ;;  %v8015_v12 = vld [vmem:[#allocation8 + $0x808] sm:$0xff]   ;;  %v8018_v50 = vld [vmem:[#allocation8 + $0x740] sm:$0xff]  }
 0x316   :  { %7063 = vmatpush3.bf16.msra.mxu0 %v7990_v25  ;;  %7103 = vmatprep.subr.bf16.mxu1 %v7991_v34  ;;  %v8016_v25 = vld [vmem:[#allocation8 + $0x780] sm:$0xff]   ;;  %v10048_v34 = vpack.c.bf16 %v9587_v22, %v9568_v20  ;;  %v10050_v20 = vpack.c.bf16 %v9710_v57, %v9705_v6  ;;  %v8022_v22 = vld [vmem:[#allocation8 + $0x748] sm:$0xff]  }
 0x317   :  { %7238 = vmatprep.subr.bf16.mxu0 %v10010_v52  ;;  %v8031_v6 = vld [vmem:[#allocation8 + $0x828] sm:$0xff]   ;;  %v8032_v57 = vld [vmem:[#allocation8 + $0x7a0] sm:$0xff]  }
 0x319   :  { %5154 = vmatmul.mubr.bf16.vlgmr.msra.gmra.mrb[24].mxu0 %v10047_v40  ;;  %7104 = vmatpush3.bf16.msra.mxu1 %v7992_v43  ;;  %v8019_v43 = vld [vmem:[#allocation8 + $0x810] sm:$0xff]  }
 0x31a   :  { %7239 = vmatpush3.bf16.msra.mxu0 %v7993_v28  ;;  %7105 = vmatprep.subr.bf16.mxu1 %v7994_v27  ;;  %v8020_v28 = vld [vmem:[#allocation8 + $0x788] sm:$0xff]   ;;  %v10049_v27 = vpack.c.bf16 %v9680_v4, %v9672_v55  ;;  %v8021_v40 = vld [vmem:[#allocation8 + $0x7d0] sm:$0xff]   ;;  %v8028_v55 = vld [vmem:[#allocation8 + $0x798] sm:$0xff]  }
 0x31b   :  { %7240 = vmatprep.subr.bf16.mxu0 %v10010_v52  ;;  %7254 = vmatprep.mubr.msk.bf16.mxu0 %vm10043_vm5, %v10010_v52  ;;  %v8029_v4 = vld [vmem:[#allocation8 + $0x7e0] sm:$0xff]  }
 0x31d   :  { %7106 = vmatpush3.bf16.msra.mxu1 %v7995_v58  ;;  %v8026_v58 = vld [vmem:[#allocation8 + $0x750] sm:$0xff]  }
 0x31e   :  { %7241 = vmatpush3.bf16.msra.mxu0 %v7996_v49  ;;  %7107 = vmatprep.subr.bf16.mxu1 %v7997_v37  ;;  %v8027_v49 = vld [vmem:[#allocation8 + $0x820] sm:$0xff]   ;;  %v8030_v37 = vld [vmem:[#allocation8 + $0x758] sm:$0xff]  }
 0x31f   :  { %7242 = vmatprep.subr.bf16.mxu0 %v10010_v52 }
 0x321   :  { %7108 = vmatpush3.bf16.msra.mxu1 %v7998_v16  ;;  %v8033_v16 = vld [vmem:[#allocation8 + $0x7e8] sm:$0xff]  }
 0x322   :  { %7243 = vmatpush3.bf16.msra.mxu0 %v7999_v48  ;;  %7109 = vmatprep.subr.bf16.mxu1 %v8000_v56  ;;  %v6848_v46 = vpop.f32.mrb[8].mxu1  ;;  %v8034_v48 = vld [vmem:[#allocation8 + $0x760] sm:$0xff]   ;;  %v8035_v56 = vld [vmem:[#allocation8 + $0x830] sm:$0xff]  }
 0x323   :  { %7244 = vmatprep.subr.bf16.mxu0 %v10010_v52  ;;  %v6849_v62 = vpop.f32.mrb[9].mxu1 }
 0x324   :  { %v6850_v36 = vadd.f32 %v6849_v62, %v6848_v46  ;;  %v6851_v45 = vpop.f32.mrb[10].mxu1  ;;  %v8038_v62 = vld [vmem:[#allocation8 + $0x768] sm:$0xff]  }
 0x325   :  { %7110 = vmatpush3.bf16.msra.mxu1 %v8001_v29  ;;  %v6852_v61 = vpop.f32.mrb[11].mxu1 }
 0x326   :  { %7245 = vmatpush3.bf16.msra.mxu0 %v8002_v21  ;;  %7111 = vmatprep.subr.bf16.mxu1 %v8003_v14  ;;  %v6853_v19 = vadd.f32 %v6852_v61, %v6851_v45  ;;  %v8036_v21 = vld [vmem:[#allocation8 + $0x7a8] sm:$0xff]  }
 0x327   :  { %7246 = vmatprep.subr.bf16.mxu0 %v10010_v52  ;;  %v6826_v60 = vpop.f32.mrb[4].mxu0 }
 0x328   :  { %v6827_v30 = vpop.f32.mrb[5].mxu0 }
 0x329   :  { %7112 = vmatpush3.bf16.msra.mxu1 %v8004_v23  ;;  %v6828_v26 = vadd.f32 %v6827_v30, %v6826_v60  ;;  %v6829_v18 = vpop.f32.mrb[6].mxu0  ;;  %v8042_v30 = vld [vmem:[#allocation8 + $0x770] sm:$0xff]  }
 0x32a   :  { %7247 = vmatpush3.bf16.msra.mxu0 %v8005_v7  ;;  %7113 = vmatprep.subr.bf16.mxu1 %v8006_v17  ;;  %v6830_v24 = vpop.f32.mrb[7].mxu0  ;;  %v8037_v17 = vld [vmem:[#allocation8 + $0x7f0] sm:$0xff]  }
 0x32b   :  { %7248 = vmatprep.subr.bf16.mxu0 %v10010_v52  ;;  %v9905_v3 = vadd.f32 %v6850_v36, %v6828_v26  ;;  %v6831_v42 = vadd.f32 %v6830_v24, %v6829_v18  ;;  %v8039_v36 = vld [vmem:[#allocation8 + $0x838] sm:$0xff]  }
 0x32c   :  { %v8043_v26 = vld [vmem:[#allocation8 + $0x7b8] sm:$0xff]  }
 0x32d   :  { %7114 = vmatpush3.bf16.msra.mxu1 %v8007_v47  ;;  %v9907_v11 = vadd.f32 %v6853_v19, %v6831_v42  ;;  %v8040_v47 = vld [vmem:[#allocation8 + $0x7b0] sm:$0xff]   ;;  %v8044_v24 = vld [vmem:[#allocation8 + $0x778] sm:$0xff]  }
 0x32e   :  { %7249 = vmatpush3.bf16.msra.mxu0 %v8008_v54  ;;  %7115 = vmatprep.subr.bf16.mxu1 %v8009_v2  ;;  %v8041_v2 = vld [vmem:[#allocation8 + $0x7f8] sm:$0xff]  }
 0x32f   :  { %7250 = vmatprep.subr.bf16.mxu0 %v10010_v52 }
 0x331   :  { %7116 = vmatpush3.bf16.msra.mxu1 %v8010_v13 }
 0x332   :  { %7251 = vmatpush3.bf16.msra.mxu0 %v8011_v63  ;;  %7145 = vmatprep.subr.bf16.mxu1 %v8012_v41 }
 0x333   :  { %7252 = vmatprep.subr.bf16.mxu0 %v10010_v52 }
 0x334   :  { %6006 = vmatmul.mubr.bf16.vlgmr.msra.gmra.mrb[36].mxu1 %v10048_v34  ;;  %v8047_v34 = vld [vmem:[#allocation8 + $0x888] sm:$0xff]  }
 0x335   :  { %7146 = vmatpush3.bf16.msra.mxu1 %v8013_v5  ;;  %6087 = vmatprep.mubr.bf16.mxu1 %v5369_v8  ;;  %v8025_v8 = vld [vmem:[#allocation8 + $0x7d8] sm:$0xff]   ;;  %v8045_v5 = vld [vmem:[#allocation8 + $0x880] sm:$0xff]  }
 0x336   :  { %7253 = vmatpush3.bf16.msra.mxu0 %v8014_v15  ;;  %7147 = vmatprep.subr.bf16.mxu1 %v8015_v12  ;;  %v10051_v15 = vpack.c.bf16 %v9735_v59, %v9730_v51  ;;  %v8050_v51 = vld [vmem:[#allocation8 + $0x850] sm:$0xff]   ;;  %v8051_v59 = vld [vmem:[#allocation8 + $0x898] sm:$0xff]  }
 0x337   :  { %7123 = vmatprep.subr.bf16.mxu0 %v8016_v25  ;;  %v8046_v25 = vld [vmem:[#allocation8 + $0x840] sm:$0xff]  }
 0x339   :  { %7255 = vmatmul.mubr.bf16.vlgmr.msra.gmra.mrb[12].mxu0 %v10049_v27  ;;  %7148 = vmatpush3.bf16.msra.mxu1 %v8017_v10  ;;  %v8048_v10 = vld [vmem:[#allocation8 + $0x848] sm:$0xff]   ;;  %v8054_v27 = vld [vmem:[#allocation8 + $0x860] sm:$0xff]  }
 0x33a   :  { %7124 = vmatpush3.bf16.msra.mxu0 %v8018_v50  ;;  %6046 = vmatprep.mubr.bf16.mxu0 %v10050_v20  ;;  %v8049_v50 = vld [vmem:[#allocation8 + $0x890] sm:$0xff]  }
 0x33b   :  { %7149 = vmatprep.subr.bf16.mxu1 %v8019_v43  ;;  %7125 = vmatprep.subr.bf16.mxu0 %v8020_v28  ;;  %v8052_v43 = vld [vmem:[#allocation8 + $0x858] sm:$0xff]   ;;  %v8053_v28 = vld [vmem:[#allocation8 + $0x8a0] sm:$0xff]  }
 0x33d   :  { %7150 = vmatpush3.bf16.msra.mxu1 %v8021_v40 }
 0x33e   :  { %7126 = vmatpush3.bf16.msra.mxu0 %v8022_v22  ;;  %7151 = vmatprep.subr.bf16.mxu1 %v8023_v9  ;;  %v8056_v22 = vld [vmem:[#allocation8 + $0x868] sm:$0xff]  }
 0x33f   :  { %7127 = vmatprep.subr.bf16.mxu0 %v8024_v33 }
 0x341   :  { %7152 = vmatpush3.bf16.msra.mxu1 %v8025_v8  ;;  %v8057_v8 = vld [vmem:[#allocation8 + $0x8b0] sm:$0xff]  }
 0x342   :  { %7128 = vmatpush3.bf16.msra.mxu0 %v8026_v58  ;;  %7153 = vmatprep.subr.bf16.mxu1 %v8027_v49  ;;  %v6892_v29 = vpop.f32.mrb[12].mxu1  ;;  %v8058_v49 = vld [vmem:[#allocation8 + $0x870] sm:$0xff]  }
 0x343   :  { %7129 = vmatprep.subr.bf16.mxu0 %v8028_v55  ;;  %v6893_v14 = vpop.f32.mrb[13].mxu1  ;;  %v8059_v55 = vld [vmem:[#allocation8 + $0x8b8] sm:$0xff]  }
 0x344   :  { %v6894_v23 = vadd.f32 %v6893_v14, %v6892_v29  ;;  %v6895_v7 = vpop.f32.mrb[14].mxu1 }
 0x345   :  { %7154 = vmatpush3.bf16.msra.mxu1 %v8029_v4  ;;  %v6896_v46 = vpop.f32.mrb[15].mxu1  ;;  %v8060_v4 = vld [vmem:[#allocation8 + $0x878] sm:$0xff]  }
 0x346   :  { %7130 = vmatpush3.bf16.msra.mxu0 %v8030_v37  ;;  %7155 = vmatprep.subr.bf16.mxu1 %v8031_v6  ;;  %v6897_v45 = vadd.f32 %v6896_v46, %v6895_v7  ;;  %v8061_v37 = vld [vmem:[#allocation8 + $0x8c0] sm:$0xff]   ;;  %v10054_v6 = vpack.c.bf16 %v9817_v38, %v9812_v32 }
 0x347   :  { %7131 = vmatprep.subr.bf16.mxu0 %v8032_v57  ;;  %v6870_v61 = vpop.f32.mrb[8].mxu0  ;;  %v8062_v57 = vld [vmem:[#allocation8 + $0x8c8] sm:$0xff]  }
 0x348   :  { %v6871_v54 = vpop.f32.mrb[9].mxu0 }
 0x349   :  { %7156 = vmatpush3.bf16.msra.mxu1 %v8033_v16  ;;  %v6872_v19 = vadd.f32 %v6871_v54, %v6870_v61  ;;  %v6873_v60 = vpop.f32.mrb[10].mxu0  ;;  %v8063_v16 = vld [vmem:[#allocation8 + $0x8d0] sm:$0xff]  }
 0x34a   :  { %7132 = vmatpush3.bf16.msra.mxu0 %v8034_v48  ;;  %7157 = vmatprep.subr.bf16.mxu1 %v8035_v56  ;;  %v6874_v13 = vpop.f32.mrb[11].mxu0  ;;  %v8064_v48 = vld [vmem:[#allocation8 + $0x8d8] sm:$0xff]   ;;  %v8065_v56 = vld [vmem:[#allocation8 + $0x8e0] sm:$0xff]  }
 0x34b   :  { %7133 = vmatprep.subr.bf16.mxu0 %v8036_v21  ;;  %v3587_v18 = vadd.f32 %v6872_v19, %v9905_v3  ;;  %v6875_v63 = vadd.f32 %v6874_v13, %v6873_v60  ;;  %v10052_v3 = vpack.c.bf16 %v9762_v44, %v9757_v1  ;;  %v8055_v44 = vld [vmem:[#allocation8 + $0x8a8] sm:$0xff]   ;;  %v8068_v19 = vld [vmem:[#allocation8 + $0x8f8] sm:$0xff]  }
 0x34d   :  { %7158 = vmatpush3.bf16.msra.mxu1 %v8037_v17  ;;  %v3590_v41 = vadd.f32 %v6875_v63, %v9907_v11  ;;  %v3628_v42 = vadd.f32 %v6894_v23, %v3587_v18  ;;  %v10053_v11 = vpack.c.bf16 %v9822_v31, %v9807_v0  ;;  %v8066_v23 = vld [vmem:[#allocation8 + $0x8e8] sm:$0xff]  }
 0x34e   :  { %7134 = vmatpush3.bf16.msra.mxu0 %v8038_v62  ;;  %7159 = vmatprep.subr.bf16.mxu1 %v8039_v36 }
 0x34f   :  { %7135 = vmatprep.subr.bf16.mxu0 %v8040_v47  ;;  %v3631_v12 = vadd.f32 %v6897_v45, %v3590_v41  ;;  %v8067_v45 = vld [vmem:[#allocation8 + $0x8f0] sm:$0xff]  }
 0x351   :  { %7160 = vmatpush3.bf16.msra.mxu1 %v8041_v2 }
 0x352   :  { %7136 = vmatpush3.bf16.msra.mxu0 %v8042_v30 }
 0x353   :  { %7137 = vmatprep.subr.bf16.mxu0 %v8043_v26 }
 0x354   :  { %6088 = vmatmul.mubr.bf16.vlgmr.msra.gmra.mrb[40].mxu1 %v10051_v15 }
 0x356   :  { %7138 = vmatpush3.bf16.msra.mxu0 %v8044_v24 }
 0x357   :  { %7167 = vmatprep.subr.bf16.mxu0 %v8045_v5 }
 0x359   :  { %6047 = vmatmul.mubr.bf16.vlgmr.msra.gmra.mrb[28].mxu0 %v10052_v3 }
 0x35a   :  { %7168 = vmatpush3.bf16.msra.mxu0 %v8046_v25  ;;  %6128 = vmatprep.mubr.bf16.mxu0 %v10053_v11 }
 0x35b   :  { %7169 = vmatprep.subr.bf16.mxu0 %v8047_v34 }
 0x35e   :  { %7170 = vmatpush3.bf16.msra.mxu0 %v8048_v10 }
 0x35f   :  { %7171 = vmatprep.subr.bf16.mxu0 %v8049_v50 }
 0x362   :  { %7172 = vmatpush3.bf16.msra.mxu0 %v8050_v51 }
 0x363   :  { %7173 = vmatprep.subr.bf16.mxu0 %v8051_v59 }
 0x365   :  { %v6923_v1 = vpop.f32.mrb[16].mxu1 }
 0x366   :  { %7174 = vmatpush3.bf16.msra.mxu0 %v8052_v43  ;;  %v6924_v40 = vpop.f32.mrb[17].mxu1 }
 0x367   :  { %7175 = vmatprep.subr.bf16.mxu0 %v8053_v28  ;;  %v6925_v20 = vadd.f32 %v6924_v40, %v6923_v1  ;;  %v6926_v0 = vpop.f32.mrb[18].mxu1 }
 0x368   :  { %v6927_v31 = vpop.f32.mrb[19].mxu1 }
 0x369   :  { %v7282_v9 = vadd.f32 %v6925_v20, %v3628_v42  ;;  %v6928_v33 = vadd.f32 %v6927_v31, %v6926_v0 }
 0x36a   :  { %7176 = vmatpush3.bf16.msra.mxu0 %v8054_v27 }
 0x36b   :  { %7177 = vmatprep.subr.bf16.mxu0 %v8055_v44  ;;  %v7289_v58 = vadd.f32 %v6928_v33, %v3631_v12 }
 0x36e   :  { %7178 = vmatpush3.bf16.msra.mxu0 %v8056_v22 }
 0x36f   :  { %7179 = vmatprep.subr.bf16.mxu0 %v8057_v8 }
 0x372   :  { %7180 = vmatpush3.bf16.msra.mxu0 %v8058_v49 }
 0x373   :  { %7181 = vmatprep.subr.bf16.mxu0 %v8059_v55 }
 0x376   :  { %7182 = vmatpush3.bf16.msra.mxu0 %v8060_v4 }
 0x377   :  { %7258 = vmatprep.subr.bf16.mxu0 %v10010_v52 }
 0x379   :  { %6129 = vmatmul.mubr.bf16.vlgmr.msra.gmra.mrb[32].mxu0 %v10054_v6 }
 0x37a   :  { %7259 = vmatpush3.bf16.msra.mxu0 %v8061_v37  ;;  %7274 = vmatprep.mubr.msk.bf16.mxu0 %vm10043_vm5, %v10010_v52 }
 0x37b   :  { %7260 = vmatprep.subr.bf16.mxu0 %v10010_v52 }
 0x37e   :  { %7261 = vmatpush3.bf16.msra.mxu0 %v8062_v57 }
 0x37f   :  { %7262 = vmatprep.subr.bf16.mxu0 %v10010_v52 }
 0x382   :  { %7263 = vmatpush3.bf16.msra.mxu0 %v8063_v16 }
 0x383   :  { %7264 = vmatprep.subr.bf16.mxu0 %v10010_v52 }
 0x386   :  { %7265 = vmatpush3.bf16.msra.mxu0 %v8064_v48 }
 0x387   :  { %v6967_v29 = vpop.f32.mrb[20].mxu1  ;;  %7266 = vmatprep.subr.bf16.mxu0 %v10010_v52 }
 0x388   :  { %v6968_v32 = vpop.f32.mrb[21].mxu1 }
 0x389   :  { %v6969_v38 = vadd.f32 %v6968_v32, %v6967_v29  ;;  %v6970_v21 = vpop.f32.mrb[22].mxu1 }
 0x38a   :  { %v6971_v14 = vpop.f32.mrb[23].mxu1  ;;  %7267 = vmatpush3.bf16.msra.mxu0 %v8065_v56 }
 0x38b   :  { %v6972_v7 = vadd.f32 %v6971_v14, %v6970_v21  ;;  %7268 = vmatprep.subr.bf16.mxu0 %v10010_v52  ;;  %v6945_v17 = vpop.f32.mrb[16].mxu0 }
 0x38c   :  { %v6946_v46 = vpop.f32.mrb[17].mxu0 }
 0x38d   :  { %v6947_v62 = vadd.f32 %v6946_v46, %v6945_v17  ;;  %v6948_v36 = vpop.f32.mrb[18].mxu0 }
 0x38e   :  { %7269 = vmatpush3.bf16.msra.mxu0 %v8066_v23  ;;  %v6949_v47 = vpop.f32.mrb[19].mxu0 }
 0x38f   :  { %7270 = vmatprep.subr.bf16.mxu0 %v10010_v52  ;;  %v7283_v61 = vadd.f32 %v7282_v9, %v6947_v62  ;;  %v6950_v54 = vadd.f32 %v6949_v47, %v6948_v36 }
 0x391   :  { %v7290_v2 = vadd.f32 %v7289_v58, %v6950_v54  ;;  %v7284_v60 = vadd.f32 %v7283_v61, %v6969_v38 }
 0x392   :  { %7271 = vmatpush3.bf16.msra.mxu0 %v8067_v45 }
 0x393   :  { %7272 = vmatprep.subr.bf16.mxu0 %v10010_v52  ;;  %v7291_v30 = vadd.f32 %v7290_v2, %v6972_v7 }
 0x396   :  { %7273 = vmatpush3.bf16.msra.mxu0 %v8068_v19 }
 0x399   :  { %7275 = vmatmul.mubr.bf16.vlgmr.msra.gmra.mrb[12].mxu0 %v5396_v53 }
 0x3a7   :  { %v7020_v13 = vpop.f32.mrb[24].mxu1 }
 0x3a8   :  { %v7021_v26 = vpop.f32.mrb[25].mxu1 }
 0x3a9   :  { %v7022_v18 = vadd.f32 %v7021_v26, %v7020_v13  ;;  %v7023_v63 = vpop.f32.mrb[26].mxu1 }
 0x3aa   :  { %v7024_v41 = vpop.f32.mrb[27].mxu1 }
 0x3ab   :  { %v7025_v24 = vadd.f32 %v7024_v41, %v7023_v63 }
 0x3ac   :  { %v6989_v42 = vpop.f32.mrb[20].mxu0 }
 0x3ad   :  { %v6990_v5 = vpop.f32.mrb[21].mxu0 }
 0x3ae   :  { %v6991_v15 = vadd.f32 %v6990_v5, %v6989_v42  ;;  %v6992_v12 = vpop.f32.mrb[22].mxu0 }
 0x3af   :  { %v6993_v25 = vpop.f32.mrb[23].mxu0 }
 0x3b0   :  { %v7285_v34 = vadd.f32 %v7284_v60, %v6991_v15  ;;  %v6994_v3 = vadd.f32 %v6993_v25, %v6992_v12 }
 0x3b2   :  { %v7292_v52 = vadd.f32 %v7291_v30, %v6994_v3 }
 0x3c7   :  { %v7042_v11 = vpop.f32.mrb[28].mxu1 }
 0x3c8   :  { %v7043_v10 = vpop.f32.mrb[29].mxu1 }
 0x3c9   :  { %v7044_v50 = vadd.f32 %v7043_v10, %v7042_v11  ;;  %v7045_v51 = vpop.f32.mrb[30].mxu1 }
 0x3ca   :  { %v7046_v39 = vpop.f32.mrb[31].mxu1 }
 0x3cb   :  { %v5115_v35 = vadd.f32 %v7044_v50, %v7022_v18  ;;  %v7047_v53 = vadd.f32 %v7046_v39, %v7045_v51 }
 0x3cd   :  { %v5118_v59 = vadd.f32 %v7047_v53, %v7025_v24 }
 0x3e7   :  { %v7086_v43 = vpop.f32.mrb[32].mxu1 }
 0x3e8   :  { %v7087_v28 = vpop.f32.mrb[33].mxu1 }
 0x3e9   :  { %v7088_v27 = vadd.f32 %v7087_v28, %v7086_v43  ;;  %v7089_v1 = vpop.f32.mrb[34].mxu1 }
 0x3ea   :  { %v7090_v44 = vpop.f32.mrb[35].mxu1 }
 0x3eb   :  { %v7091_v40 = vadd.f32 %v7090_v44, %v7089_v1 }
 0x3ec   :  { %v7064_v20 = vpop.f32.mrb[24].mxu0 }
 0x3ed   :  { %v7065_v0 = vpop.f32.mrb[25].mxu0 }
 0x3ee   :  { %v7066_v31 = vadd.f32 %v7065_v0, %v7064_v20  ;;  %v7067_v22 = vpop.f32.mrb[26].mxu0 }
 0x3ef   :  { %v7068_v9 = vpop.f32.mrb[27].mxu0 }
 0x3f0   :  { %v5156_v33 = vadd.f32 %v7066_v31, %v5115_v35  ;;  %v7069_v8 = vadd.f32 %v7068_v9, %v7067_v22 }
 0x3f2   :  { %v5197_v58 = vadd.f32 %v7088_v27, %v5156_v33  ;;  %v5159_v49 = vadd.f32 %v7069_v8, %v5118_v59 }
 0x3f4   :  { %v5200_v55 = vadd.f32 %v7091_v40, %v5159_v49  ;;  %v7286_v4 = vadd.f32 %v7285_v34, %v5197_v58 }
 0x3f6   :  { %v7293_v37 = vadd.f32 %v7292_v52, %v5200_v55 }
 0x407   :  { %v7117_v6 = vpop.f32.mrb[36].mxu1 }
 0x408   :  { %v7118_v57 = vpop.f32.mrb[37].mxu1 }
 0x409   :  { %v7119_v16 = vadd.f32 %v7118_v57, %v7117_v6  ;;  %v7120_v48 = vpop.f32.mrb[38].mxu1 }
 0x40a   :  { %v7121_v56 = vpop.f32.mrb[39].mxu1 }
 0x40b   :  { %v7122_v29 = vadd.f32 %v7121_v56, %v7120_v48 }
 0x427   :  { %v7161_v32 = vpop.f32.mrb[40].mxu1 }
 0x428   :  { %v7162_v38 = vpop.f32.mrb[41].mxu1 }
 0x429   :  { %v7163_v21 = vadd.f32 %v7162_v38, %v7161_v32  ;;  %v7164_v14 = vpop.f32.mrb[42].mxu1 }
 0x42a   :  { %v7165_v23 = vpop.f32.mrb[43].mxu1 }
 0x42b   :  { %v7166_v7 = vadd.f32 %v7165_v23, %v7164_v14 }
 0x42c   :  { %v7139_v17 = vpop.f32.mrb[28].mxu0 }
 0x42d   :  { %v7140_v46 = vpop.f32.mrb[29].mxu0 }
 0x42e   :  { %v7141_v62 = vadd.f32 %v7140_v46, %v7139_v17  ;;  %v7142_v36 = vpop.f32.mrb[30].mxu0 }
 0x42f   :  { %v7143_v45 = vpop.f32.mrb[31].mxu0 }
 0x430   :  { %v6049_v47 = vadd.f32 %v7141_v62, %v7119_v16  ;;  %v7144_v61 = vadd.f32 %v7143_v45, %v7142_v36 }
 0x432   :  { %v6052_v54 = vadd.f32 %v7144_v61, %v7122_v29  ;;  %v6090_v2 = vadd.f32 %v7163_v21, %v6049_v47 }
 0x434   :  { %v6093_v19 = vadd.f32 %v7166_v7, %v6052_v54 }
 0x44c   :  { %v7183_v60 = vpop.f32.mrb[32].mxu0 }
 0x44d   :  { %v7184_v30 = vpop.f32.mrb[33].mxu0 }
 0x44e   :  { %v7185_v13 = vadd.f32 %v7184_v30, %v7183_v60  ;;  %v7186_v26 = vpop.f32.mrb[34].mxu0 }
 0x44f   :  { %v7187_v18 = vpop.f32.mrb[35].mxu0 }
 0x450   :  { %v6131_v63 = vadd.f32 %v7185_v13, %v6090_v2  ;;  %v7188_v41 = vadd.f32 %v7187_v18, %v7186_v26 }
 0x452   :  { %v6134_v24 = vadd.f32 %v7188_v41, %v6093_v19  ;;  %v7287_v42 = vadd.f32 %v7286_v4, %v6131_v63 }
 0x454   :  { %v7294_v5 = vadd.f32 %v7293_v37, %v6134_v24 }
 0x46c   :  { %v6171_v15 = vpop.f32.mrb[12].mxu0 }
 0x46d   :  { %v7288_v12 = vadd.f32 %v7287_v42, %v6171_v15  ;;  %v7276_v25 = vpop.f32.mrb[13].mxu0 }
 0x46e   :  { %v6174_v34 = vpop.f32.mrb[14].mxu0 }
 0x46f   :  { %6180 = vst [vmem:[#allocation9] sm:$0xff] %v7288_v12  ;;  %v7295_v3 = vadd.f32 %v7294_v5, %v6174_v34  ;;  %v7277_v52 = vpop.f32.mrb[15].mxu0 }
 0x471   :  { %6181 = vst [vmem:[#allocation9 + $0x8] sm:$0xff] %v7295_v3 }
 0x472   :  { %8202 = shalt.err (!%p8199_p0)
}
 0x473   :  { %s8203_s27 = scalar_lea.hbm %s9964_s3, 256 }
 0x474   :  { %p8204_p1 = scmp.ne.s32.totalorder %s9964_s3, %s8203_s27  ;;  %p8207_p2 = scmp.lt.u32.totalorder %s8203_s27, %s9964_s3 }
 0x476   :  { %p8209_p3 = pnand %p8207_p2, %p8204_p1 }
 0x478   :  { %8212 = shalt.err (!%p8209_p3)
}
 0x479   :  { %s8230_s5 = smov 128   ;;  %s8231_s6 = smov 8  }
 0x47a   :  { %6193 = dma.vmem_to_hbm [thread:$0]  %s6188_s23, 256, %s9964_s3, [#allocation5], %s8230_s5, %s8230_s5, %s8231_s6  }
 0x47b   :  { %8217 = dma.done.wait [#allocation5], 256  }
 0x47c   :  { %8218 = vsyncadd [#allocation5], 4294967040 }
 0x47d   :  { %6197 = vsyncpa [#allocation4], 1 }
 0x47e   :  { %6198 = vsyncpa [#allocation7], 1 }
 0x47f   :  { %6199 = vsyncpa [#allocation5], 1 }

</bundles_post_ra>
